<compile_context>
chip_gen: v7x
topology: tpu7x:2x2x1
jax: 0.10.0
libtpu: 0.0.40
codegen_flags: <defaults>
</compile_context>

<pallas_src>
import jax
import jax.numpy as jnp
from jax.experimental import pallas as pl
from jax.experimental.pallas import tpu as pltpu


# ------------------------------------------------------------------ small helpers
def _round_up(x, m):
    return (x + m - 1) // m * m


def _largest_block(total, cap, multiple):
    """Largest divisor of `total` that is a multiple of `multiple` and <= cap."""
    best = multiple
    for d in range(multiple, min(total, cap) + 1, multiple):
        if total % d == 0:
            best = d
    return best


# ------------------------------------------------------------------ fused kernel
def _make_kernel(num_layers, hidden, time_block, t_real, has_tail, unroll):
    L, H, TC = num_layers, hidden, time_block

    def _cell(gates, c_prev):
        # gate columns pre-permuted to [i, f, o, g]:
        # one contiguous sigmoid over 3H lanes, one tanh over the trailing H.
        sig = jax.nn.sigmoid(gates[:, : 3 * H])
        g_t = jnp.tanh(gates[:, 3 * H:])
        i_g = sig[:, :H]
        f_g = sig[:, H: 2 * H]
        o_g = sig[:, 2 * H: 3 * H]
        c_new = f_g * c_prev + i_g * g_t
        h_new = o_g * jnp.tanh(c_new)
        return h_new, c_new

    def kernel(*refs):
        x_ref = refs[0]                                 # (TC, bb, Din) raw input tile
        w_ih0_ref, b0_ref, w_hh0_ref = refs[1:4]        # (Din,4H), (1,4H), (H,4H)
        layer_refs = refs[4: 4 + 3 * (L - 1)]           # per layer: (H,4H),(H,4H),(1,4H)
        fcw_ref = refs[4 + 3 * (L - 1)]                 # (H, O_pad)
        fcb_ref = refs[5 + 3 * (L - 1)]                 # (1, O_pad)
        out_ref = refs[6 + 3 * (L - 1)]                 # (bb, O_pad)
        h_scr = refs[7 + 3 * (L - 1)]                   # (L, bb, H) f32 carries
        c_scr = refs[8 + 3 * (L - 1)]                   # (L, bb, H) f32 carries
        gx_scr = refs[9 + 3 * (L - 1)]                  # (TC, bb, 4H) f32

        # NOTE: carry correctness requires the time axis (grid axis 1) to be the
        # innermost, sequentially iterated ("arbitrary") grid axis.  Do not reorder.
        t_blk = pl.program_id(1)
        w_dt = w_hh0_ref.dtype
        bb = x_ref.shape[1]
        din = x_ref.shape[2]

        @pl.when(t_blk == 0)
        def _():
            h_scr[...] = jnp.zeros_like(h_scr)
            c_scr[...] = jnp.zeros_like(c_scr)

        # ---- layer-0 input projection for the WHOLE time block: one MXU matmul.
        # Reshapes only merge/split leading dims with bb % 8 == 0, so they are
        # layout-preserving (no VMEM copies).
        x2d = x_ref[...].reshape(TC * bb, din).astype(w_dt)
        gx = jnp.dot(x2d, w_ih0_ref[...], preferred_element_type=jnp.float32)
        gx_scr[...] = (gx + b0_ref[...]).reshape(TC, bb, 4 * H)

        # ---- hoisted loop-invariant loads (JAX does not CSE these inside the loop).
        w_hh0 = w_hh0_ref[...]
        upper = [(layer_refs[3 * l][...],        # W_ih (H, 4H)
                  layer_refs[3 * l + 1][...],    # W_hh (H, 4H)
                  layer_refs[3 * l + 2][...])    # bias (1, 4H) f32
                 for l in range(L - 1)]

        # ---- per-timestep serial recurrence, h/c kept in registers for the block.
        def step(j, carry):
            hs, cs = carry
            new_h, new_c = [], []
            gates = gx_scr[j] + jnp.dot(hs[0].astype(w_dt), w_hh0,
                                        preferred_element_type=jnp.float32)
            h_l, c_l = _cell(gates, cs[0])
            new_h.append(h_l)
            new_c.append(c_l)
            for l in range(1, L):
                w_ih_l, w_hh_l, b_l = upper[l - 1]
                gates = (jnp.dot(new_h[l - 1].astype(w_dt), w_ih_l,
                                 preferred_element_type=jnp.float32)
                         + jnp.dot(hs[l].astype(w_dt), w_hh_l,
                                   preferred_element_type=jnp.float32)
                         + b_l)
                h_l, c_l = _cell(gates, cs[l])
                new_h.append(h_l)
                new_c.append(c_l)
            if has_tail:
                # Only traced when T was padded: freeze carries on padded timesteps.
                valid = (t_blk * TC + j) < t_real
                new_h = [jnp.where(valid, n, o) for n, o in zip(new_h, hs)]
                new_c = [jnp.where(valid, n, o) for n, o in zip(new_c, cs)]
            return tuple(new_h), tuple(new_c)

        hs0 = tuple(h_scr[l] for l in range(L))
        cs0 = tuple(c_scr[l] for l in range(L))
        hs, cs = jax.lax.fori_loop(0, TC, step, (hs0, cs0),
                                   unroll=max(1, min(TC, unroll)))
        for l in range(L):
            h_scr[l] = hs[l]
            c_scr[l] = cs[l]

        # ---- last timestep of the whole sequence: fused FC on the top layer's hidden.
        @pl.when(t_blk == pl.num_programs(1) - 1)
        def _():
            out_ref[...] = (jnp.dot(hs[L - 1].astype(w_dt), fcw_ref[...],
                                    preferred_element_type=jnp.float32)
                            + fcb_ref[...]).astype(out_ref.dtype)

    return kernel


# ------------------------------------------------------------------ parameter prep
def _prepare_params(lstm_params, fc_w, fc_b, hidden, out_pad, weights_dtype):
    H = hidden
    # PyTorch gate order [i, f, g, o] -> [i, f, o, g]
    perm = jnp.concatenate([jnp.arange(0, 2 * H),
                            jnp.arange(3 * H, 4 * H),
                            jnp.arange(2 * H, 3 * H)])

    w_ih0, w_hh0, b0 = lstm_params[0]
    w_ih0_p = w_ih0[:, perm].astype(weights_dtype)
    w_hh0_p = w_hh0[:, perm].astype(weights_dtype)
    b0_p = b0.reshape(1, -1)[:, perm].astype(jnp.float32)

    upper = []
    for (w_ih, w_hh, b) in lstm_params[1:]:
        upper.append((w_ih[:, perm].astype(weights_dtype),
                      w_hh[:, perm].astype(weights_dtype),
                      b.reshape(1, -1)[:, perm].astype(jnp.float32)))

    O = fc_w.shape[1]
    if out_pad != O:
        fc_w_p = jnp.zeros((H, out_pad), jnp.float32).at[:, :O].set(fc_w)
        fc_b_p = jnp.zeros((1, out_pad), jnp.float32).at[:, :O].set(fc_b.reshape(1, -1))
    else:
        fc_w_p = fc_w.astype(jnp.float32)
        fc_b_p = fc_b.reshape(1, -1).astype(jnp.float32)
    fc_w_p = fc_w_p.astype(weights_dtype)
    return w_ih0_p, b0_p, w_hh0_p, upper, fc_w_p, fc_b_p


# ------------------------------------------------------------------ forward
def _forward(x, lstm_params, fc_w, fc_b, *, weights_dtype, time_block, batch_block,
             unroll, single_buffer_weights):
    B, T, Din = x.shape
    H = lstm_params[0][1].shape[0]
    L = len(lstm_params)
    O = fc_w.shape[1]

    # ---- batch / output padding (sublane- / lane-dense) ---------------------------
    B_pad = _round_up(max(B, 8), 8)
    O_pad = _round_up(O, 128)

    if batch_block is not None:
        bb = _round_up(max(8, min(batch_block, B_pad)), 8)
        B_pad = _round_up(B_pad, bb)
    else:
        # Guarantee >= 2 batch blocks when B_pad >= 16 so the "parallel" batch axis
        # can be split across both TensorCores on v7x (harmless on v5e/v6e).
        if B_pad < 16:
            cap = min(128, B_pad)
        else:
            cap = max(8, min(128, (B_pad // 2) // 8 * 8))
        bb = _largest_block(B_pad, cap, 8)

    # ---- time blocking (pad + in-kernel masking when it doesn't divide) -----------
    if time_block is not None:
        tc = max(1, min(int(time_block), T))
    else:
        tc = _largest_block(T, 16, 1)
        if tc < min(8, T):           # prime/odd T: prefer padding+masking over tc=1
            tc = min(16, T)
    T_pad = _round_up(T, tc)
    has_tail = T_pad != T

    assert B_pad % bb == 0 and T_pad % tc == 0

    w_ih0_p, b0_p, w_hh0_p, upper, fc_w_p, fc_b_p = _prepare_params(
        lstm_params, fc_w, fc_b, H, O_pad, weights_dtype)

    # Time-major x, padded.  This is the only wrapper-side pass over x; the big
    # (T, B, 4H) x_proj intermediate of the previous version is gone.
    x_tm = jnp.transpose(x.astype(jnp.float32), (1, 0, 2))
    if (T_pad, B_pad) != (T, B):
        x_tm = jnp.zeros((T_pad, B_pad, Din), jnp.float32).at[:T, :B].set(x_tm)

    const_mode = pl.Buffered(1) if single_buffer_weights else None

    def const_spec(shape):
        if const_mode is None:
            return pl.BlockSpec(shape, lambda b, t: (0,) * len(shape))
        return pl.BlockSpec(shape, lambda b, t: (0,) * len(shape),
                            pipeline_mode=const_mode)

    in_specs = [pl.BlockSpec((tc, bb, Din), lambda b, t: (t, b, 0)),
                const_spec((Din, 4 * H)),
                const_spec((1, 4 * H)),
                const_spec((H, 4 * H))]
    inputs = [x_tm, w_ih0_p, b0_p, w_hh0_p]
    for (w_ih_l, w_hh_l, b_l) in upper:
        in_specs += [const_spec((H, 4 * H)), const_spec((H, 4 * H)),
                     const_spec((1, 4 * H))]
        inputs += [w_ih_l, w_hh_l, b_l]
    in_specs += [const_spec((H, O_pad)), const_spec((1, O_pad))]
    inputs += [fc_w_p, fc_b_p]

    out_spec = pl.BlockSpec((bb, O_pad), lambda b, t: (b, 0))

    # ---- generation-aware VMEM limit ----------------------------------------------
    wb = jnp.dtype(weights_dtype).itemsize
    nbw = 1 if single_buffer_weights else 2
    est = (2 * tc * bb * Din * 4                                     # streamed x (2-buf)
           + tc * bb * 4 * H * 4                                     # gx scratch
           + nbw * ((Din + H) * 4 * H * wb + 4 * H * 4)              # layer-0 params
           + nbw * (L - 1) * (2 * H * 4 * H * wb + 4 * H * 4)        # upper layers
           + nbw * (H * O_pad * wb + O_pad * 4)                      # fc
           + 2 * bb * O_pad * 4                                      # output block
           + 2 * L * bb * H * 4)                                     # h/c scratch
    try:
        cap = int(pltpu.get_tpu_info().vmem_capacity_bytes)
    except Exception:
        cap = 64 * 2 ** 20
    headroom_cap = max(cap // 2, cap - 16 * 2 ** 20)     # leave compiler headroom
    vmem_limit = int(min(headroom_cap, max(16 * 2 ** 20, 2 * est)))
    vmem_limit = int(min(cap, max(vmem_limit, est + (2 << 20))))     # never below need

    out_padded = pl.pallas_call(
        _make_kernel(L, H, tc, T, has_tail, unroll),
        out_shape=jax.ShapeDtypeStruct((B_pad, O_pad), jnp.float32),
        grid_spec=pltpu.PrefetchScalarGridSpec(
            num_scalar_prefetch=0,
            # time MUST stay the innermost grid axis (sequential carries in scratch).
            grid=(B_pad // bb, T_pad // tc),
            in_specs=in_specs,
            out_specs=out_spec,
            scratch_shapes=[pltpu.VMEM((L, bb, H), jnp.float32),
                            pltpu.VMEM((L, bb, H), jnp.float32),
                            pltpu.VMEM((tc, bb, 4 * H), jnp.float32)]),
        compiler_params=pltpu.CompilerParams(
            dimension_semantics=("parallel", "arbitrary"),
            vmem_limit_bytes=vmem_limit),
    )(*inputs)

    return out_padded[:B, :O]


def activity_rnn_forward(x, lstm_params, fc_w, fc_b, *, weights_dtype=jnp.bfloat16,
                         time_block=None, batch_block=None, unroll=8):
    """x: (B, T, input_size) batch_first, like the PyTorch module.

    weights_dtype defaults to bfloat16 (MXU-native); pass jnp.float32 when bit-level
    fidelity against an f32 reference is required.
    """
    kwargs = dict(weights_dtype=weights_dtype, time_block=time_block,
                  batch_block=batch_block, unroll=unroll)
    try:
        return _forward(x, lstm_params, fc_w, fc_b, single_buffer_weights=True, **kwargs)
    except Exception:
        # Safety net: if this JAX build rejects pl.Buffered(1) on the loop-invariant
        # weight specs, retry with default double buffering (identical numerics).
        return _forward(x, lstm_params, fc_w, fc_b, single_buffer_weights=False, **kwargs)


# ------------------------------------------------------------------ params (deterministic)
def init_params(key, input_size, hidden_size, num_layers, output_size):
    k = 1.0 / jnp.sqrt(jnp.float32(hidden_size))
    lstm_params = []
    for layer in range(num_layers):
        din = input_size if layer == 0 else hidden_size
        key, k1, k2, k3, k4 = jax.random.split(key, 5)
        # PyTorch stores weight_ih as (4H, D); we keep it transposed as (D, 4H),
        # gate order [i, f, g, o] like PyTorch.
        w_ih = jax.random.uniform(k1, (din, 4 * hidden_size), jnp.float32, -k, k)
        w_hh = jax.random.uniform(k2, (hidden_size, 4 * hidden_size), jnp.float32, -k, k)
        b_ih = jax.random.uniform(k3, (4 * hidden_size,), jnp.float32, -k, k)
        b_hh = jax.random.uniform(k4, (4 * hidden_size,), jnp.float32, -k, k)
        bias = (b_ih + b_hh).reshape(1, 4 * hidden_size)
        lstm_params.append((w_ih, w_hh, bias))
    key, k5, k6 = jax.random.split(key, 3)
    kf = 1.0 / jnp.sqrt(jnp.float32(hidden_size))
    fc_w = jax.random.uniform(k5, (hidden_size, output_size), jnp.float32, -kf, kf)
    fc_b = jax.random.uniform(k6, (1, output_size), jnp.float32, -kf, kf)
    return lstm_params, fc_w, fc_b


# ------------------------------------------------------------------ pure-JAX reference
def ref_forward(x, lstm_params, fc_w, fc_b):
    B, T, _ = x.shape
    layer_in = x.astype(jnp.float32)
    for (w_ih, w_hh, bias) in lstm_params:
        H = w_hh.shape[0]
        h = jnp.zeros((B, H), jnp.float32)
        c = jnp.zeros((B, H), jnp.float32)
        outs = []
        for t in range(T):
            gates = layer_in[:, t, :] @ w_ih + h @ w_hh + bias[0]
            i_g = jax.nn.sigmoid(gates[:, :H])
            f_g = jax.nn.sigmoid(gates[:, H:2 * H])
            g_g = jnp.tanh(gates[:, 2 * H:3 * H])
            o_g = jax.nn.sigmoid(gates[:, 3 * H:])
            c = f_g * c + i_g * g_g
            h = o_g * jnp.tanh(c)
            outs.append(h)
        layer_in = jnp.stack(outs, axis=1)
    return layer_in[:, -1, :] @ fc_w + fc_b[0]


if __name__ == "__main__":
    B, T = 2, 8
    input_size, hidden_size, num_layers, output_size = 16, 32, 2, 6

    key = jax.random.PRNGKey(0)
    key, kx, kp = jax.random.split(key, 3)
    x = jax.random.normal(kx, (B, T, input_size), jnp.float32)
    lstm_params, fc_w, fc_b = init_params(kp, input_size, hidden_size,
                                          num_layers, output_size)

    ref = ref_forward(x, lstm_params, fc_w, fc_b)

    # f32 weights: tight check against the pure-JAX reference.
    out_f32 = jax.block_until_ready(
        activity_rnn_forward(x, lstm_params, fc_w, fc_b, weights_dtype=jnp.float32))
    assert out_f32.shape == (B, output_size), out_f32.shape
    assert jnp.allclose(out_f32, ref, rtol=1e-3, atol=1e-3), (out_f32, ref)

    # Non-dividing time block: exercises the pad + mask (frozen carry) path.
    out_tail = jax.block_until_ready(
        activity_rnn_forward(x, lstm_params, fc_w, fc_b, weights_dtype=jnp.float32,
                             time_block=3))
    assert jnp.allclose(out_tail, ref, rtol=1e-3, atol=1e-3), (out_tail, ref)

    # Default path (bf16 weights on the MXU, f32 accumulation): looser tolerance.
    out_bf16 = jax.block_until_ready(activity_rnn_forward(x, lstm_params, fc_w, fc_b))
    assert out_bf16.shape == (B, output_size), out_bf16.shape
    assert jnp.allclose(out_bf16, ref, rtol=1e-1, atol=1e-1), (out_bf16, ref)

    print("KERNEL_OK")
</pallas_src>

<mosaic_0001>
module attributes {stable_mosaic.version = 11 : i64} {
  func.func @kernel(%arg0: i32, %arg1: i32, %arg2: memref<8x8x16xf32, #tpu.memory_space<vmem>>, %arg3: memref<16x128xf32, #tpu.memory_space<vmem>>, %arg4: memref<1x128xf32, #tpu.memory_space<vmem>>, %arg5: memref<32x128xf32, #tpu.memory_space<vmem>>, %arg6: memref<32x128xf32, #tpu.memory_space<vmem>>, %arg7: memref<32x128xf32, #tpu.memory_space<vmem>>, %arg8: memref<1x128xf32, #tpu.memory_space<vmem>>, %arg9: memref<32x128xf32, #tpu.memory_space<vmem>>, %arg10: memref<1x128xf32, #tpu.memory_space<vmem>>, %arg11: memref<8x128xf32, #tpu.memory_space<vmem>>, %arg12: memref<2x8x32xf32, #tpu.memory_space<vmem>>, %arg13: memref<2x8x32xf32, #tpu.memory_space<vmem>>, %arg14: memref<8x8x128xf32, #tpu.memory_space<vmem>>) attributes {dimension_semantics = [#tpu.dimension_semantics<parallel>, #tpu.dimension_semantics<arbitrary>], iteration_bounds = array<i64: 1, 1>, scalar_prefetch = 0 : i64, scratch_operands = 3 : i64, tpu.core_type = #tpu.core_type<tc>, window_params = [{transform_indices = @transform_0, window_bounds = array<i64: 8, 8, 16>}, {pipeline_mode = #tpu.pipeline_mode<synchronous>, transform_indices = @transform_1, window_bounds = array<i64: 16, 128>}, {pipeline_mode = #tpu.pipeline_mode<synchronous>, transform_indices = @transform_2, window_bounds = array<i64: 1, 128>}, {pipeline_mode = #tpu.pipeline_mode<synchronous>, transform_indices = @transform_3, window_bounds = array<i64: 32, 128>}, {pipeline_mode = #tpu.pipeline_mode<synchronous>, transform_indices = @transform_4, window_bounds = array<i64: 32, 128>}, {pipeline_mode = #tpu.pipeline_mode<synchronous>, transform_indices = @transform_5, window_bounds = array<i64: 32, 128>}, {pipeline_mode = #tpu.pipeline_mode<synchronous>, transform_indices = @transform_6, window_bounds = array<i64: 1, 128>}, {pipeline_mode = #tpu.pipeline_mode<synchronous>, transform_indices = @transform_7, window_bounds = array<i64: 32, 128>}, {pipeline_mode = #tpu.pipeline_mode<synchronous>, transform_indices = @transform_8, window_bounds = array<i64: 1, 128>}, {transform_indices = @transform_9, window_bounds = array<i64: 8, 128>}]} {
    %c0_i32 = arith.constant 0 : i32
    %0 = arith.cmpi eq, %arg1, %c0_i32 : i32
    %1 = arith.extui %0 : i1 to i32
    %c0_i32_0 = arith.constant 0 : i32
    %2 = arith.cmpi ne, %1, %c0_i32_0 : i32
    scf.if %2 {
      %cst_100 = arith.constant 0.000000e+00 : f32
      %375 = vector.broadcast %cst_100 : f32 to vector<2x8x32xf32>
      %c0_101 = arith.constant 0 : index
      %c0_102 = arith.constant 0 : index
      %c0_103 = arith.constant 0 : index
      %376 = vector.load %arg12[%c0_101, %c0_102, %c0_103] : memref<2x8x32xf32, #tpu.memory_space<vmem>>, vector<2x8x32xf32>
      tpu.vector_store %arg12[%c0_101, %c0_102, %c0_103], %375 {strides = array<i32>} : memref<2x8x32xf32, #tpu.memory_space<vmem>>, vector<2x8x32xf32>,
      %cst_104 = arith.constant 0.000000e+00 : f32
      %377 = vector.broadcast %cst_104 : f32 to vector<2x8x32xf32>
      %c0_105 = arith.constant 0 : index
      %c0_106 = arith.constant 0 : index
      %c0_107 = arith.constant 0 : index
      %378 = vector.load %arg13[%c0_105, %c0_106, %c0_107] : memref<2x8x32xf32, #tpu.memory_space<vmem>>, vector<2x8x32xf32>
      tpu.vector_store %arg13[%c0_105, %c0_106, %c0_107], %377 {strides = array<i32>} : memref<2x8x32xf32, #tpu.memory_space<vmem>>, vector<2x8x32xf32>,
    } else {
    }
    %c0 = arith.constant 0 : index
    %c0_1 = arith.constant 0 : index
    %c0_2 = arith.constant 0 : index
    %3 = vector.load %arg2[%c0, %c0_1, %c0_2] : memref<8x8x16xf32, #tpu.memory_space<vmem>>, vector<8x8x16xf32>
    %4 = vector.shape_cast %3 : vector<8x8x16xf32> to vector<64x16xf32>
    %c0_3 = arith.constant 0 : index
    %c0_4 = arith.constant 0 : index
    %5 = vector.load %arg3[%c0_3, %c0_4] : memref<16x128xf32, #tpu.memory_space<vmem>>, vector<16x128xf32>
    %cst = arith.constant dense<0.000000e+00> : vector<64x128xf32>
    %6 = tpu.matmul %4, %5, %cst {dimension_numbers = #tpu.dot_dimension_numbers<[1], [0], [0], [1], [0, 0, 1, 1], [], []>} : vector<64x16xf32>, vector<16x128xf32>, vector<64x128xf32> -> vector<64x128xf32>
    %c0_5 = arith.constant 0 : index
    %c0_6 = arith.constant 0 : index
    %7 = vector.load %arg4[%c0_5, %c0_6] : memref<1x128xf32, #tpu.memory_space<vmem>>, vector<1x128xf32>
    %8 = vector.broadcast %7 : vector<1x128xf32> to vector<64x128xf32>
    %9 = arith.addf %6, %8 : vector<64x128xf32>
    %10 = vector.shape_cast %9 : vector<64x128xf32> to vector<8x8x128xf32>
    %c0_7 = arith.constant 0 : index
    %c0_8 = arith.constant 0 : index
    %c0_9 = arith.constant 0 : index
    %11 = vector.load %arg14[%c0_7, %c0_8, %c0_9] : memref<8x8x128xf32, #tpu.memory_space<vmem>>, vector<8x8x128xf32>
    tpu.vector_store %arg14[%c0_7, %c0_8, %c0_9], %10 {strides = array<i32>} : memref<8x8x128xf32, #tpu.memory_space<vmem>>, vector<8x8x128xf32>,
    %c0_10 = arith.constant 0 : index
    %c0_11 = arith.constant 0 : index
    %12 = vector.load %arg5[%c0_10, %c0_11] : memref<32x128xf32, #tpu.memory_space<vmem>>, vector<32x128xf32>
    %c0_12 = arith.constant 0 : index
    %c0_13 = arith.constant 0 : index
    %13 = vector.load %arg6[%c0_12, %c0_13] : memref<32x128xf32, #tpu.memory_space<vmem>>, vector<32x128xf32>
    %c0_14 = arith.constant 0 : index
    %c0_15 = arith.constant 0 : index
    %14 = vector.load %arg7[%c0_14, %c0_15] : memref<32x128xf32, #tpu.memory_space<vmem>>, vector<32x128xf32>
    %c0_16 = arith.constant 0 : index
    %c0_17 = arith.constant 0 : index
    %15 = vector.load %arg8[%c0_16, %c0_17] : memref<1x128xf32, #tpu.memory_space<vmem>>, vector<1x128xf32>
    %c0_18 = arith.constant 0 : index
    %c0_19 = arith.constant 0 : index
    %c0_20 = arith.constant 0 : index
    %16 = vector.load %arg12[%c0_18, %c0_19, %c0_20] : memref<2x8x32xf32, #tpu.memory_space<vmem>>, vector<1x8x32xf32>
    %17 = vector.shape_cast %16 : vector<1x8x32xf32> to vector<8x32xf32>
    %c1 = arith.constant 1 : index
    %c0_21 = arith.constant 0 : index
    %c0_22 = arith.constant 0 : index
    %18 = vector.load %arg12[%c1, %c0_21, %c0_22] : memref<2x8x32xf32, #tpu.memory_space<vmem>>, vector<1x8x32xf32>
    %19 = vector.shape_cast %18 : vector<1x8x32xf32> to vector<8x32xf32>
    %c0_23 = arith.constant 0 : index
    %c0_24 = arith.constant 0 : index
    %c0_25 = arith.constant 0 : index
    %20 = vector.load %arg13[%c0_23, %c0_24, %c0_25] : memref<2x8x32xf32, #tpu.memory_space<vmem>>, vector<1x8x32xf32>
    %21 = vector.shape_cast %20 : vector<1x8x32xf32> to vector<8x32xf32>
    %c1_26 = arith.constant 1 : index
    %c0_27 = arith.constant 0 : index
    %c0_28 = arith.constant 0 : index
    %22 = vector.load %arg13[%c1_26, %c0_27, %c0_28] : memref<2x8x32xf32, #tpu.memory_space<vmem>>, vector<1x8x32xf32>
    %23 = vector.shape_cast %22 : vector<1x8x32xf32> to vector<8x32xf32>
    %c0_i32_29 = arith.constant 0 : i32
    %24 = arith.index_cast %c0_i32_29 : i32 to index
    %c0_30 = arith.constant 0 : index
    %c0_31 = arith.constant 0 : index
    %25 = vector.load %arg14[%24, %c0_30, %c0_31] : memref<8x8x128xf32, #tpu.memory_space<vmem>>, vector<1x8x128xf32>
    %26 = vector.shape_cast %25 : vector<1x8x128xf32> to vector<8x128xf32>
    %cst_32 = arith.constant dense<0.000000e+00> : vector<8x128xf32>
    %27 = tpu.matmul %17, %12, %cst_32 {dimension_numbers = #tpu.dot_dimension_numbers<[1], [0], [0], [1], [0, 0, 1, 1], [], []>} : vector<8x32xf32>, vector<32x128xf32>, vector<8x128xf32> -> vector<8x128xf32>
    %28 = arith.addf %26, %27 : vector<8x128xf32>
    %29 = vector.extract_strided_slice %28 {offsets = [0, 0], sizes = [8, 96], strides = [1, 1]} : vector<8x128xf32> to vector<8x96xf32>
    %30 = arith.negf %29 : vector<8x96xf32>
    %31 = math.exp %30 : vector<8x96xf32>
    %cst_33 = arith.constant 1.000000e+00 : f32
    %32 = vector.broadcast %cst_33 : f32 to vector<8x96xf32>
    %33 = arith.addf %32, %31 : vector<8x96xf32>
    %34 = arith.divf %32, %33 : vector<8x96xf32>
    %35 = vector.extract_strided_slice %28 {offsets = [0, 96], sizes = [8, 32], strides = [1, 1]} : vector<8x128xf32> to vector<8x32xf32>
    %36 = math.tanh %35 : vector<8x32xf32>
    %37 = vector.extract_strided_slice %34 {offsets = [0, 0], sizes = [8, 32], strides = [1, 1]} : vector<8x96xf32> to vector<8x32xf32>
    %38 = vector.extract_strided_slice %34 {offsets = [0, 32], sizes = [8, 32], strides = [1, 1]} : vector<8x96xf32> to vector<8x32xf32>
    %39 = vector.extract_strided_slice %34 {offsets = [0, 64], sizes = [8, 32], strides = [1, 1]} : vector<8x96xf32> to vector<8x32xf32>
    %40 = arith.mulf %38, %21 : vector<8x32xf32>
    %41 = arith.mulf %37, %36 : vector<8x32xf32>
    %42 = arith.addf %40, %41 : vector<8x32xf32>
    %43 = math.tanh %42 : vector<8x32xf32>
    %44 = arith.mulf %39, %43 : vector<8x32xf32>
    %cst_34 = arith.constant dense<0.000000e+00> : vector<8x128xf32>
    %45 = tpu.matmul %44, %13, %cst_34 {dimension_numbers = #tpu.dot_dimension_numbers<[1], [0], [0], [1], [0, 0, 1, 1], [], []>} : vector<8x32xf32>, vector<32x128xf32>, vector<8x128xf32> -> vector<8x128xf32>
    %cst_35 = arith.constant dense<0.000000e+00> : vector<8x128xf32>
    %46 = tpu.matmul %19, %14, %cst_35 {dimension_numbers = #tpu.dot_dimension_numbers<[1], [0], [0], [1], [0, 0, 1, 1], [], []>} : vector<8x32xf32>, vector<32x128xf32>, vector<8x128xf32> -> vector<8x128xf32>
    %47 = arith.addf %45, %46 : vector<8x128xf32>
    %48 = vector.broadcast %15 : vector<1x128xf32> to vector<8x128xf32>
    %49 = arith.addf %47, %48 : vector<8x128xf32>
    %50 = vector.extract_strided_slice %49 {offsets = [0, 0], sizes = [8, 96], strides = [1, 1]} : vector<8x128xf32> to vector<8x96xf32>
    %51 = arith.negf %50 : vector<8x96xf32>
    %52 = math.exp %51 : vector<8x96xf32>
    %cst_36 = arith.constant 1.000000e+00 : f32
    %53 = vector.broadcast %cst_36 : f32 to vector<8x96xf32>
    %54 = arith.addf %53, %52 : vector<8x96xf32>
    %55 = arith.divf %53, %54 : vector<8x96xf32>
    %56 = vector.extract_strided_slice %49 {offsets = [0, 96], sizes = [8, 32], strides = [1, 1]} : vector<8x128xf32> to vector<8x32xf32>
    %57 = math.tanh %56 : vector<8x32xf32>
    %58 = vector.extract_strided_slice %55 {offsets = [0, 0], sizes = [8, 32], strides = [1, 1]} : vector<8x96xf32> to vector<8x32xf32>
    %59 = vector.extract_strided_slice %55 {offsets = [0, 32], sizes = [8, 32], strides = [1, 1]} : vector<8x96xf32> to vector<8x32xf32>
    %60 = vector.extract_strided_slice %55 {offsets = [0, 64], sizes = [8, 32], strides = [1, 1]} : vector<8x96xf32> to vector<8x32xf32>
    %61 = arith.mulf %59, %23 : vector<8x32xf32>
    %62 = arith.mulf %58, %57 : vector<8x32xf32>
    %63 = arith.addf %61, %62 : vector<8x32xf32>
    %64 = math.tanh %63 : vector<8x32xf32>
    %65 = arith.mulf %60, %64 : vector<8x32xf32>
    %c1_i32 = arith.constant 1 : i32
    %66 = arith.index_cast %c1_i32 : i32 to index
    %c0_37 = arith.constant 0 : index
    %c0_38 = arith.constant 0 : index
    %67 = vector.load %arg14[%66, %c0_37, %c0_38] : memref<8x8x128xf32, #tpu.memory_space<vmem>>, vector<1x8x128xf32>
    %68 = vector.shape_cast %67 : vector<1x8x128xf32> to vector<8x128xf32>
    %cst_39 = arith.constant dense<0.000000e+00> : vector<8x128xf32>
    %69 = tpu.matmul %44, %12, %cst_39 {dimension_numbers = #tpu.dot_dimension_numbers<[1], [0], [0], [1], [0, 0, 1, 1], [], []>} : vector<8x32xf32>, vector<32x128xf32>, vector<8x128xf32> -> vector<8x128xf32>
    %70 = arith.addf %68, %69 : vector<8x128xf32>
    %71 = vector.extract_strided_slice %70 {offsets = [0, 0], sizes = [8, 96], strides = [1, 1]} : vector<8x128xf32> to vector<8x96xf32>
    %72 = arith.negf %71 : vector<8x96xf32>
    %73 = math.exp %72 : vector<8x96xf32>
    %cst_40 = arith.constant 1.000000e+00 : f32
    %74 = vector.broadcast %cst_40 : f32 to vector<8x96xf32>
    %75 = arith.addf %74, %73 : vector<8x96xf32>
    %76 = arith.divf %74, %75 : vector<8x96xf32>
    %77 = vector.extract_strided_slice %70 {offsets = [0, 96], sizes = [8, 32], strides = [1, 1]} : vector<8x128xf32> to vector<8x32xf32>
    %78 = math.tanh %77 : vector<8x32xf32>
    %79 = vector.extract_strided_slice %76 {offsets = [0, 0], sizes = [8, 32], strides = [1, 1]} : vector<8x96xf32> to vector<8x32xf32>
    %80 = vector.extract_strided_slice %76 {offsets = [0, 32], sizes = [8, 32], strides = [1, 1]} : vector<8x96xf32> to vector<8x32xf32>
    %81 = vector.extract_strided_slice %76 {offsets = [0, 64], sizes = [8, 32], strides = [1, 1]} : vector<8x96xf32> to vector<8x32xf32>
    %82 = arith.mulf %80, %42 : vector<8x32xf32>
    %83 = arith.mulf %79, %78 : vector<8x32xf32>
    %84 = arith.addf %82, %83 : vector<8x32xf32>
    %85 = math.tanh %84 : vector<8x32xf32>
    %86 = arith.mulf %81, %85 : vector<8x32xf32>
    %cst_41 = arith.constant dense<0.000000e+00> : vector<8x128xf32>
    %87 = tpu.matmul %86, %13, %cst_41 {dimension_numbers = #tpu.dot_dimension_numbers<[1], [0], [0], [1], [0, 0, 1, 1], [], []>} : vector<8x32xf32>, vector<32x128xf32>, vector<8x128xf32> -> vector<8x128xf32>
    %cst_42 = arith.constant dense<0.000000e+00> : vector<8x128xf32>
    %88 = tpu.matmul %65, %14, %cst_42 {dimension_numbers = #tpu.dot_dimension_numbers<[1], [0], [0], [1], [0, 0, 1, 1], [], []>} : vector<8x32xf32>, vector<32x128xf32>, vector<8x128xf32> -> vector<8x128xf32>
    %89 = arith.addf %87, %88 : vector<8x128xf32>
    %90 = vector.broadcast %15 : vector<1x128xf32> to vector<8x128xf32>
    %91 = arith.addf %89, %90 : vector<8x128xf32>
    %92 = vector.extract_strided_slice %91 {offsets = [0, 0], sizes = [8, 96], strides = [1, 1]} : vector<8x128xf32> to vector<8x96xf32>
    %93 = arith.negf %92 : vector<8x96xf32>
    %94 = math.exp %93 : vector<8x96xf32>
    %cst_43 = arith.constant 1.000000e+00 : f32
    %95 = vector.broadcast %cst_43 : f32 to vector<8x96xf32>
    %96 = arith.addf %95, %94 : vector<8x96xf32>
    %97 = arith.divf %95, %96 : vector<8x96xf32>
    %98 = vector.extract_strided_slice %91 {offsets = [0, 96], sizes = [8, 32], strides = [1, 1]} : vector<8x128xf32> to vector<8x32xf32>
    %99 = math.tanh %98 : vector<8x32xf32>
    %100 = vector.extract_strided_slice %97 {offsets = [0, 0], sizes = [8, 32], strides = [1, 1]} : vector<8x96xf32> to vector<8x32xf32>
    %101 = vector.extract_strided_slice %97 {offsets = [0, 32], sizes = [8, 32], strides = [1, 1]} : vector<8x96xf32> to vector<8x32xf32>
    %102 = vector.extract_strided_slice %97 {offsets = [0, 64], sizes = [8, 32], strides = [1, 1]} : vector<8x96xf32> to vector<8x32xf32>
    %103 = arith.mulf %101, %63 : vector<8x32xf32>
    %104 = arith.mulf %100, %99 : vector<8x32xf32>
    %105 = arith.addf %103, %104 : vector<8x32xf32>
    %106 = math.tanh %105 : vector<8x32xf32>
    %107 = arith.mulf %102, %106 : vector<8x32xf32>
    %c2_i32 = arith.constant 2 : i32
    %108 = arith.index_cast %c2_i32 : i32 to index
    %c0_44 = arith.constant 0 : index
    %c0_45 = arith.constant 0 : index
    %109 = vector.load %arg14[%108, %c0_44, %c0_45] : memref<8x8x128xf32, #tpu.memory_space<vmem>>, vector<1x8x128xf32>
    %110 = vector.shape_cast %109 : vector<1x8x128xf32> to vector<8x128xf32>
    %cst_46 = arith.constant dense<0.000000e+00> : vector<8x128xf32>
    %111 = tpu.matmul %86, %12, %cst_46 {dimension_numbers = #tpu.dot_dimension_numbers<[1], [0], [0], [1], [0, 0, 1, 1], [], []>} : vector<8x32xf32>, vector<32x128xf32>, vector<8x128xf32> -> vector<8x128xf32>
    %112 = arith.addf %110, %111 : vector<8x128xf32>
    %113 = vector.extract_strided_slice %112 {offsets = [0, 0], sizes = [8, 96], strides = [1, 1]} : vector<8x128xf32> to vector<8x96xf32>
    %114 = arith.negf %113 : vector<8x96xf32>
    %115 = math.exp %114 : vector<8x96xf32>
    %cst_47 = arith.constant 1.000000e+00 : f32
    %116 = vector.broadcast %cst_47 : f32 to vector<8x96xf32>
    %117 = arith.addf %116, %115 : vector<8x96xf32>
    %118 = arith.divf %116, %117 : vector<8x96xf32>
    %119 = vector.extract_strided_slice %112 {offsets = [0, 96], sizes = [8, 32], strides = [1, 1]} : vector<8x128xf32> to vector<8x32xf32>
    %120 = math.tanh %119 : vector<8x32xf32>
    %121 = vector.extract_strided_slice %118 {offsets = [0, 0], sizes = [8, 32], strides = [1, 1]} : vector<8x96xf32> to vector<8x32xf32>
    %122 = vector.extract_strided_slice %118 {offsets = [0, 32], sizes = [8, 32], strides = [1, 1]} : vector<8x96xf32> to vector<8x32xf32>
    %123 = vector.extract_strided_slice %118 {offsets = [0, 64], sizes = [8, 32], strides = [1, 1]} : vector<8x96xf32> to vector<8x32xf32>
    %124 = arith.mulf %122, %84 : vector<8x32xf32>
    %125 = arith.mulf %121, %120 : vector<8x32xf32>
    %126 = arith.addf %124, %125 : vector<8x32xf32>
    %127 = math.tanh %126 : vector<8x32xf32>
    %128 = arith.mulf %123, %127 : vector<8x32xf32>
    %cst_48 = arith.constant dense<0.000000e+00> : vector<8x128xf32>
    %129 = tpu.matmul %128, %13, %cst_48 {dimension_numbers = #tpu.dot_dimension_numbers<[1], [0], [0], [1], [0, 0, 1, 1], [], []>} : vector<8x32xf32>, vector<32x128xf32>, vector<8x128xf32> -> vector<8x128xf32>
    %cst_49 = arith.constant dense<0.000000e+00> : vector<8x128xf32>
    %130 = tpu.matmul %107, %14, %cst_49 {dimension_numbers = #tpu.dot_dimension_numbers<[1], [0], [0], [1], [0, 0, 1, 1], [], []>} : vector<8x32xf32>, vector<32x128xf32>, vector<8x128xf32> -> vector<8x128xf32>
    %131 = arith.addf %129, %130 : vector<8x128xf32>
    %132 = vector.broadcast %15 : vector<1x128xf32> to vector<8x128xf32>
    %133 = arith.addf %131, %132 : vector<8x128xf32>
    %134 = vector.extract_strided_slice %133 {offsets = [0, 0], sizes = [8, 96], strides = [1, 1]} : vector<8x128xf32> to vector<8x96xf32>
    %135 = arith.negf %134 : vector<8x96xf32>
    %136 = math.exp %135 : vector<8x96xf32>
    %cst_50 = arith.constant 1.000000e+00 : f32
    %137 = vector.broadcast %cst_50 : f32 to vector<8x96xf32>
    %138 = arith.addf %137, %136 : vector<8x96xf32>
    %139 = arith.divf %137, %138 : vector<8x96xf32>
    %140 = vector.extract_strided_slice %133 {offsets = [0, 96], sizes = [8, 32], strides = [1, 1]} : vector<8x128xf32> to vector<8x32xf32>
    %141 = math.tanh %140 : vector<8x32xf32>
    %142 = vector.extract_strided_slice %139 {offsets = [0, 0], sizes = [8, 32], strides = [1, 1]} : vector<8x96xf32> to vector<8x32xf32>
    %143 = vector.extract_strided_slice %139 {offsets = [0, 32], sizes = [8, 32], strides = [1, 1]} : vector<8x96xf32> to vector<8x32xf32>
    %144 = vector.extract_strided_slice %139 {offsets = [0, 64], sizes = [8, 32], strides = [1, 1]} : vector<8x96xf32> to vector<8x32xf32>
    %145 = arith.mulf %143, %105 : vector<8x32xf32>
    %146 = arith.mulf %142, %141 : vector<8x32xf32>
    %147 = arith.addf %145, %146 : vector<8x32xf32>
    %148 = math.tanh %147 : vector<8x32xf32>
    %149 = arith.mulf %144, %148 : vector<8x32xf32>
    %c3_i32 = arith.constant 3 : i32
    %150 = arith.index_cast %c3_i32 : i32 to index
    %c0_51 = arith.constant 0 : index
    %c0_52 = arith.constant 0 : index
    %151 = vector.load %arg14[%150, %c0_51, %c0_52] : memref<8x8x128xf32, #tpu.memory_space<vmem>>, vector<1x8x128xf32>
    %152 = vector.shape_cast %151 : vector<1x8x128xf32> to vector<8x128xf32>
    %cst_53 = arith.constant dense<0.000000e+00> : vector<8x128xf32>
    %153 = tpu.matmul %128, %12, %cst_53 {dimension_numbers = #tpu.dot_dimension_numbers<[1], [0], [0], [1], [0, 0, 1, 1], [], []>} : vector<8x32xf32>, vector<32x128xf32>, vector<8x128xf32> -> vector<8x128xf32>
    %154 = arith.addf %152, %153 : vector<8x128xf32>
    %155 = vector.extract_strided_slice %154 {offsets = [0, 0], sizes = [8, 96], strides = [1, 1]} : vector<8x128xf32> to vector<8x96xf32>
    %156 = arith.negf %155 : vector<8x96xf32>
    %157 = math.exp %156 : vector<8x96xf32>
    %cst_54 = arith.constant 1.000000e+00 : f32
    %158 = vector.broadcast %cst_54 : f32 to vector<8x96xf32>
    %159 = arith.addf %158, %157 : vector<8x96xf32>
    %160 = arith.divf %158, %159 : vector<8x96xf32>
    %161 = vector.extract_strided_slice %154 {offsets = [0, 96], sizes = [8, 32], strides = [1, 1]} : vector<8x128xf32> to vector<8x32xf32>
    %162 = math.tanh %161 : vector<8x32xf32>
    %163 = vector.extract_strided_slice %160 {offsets = [0, 0], sizes = [8, 32], strides = [1, 1]} : vector<8x96xf32> to vector<8x32xf32>
    %164 = vector.extract_strided_slice %160 {offsets = [0, 32], sizes = [8, 32], strides = [1, 1]} : vector<8x96xf32> to vector<8x32xf32>
    %165 = vector.extract_strided_slice %160 {offsets = [0, 64], sizes = [8, 32], strides = [1, 1]} : vector<8x96xf32> to vector<8x32xf32>
    %166 = arith.mulf %164, %126 : vector<8x32xf32>
    %167 = arith.mulf %163, %162 : vector<8x32xf32>
    %168 = arith.addf %166, %167 : vector<8x32xf32>
    %169 = math.tanh %168 : vector<8x32xf32>
    %170 = arith.mulf %165, %169 : vector<8x32xf32>
    %cst_55 = arith.constant dense<0.000000e+00> : vector<8x128xf32>
    %171 = tpu.matmul %170, %13, %cst_55 {dimension_numbers = #tpu.dot_dimension_numbers<[1], [0], [0], [1], [0, 0, 1, 1], [], []>} : vector<8x32xf32>, vector<32x128xf32>, vector<8x128xf32> -> vector<8x128xf32>
    %cst_56 = arith.constant dense<0.000000e+00> : vector<8x128xf32>
    %172 = tpu.matmul %149, %14, %cst_56 {dimension_numbers = #tpu.dot_dimension_numbers<[1], [0], [0], [1], [0, 0, 1, 1], [], []>} : vector<8x32xf32>, vector<32x128xf32>, vector<8x128xf32> -> vector<8x128xf32>
    %173 = arith.addf %171, %172 : vector<8x128xf32>
    %174 = vector.broadcast %15 : vector<1x128xf32> to vector<8x128xf32>
    %175 = arith.addf %173, %174 : vector<8x128xf32>
    %176 = vector.extract_strided_slice %175 {offsets = [0, 0], sizes = [8, 96], strides = [1, 1]} : vector<8x128xf32> to vector<8x96xf32>
    %177 = arith.negf %176 : vector<8x96xf32>
    %178 = math.exp %177 : vector<8x96xf32>
    %cst_57 = arith.constant 1.000000e+00 : f32
    %179 = vector.broadcast %cst_57 : f32 to vector<8x96xf32>
    %180 = arith.addf %179, %178 : vector<8x96xf32>
    %181 = arith.divf %179, %180 : vector<8x96xf32>
    %182 = vector.extract_strided_slice %175 {offsets = [0, 96], sizes = [8, 32], strides = [1, 1]} : vector<8x128xf32> to vector<8x32xf32>
    %183 = math.tanh %182 : vector<8x32xf32>
    %184 = vector.extract_strided_slice %181 {offsets = [0, 0], sizes = [8, 32], strides = [1, 1]} : vector<8x96xf32> to vector<8x32xf32>
    %185 = vector.extract_strided_slice %181 {offsets = [0, 32], sizes = [8, 32], strides = [1, 1]} : vector<8x96xf32> to vector<8x32xf32>
    %186 = vector.extract_strided_slice %181 {offsets = [0, 64], sizes = [8, 32], strides = [1, 1]} : vector<8x96xf32> to vector<8x32xf32>
    %187 = arith.mulf %185, %147 : vector<8x32xf32>
    %188 = arith.mulf %184, %183 : vector<8x32xf32>
    %189 = arith.addf %187, %188 : vector<8x32xf32>
    %190 = math.tanh %189 : vector<8x32xf32>
    %191 = arith.mulf %186, %190 : vector<8x32xf32>
    %c4_i32 = arith.constant 4 : i32
    %192 = arith.index_cast %c4_i32 : i32 to index
    %c0_58 = arith.constant 0 : index
    %c0_59 = arith.constant 0 : index
    %193 = vector.load %arg14[%192, %c0_58, %c0_59] : memref<8x8x128xf32, #tpu.memory_space<vmem>>, vector<1x8x128xf32>
    %194 = vector.shape_cast %193 : vector<1x8x128xf32> to vector<8x128xf32>
    %cst_60 = arith.constant dense<0.000000e+00> : vector<8x128xf32>
    %195 = tpu.matmul %170, %12, %cst_60 {dimension_numbers = #tpu.dot_dimension_numbers<[1], [0], [0], [1], [0, 0, 1, 1], [], []>} : vector<8x32xf32>, vector<32x128xf32>, vector<8x128xf32> -> vector<8x128xf32>
    %196 = arith.addf %194, %195 : vector<8x128xf32>
    %197 = vector.extract_strided_slice %196 {offsets = [0, 0], sizes = [8, 96], strides = [1, 1]} : vector<8x128xf32> to vector<8x96xf32>
    %198 = arith.negf %197 : vector<8x96xf32>
    %199 = math.exp %198 : vector<8x96xf32>
    %cst_61 = arith.constant 1.000000e+00 : f32
    %200 = vector.broadcast %cst_61 : f32 to vector<8x96xf32>
    %201 = arith.addf %200, %199 : vector<8x96xf32>
    %202 = arith.divf %200, %201 : vector<8x96xf32>
    %203 = vector.extract_strided_slice %196 {offsets = [0, 96], sizes = [8, 32], strides = [1, 1]} : vector<8x128xf32> to vector<8x32xf32>
    %204 = math.tanh %203 : vector<8x32xf32>
    %205 = vector.extract_strided_slice %202 {offsets = [0, 0], sizes = [8, 32], strides = [1, 1]} : vector<8x96xf32> to vector<8x32xf32>
    %206 = vector.extract_strided_slice %202 {offsets = [0, 32], sizes = [8, 32], strides = [1, 1]} : vector<8x96xf32> to vector<8x32xf32>
    %207 = vector.extract_strided_slice %202 {offsets = [0, 64], sizes = [8, 32], strides = [1, 1]} : vector<8x96xf32> to vector<8x32xf32>
    %208 = arith.mulf %206, %168 : vector<8x32xf32>
    %209 = arith.mulf %205, %204 : vector<8x32xf32>
    %210 = arith.addf %208, %209 : vector<8x32xf32>
    %211 = math.tanh %210 : vector<8x32xf32>
    %212 = arith.mulf %207, %211 : vector<8x32xf32>
    %cst_62 = arith.constant dense<0.000000e+00> : vector<8x128xf32>
    %213 = tpu.matmul %212, %13, %cst_62 {dimension_numbers = #tpu.dot_dimension_numbers<[1], [0], [0], [1], [0, 0, 1, 1], [], []>} : vector<8x32xf32>, vector<32x128xf32>, vector<8x128xf32> -> vector<8x128xf32>
    %cst_63 = arith.constant dense<0.000000e+00> : vector<8x128xf32>
    %214 = tpu.matmul %191, %14, %cst_63 {dimension_numbers = #tpu.dot_dimension_numbers<[1], [0], [0], [1], [0, 0, 1, 1], [], []>} : vector<8x32xf32>, vector<32x128xf32>, vector<8x128xf32> -> vector<8x128xf32>
    %215 = arith.addf %213, %214 : vector<8x128xf32>
    %216 = vector.broadcast %15 : vector<1x128xf32> to vector<8x128xf32>
    %217 = arith.addf %215, %216 : vector<8x128xf32>
    %218 = vector.extract_strided_slice %217 {offsets = [0, 0], sizes = [8, 96], strides = [1, 1]} : vector<8x128xf32> to vector<8x96xf32>
    %219 = arith.negf %218 : vector<8x96xf32>
    %220 = math.exp %219 : vector<8x96xf32>
    %cst_64 = arith.constant 1.000000e+00 : f32
    %221 = vector.broadcast %cst_64 : f32 to vector<8x96xf32>
    %222 = arith.addf %221, %220 : vector<8x96xf32>
    %223 = arith.divf %221, %222 : vector<8x96xf32>
    %224 = vector.extract_strided_slice %217 {offsets = [0, 96], sizes = [8, 32], strides = [1, 1]} : vector<8x128xf32> to vector<8x32xf32>
    %225 = math.tanh %224 : vector<8x32xf32>
    %226 = vector.extract_strided_slice %223 {offsets = [0, 0], sizes = [8, 32], strides = [1, 1]} : vector<8x96xf32> to vector<8x32xf32>
    %227 = vector.extract_strided_slice %223 {offsets = [0, 32], sizes = [8, 32], strides = [1, 1]} : vector<8x96xf32> to vector<8x32xf32>
    %228 = vector.extract_strided_slice %223 {offsets = [0, 64], sizes = [8, 32], strides = [1, 1]} : vector<8x96xf32> to vector<8x32xf32>
    %229 = arith.mulf %227, %189 : vector<8x32xf32>
    %230 = arith.mulf %226, %225 : vector<8x32xf32>
    %231 = arith.addf %229, %230 : vector<8x32xf32>
    %232 = math.tanh %231 : vector<8x32xf32>
    %233 = arith.mulf %228, %232 : vector<8x32xf32>
    %c5_i32 = arith.constant 5 : i32
    %234 = arith.index_cast %c5_i32 : i32 to index
    %c0_65 = arith.constant 0 : index
    %c0_66 = arith.constant 0 : index
    %235 = vector.load %arg14[%234, %c0_65, %c0_66] : memref<8x8x128xf32, #tpu.memory_space<vmem>>, vector<1x8x128xf32>
    %236 = vector.shape_cast %235 : vector<1x8x128xf32> to vector<8x128xf32>
    %cst_67 = arith.constant dense<0.000000e+00> : vector<8x128xf32>
    %237 = tpu.matmul %212, %12, %cst_67 {dimension_numbers = #tpu.dot_dimension_numbers<[1], [0], [0], [1], [0, 0, 1, 1], [], []>} : vector<8x32xf32>, vector<32x128xf32>, vector<8x128xf32> -> vector<8x128xf32>
    %238 = arith.addf %236, %237 : vector<8x128xf32>
    %239 = vector.extract_strided_slice %238 {offsets = [0, 0], sizes = [8, 96], strides = [1, 1]} : vector<8x128xf32> to vector<8x96xf32>
    %240 = arith.negf %239 : vector<8x96xf32>
    %241 = math.exp %240 : vector<8x96xf32>
    %cst_68 = arith.constant 1.000000e+00 : f32
    %242 = vector.broadcast %cst_68 : f32 to vector<8x96xf32>
    %243 = arith.addf %242, %241 : vector<8x96xf32>
    %244 = arith.divf %242, %243 : vector<8x96xf32>
    %245 = vector.extract_strided_slice %238 {offsets = [0, 96], sizes = [8, 32], strides = [1, 1]} : vector<8x128xf32> to vector<8x32xf32>
    %246 = math.tanh %245 : vector<8x32xf32>
    %247 = vector.extract_strided_slice %244 {offsets = [0, 0], sizes = [8, 32], strides = [1, 1]} : vector<8x96xf32> to vector<8x32xf32>
    %248 = vector.extract_strided_slice %244 {offsets = [0, 32], sizes = [8, 32], strides = [1, 1]} : vector<8x96xf32> to vector<8x32xf32>
    %249 = vector.extract_strided_slice %244 {offsets = [0, 64], sizes = [8, 32], strides = [1, 1]} : vector<8x96xf32> to vector<8x32xf32>
    %250 = arith.mulf %248, %210 : vector<8x32xf32>
    %251 = arith.mulf %247, %246 : vector<8x32xf32>
    %252 = arith.addf %250, %251 : vector<8x32xf32>
    %253 = math.tanh %252 : vector<8x32xf32>
    %254 = arith.mulf %249, %253 : vector<8x32xf32>
    %cst_69 = arith.constant dense<0.000000e+00> : vector<8x128xf32>
    %255 = tpu.matmul %254, %13, %cst_69 {dimension_numbers = #tpu.dot_dimension_numbers<[1], [0], [0], [1], [0, 0, 1, 1], [], []>} : vector<8x32xf32>, vector<32x128xf32>, vector<8x128xf32> -> vector<8x128xf32>
    %cst_70 = arith.constant dense<0.000000e+00> : vector<8x128xf32>
    %256 = tpu.matmul %233, %14, %cst_70 {dimension_numbers = #tpu.dot_dimension_numbers<[1], [0], [0], [1], [0, 0, 1, 1], [], []>} : vector<8x32xf32>, vector<32x128xf32>, vector<8x128xf32> -> vector<8x128xf32>
    %257 = arith.addf %255, %256 : vector<8x128xf32>
    %258 = vector.broadcast %15 : vector<1x128xf32> to vector<8x128xf32>
    %259 = arith.addf %257, %258 : vector<8x128xf32>
    %260 = vector.extract_strided_slice %259 {offsets = [0, 0], sizes = [8, 96], strides = [1, 1]} : vector<8x128xf32> to vector<8x96xf32>
    %261 = arith.negf %260 : vector<8x96xf32>
    %262 = math.exp %261 : vector<8x96xf32>
    %cst_71 = arith.constant 1.000000e+00 : f32
    %263 = vector.broadcast %cst_71 : f32 to vector<8x96xf32>
    %264 = arith.addf %263, %262 : vector<8x96xf32>
    %265 = arith.divf %263, %264 : vector<8x96xf32>
    %266 = vector.extract_strided_slice %259 {offsets = [0, 96], sizes = [8, 32], strides = [1, 1]} : vector<8x128xf32> to vector<8x32xf32>
    %267 = math.tanh %266 : vector<8x32xf32>
    %268 = vector.extract_strided_slice %265 {offsets = [0, 0], sizes = [8, 32], strides = [1, 1]} : vector<8x96xf32> to vector<8x32xf32>
    %269 = vector.extract_strided_slice %265 {offsets = [0, 32], sizes = [8, 32], strides = [1, 1]} : vector<8x96xf32> to vector<8x32xf32>
    %270 = vector.extract_strided_slice %265 {offsets = [0, 64], sizes = [8, 32], strides = [1, 1]} : vector<8x96xf32> to vector<8x32xf32>
    %271 = arith.mulf %269, %231 : vector<8x32xf32>
    %272 = arith.mulf %268, %267 : vector<8x32xf32>
    %273 = arith.addf %271, %272 : vector<8x32xf32>
    %274 = math.tanh %273 : vector<8x32xf32>
    %275 = arith.mulf %270, %274 : vector<8x32xf32>
    %c6_i32 = arith.constant 6 : i32
    %276 = arith.index_cast %c6_i32 : i32 to index
    %c0_72 = arith.constant 0 : index
    %c0_73 = arith.constant 0 : index
    %277 = vector.load %arg14[%276, %c0_72, %c0_73] : memref<8x8x128xf32, #tpu.memory_space<vmem>>, vector<1x8x128xf32>
    %278 = vector.shape_cast %277 : vector<1x8x128xf32> to vector<8x128xf32>
    %cst_74 = arith.constant dense<0.000000e+00> : vector<8x128xf32>
    %279 = tpu.matmul %254, %12, %cst_74 {dimension_numbers = #tpu.dot_dimension_numbers<[1], [0], [0], [1], [0, 0, 1, 1], [], []>} : vector<8x32xf32>, vector<32x128xf32>, vector<8x128xf32> -> vector<8x128xf32>
    %280 = arith.addf %278, %279 : vector<8x128xf32>
    %281 = vector.extract_strided_slice %280 {offsets = [0, 0], sizes = [8, 96], strides = [1, 1]} : vector<8x128xf32> to vector<8x96xf32>
    %282 = arith.negf %281 : vector<8x96xf32>
    %283 = math.exp %282 : vector<8x96xf32>
    %cst_75 = arith.constant 1.000000e+00 : f32
    %284 = vector.broadcast %cst_75 : f32 to vector<8x96xf32>
    %285 = arith.addf %284, %283 : vector<8x96xf32>
    %286 = arith.divf %284, %285 : vector<8x96xf32>
    %287 = vector.extract_strided_slice %280 {offsets = [0, 96], sizes = [8, 32], strides = [1, 1]} : vector<8x128xf32> to vector<8x32xf32>
    %288 = math.tanh %287 : vector<8x32xf32>
    %289 = vector.extract_strided_slice %286 {offsets = [0, 0], sizes = [8, 32], strides = [1, 1]} : vector<8x96xf32> to vector<8x32xf32>
    %290 = vector.extract_strided_slice %286 {offsets = [0, 32], sizes = [8, 32], strides = [1, 1]} : vector<8x96xf32> to vector<8x32xf32>
    %291 = vector.extract_strided_slice %286 {offsets = [0, 64], sizes = [8, 32], strides = [1, 1]} : vector<8x96xf32> to vector<8x32xf32>
    %292 = arith.mulf %290, %252 : vector<8x32xf32>
    %293 = arith.mulf %289, %288 : vector<8x32xf32>
    %294 = arith.addf %292, %293 : vector<8x32xf32>
    %295 = math.tanh %294 : vector<8x32xf32>
    %296 = arith.mulf %291, %295 : vector<8x32xf32>
    %cst_76 = arith.constant dense<0.000000e+00> : vector<8x128xf32>
    %297 = tpu.matmul %296, %13, %cst_76 {dimension_numbers = #tpu.dot_dimension_numbers<[1], [0], [0], [1], [0, 0, 1, 1], [], []>} : vector<8x32xf32>, vector<32x128xf32>, vector<8x128xf32> -> vector<8x128xf32>
    %cst_77 = arith.constant dense<0.000000e+00> : vector<8x128xf32>
    %298 = tpu.matmul %275, %14, %cst_77 {dimension_numbers = #tpu.dot_dimension_numbers<[1], [0], [0], [1], [0, 0, 1, 1], [], []>} : vector<8x32xf32>, vector<32x128xf32>, vector<8x128xf32> -> vector<8x128xf32>
    %299 = arith.addf %297, %298 : vector<8x128xf32>
    %300 = vector.broadcast %15 : vector<1x128xf32> to vector<8x128xf32>
    %301 = arith.addf %299, %300 : vector<8x128xf32>
    %302 = vector.extract_strided_slice %301 {offsets = [0, 0], sizes = [8, 96], strides = [1, 1]} : vector<8x128xf32> to vector<8x96xf32>
    %303 = arith.negf %302 : vector<8x96xf32>
    %304 = math.exp %303 : vector<8x96xf32>
    %cst_78 = arith.constant 1.000000e+00 : f32
    %305 = vector.broadcast %cst_78 : f32 to vector<8x96xf32>
    %306 = arith.addf %305, %304 : vector<8x96xf32>
    %307 = arith.divf %305, %306 : vector<8x96xf32>
    %308 = vector.extract_strided_slice %301 {offsets = [0, 96], sizes = [8, 32], strides = [1, 1]} : vector<8x128xf32> to vector<8x32xf32>
    %309 = math.tanh %308 : vector<8x32xf32>
    %310 = vector.extract_strided_slice %307 {offsets = [0, 0], sizes = [8, 32], strides = [1, 1]} : vector<8x96xf32> to vector<8x32xf32>
    %311 = vector.extract_strided_slice %307 {offsets = [0, 32], sizes = [8, 32], strides = [1, 1]} : vector<8x96xf32> to vector<8x32xf32>
    %312 = vector.extract_strided_slice %307 {offsets = [0, 64], sizes = [8, 32], strides = [1, 1]} : vector<8x96xf32> to vector<8x32xf32>
    %313 = arith.mulf %311, %273 : vector<8x32xf32>
    %314 = arith.mulf %310, %309 : vector<8x32xf32>
    %315 = arith.addf %313, %314 : vector<8x32xf32>
    %316 = math.tanh %315 : vector<8x32xf32>
    %317 = arith.mulf %312, %316 : vector<8x32xf32>
    %c7_i32 = arith.constant 7 : i32
    %318 = arith.index_cast %c7_i32 : i32 to index
    %c0_79 = arith.constant 0 : index
    %c0_80 = arith.constant 0 : index
    %319 = vector.load %arg14[%318, %c0_79, %c0_80] : memref<8x8x128xf32, #tpu.memory_space<vmem>>, vector<1x8x128xf32>
    %320 = vector.shape_cast %319 : vector<1x8x128xf32> to vector<8x128xf32>
    %cst_81 = arith.constant dense<0.000000e+00> : vector<8x128xf32>
    %321 = tpu.matmul %296, %12, %cst_81 {dimension_numbers = #tpu.dot_dimension_numbers<[1], [0], [0], [1], [0, 0, 1, 1], [], []>} : vector<8x32xf32>, vector<32x128xf32>, vector<8x128xf32> -> vector<8x128xf32>
    %322 = arith.addf %320, %321 : vector<8x128xf32>
    %323 = vector.extract_strided_slice %322 {offsets = [0, 0], sizes = [8, 96], strides = [1, 1]} : vector<8x128xf32> to vector<8x96xf32>
    %324 = arith.negf %323 : vector<8x96xf32>
    %325 = math.exp %324 : vector<8x96xf32>
    %cst_82 = arith.constant 1.000000e+00 : f32
    %326 = vector.broadcast %cst_82 : f32 to vector<8x96xf32>
    %327 = arith.addf %326, %325 : vector<8x96xf32>
    %328 = arith.divf %326, %327 : vector<8x96xf32>
    %329 = vector.extract_strided_slice %322 {offsets = [0, 96], sizes = [8, 32], strides = [1, 1]} : vector<8x128xf32> to vector<8x32xf32>
    %330 = math.tanh %329 : vector<8x32xf32>
    %331 = vector.extract_strided_slice %328 {offsets = [0, 0], sizes = [8, 32], strides = [1, 1]} : vector<8x96xf32> to vector<8x32xf32>
    %332 = vector.extract_strided_slice %328 {offsets = [0, 32], sizes = [8, 32], strides = [1, 1]} : vector<8x96xf32> to vector<8x32xf32>
    %333 = vector.extract_strided_slice %328 {offsets = [0, 64], sizes = [8, 32], strides = [1, 1]} : vector<8x96xf32> to vector<8x32xf32>
    %334 = arith.mulf %332, %294 : vector<8x32xf32>
    %335 = arith.mulf %331, %330 : vector<8x32xf32>
    %336 = arith.addf %334, %335 : vector<8x32xf32>
    %337 = math.tanh %336 : vector<8x32xf32>
    %338 = arith.mulf %333, %337 : vector<8x32xf32>
    %cst_83 = arith.constant dense<0.000000e+00> : vector<8x128xf32>
    %339 = tpu.matmul %338, %13, %cst_83 {dimension_numbers = #tpu.dot_dimension_numbers<[1], [0], [0], [1], [0, 0, 1, 1], [], []>} : vector<8x32xf32>, vector<32x128xf32>, vector<8x128xf32> -> vector<8x128xf32>
    %cst_84 = arith.constant dense<0.000000e+00> : vector<8x128xf32>
    %340 = tpu.matmul %317, %14, %cst_84 {dimension_numbers = #tpu.dot_dimension_numbers<[1], [0], [0], [1], [0, 0, 1, 1], [], []>} : vector<8x32xf32>, vector<32x128xf32>, vector<8x128xf32> -> vector<8x128xf32>
    %341 = arith.addf %339, %340 : vector<8x128xf32>
    %342 = vector.broadcast %15 : vector<1x128xf32> to vector<8x128xf32>
    %343 = arith.addf %341, %342 : vector<8x128xf32>
    %344 = vector.extract_strided_slice %343 {offsets = [0, 0], sizes = [8, 96], strides = [1, 1]} : vector<8x128xf32> to vector<8x96xf32>
    %345 = arith.negf %344 : vector<8x96xf32>
    %346 = math.exp %345 : vector<8x96xf32>
    %cst_85 = arith.constant 1.000000e+00 : f32
    %347 = vector.broadcast %cst_85 : f32 to vector<8x96xf32>
    %348 = arith.addf %347, %346 : vector<8x96xf32>
    %349 = arith.divf %347, %348 : vector<8x96xf32>
    %350 = vector.extract_strided_slice %343 {offsets = [0, 96], sizes = [8, 32], strides = [1, 1]} : vector<8x128xf32> to vector<8x32xf32>
    %351 = math.tanh %350 : vector<8x32xf32>
    %352 = vector.extract_strided_slice %349 {offsets = [0, 0], sizes = [8, 32], strides = [1, 1]} : vector<8x96xf32> to vector<8x32xf32>
    %353 = vector.extract_strided_slice %349 {offsets = [0, 32], sizes = [8, 32], strides = [1, 1]} : vector<8x96xf32> to vector<8x32xf32>
    %354 = vector.extract_strided_slice %349 {offsets = [0, 64], sizes = [8, 32], strides = [1, 1]} : vector<8x96xf32> to vector<8x32xf32>
    %355 = arith.mulf %353, %315 : vector<8x32xf32>
    %356 = arith.mulf %352, %351 : vector<8x32xf32>
    %357 = arith.addf %355, %356 : vector<8x32xf32>
    %358 = math.tanh %357 : vector<8x32xf32>
    %359 = arith.mulf %354, %358 : vector<8x32xf32>
    %c8_i32 = arith.constant 8 : i32
    %c0_86 = arith.constant 0 : index
    %c0_87 = arith.constant 0 : index
    %c0_88 = arith.constant 0 : index
    %360 = vector.load %arg12[%c0_86, %c0_87, %c0_88] : memref<2x8x32xf32, #tpu.memory_space<vmem>>, vector<1x8x32xf32>
    %361 = vector.shape_cast %360 : vector<1x8x32xf32> to vector<8x32xf32>
    %362 = vector.shape_cast %338 : vector<8x32xf32> to vector<1x8x32xf32>
    tpu.vector_store %arg12[%c0_86, %c0_87, %c0_88], %362 {strides = array<i32>} : memref<2x8x32xf32, #tpu.memory_space<vmem>>, vector<1x8x32xf32>,
    %c0_89 = arith.constant 0 : index
    %c0_90 = arith.constant 0 : index
    %c0_91 = arith.constant 0 : index
    %363 = vector.load %arg13[%c0_89, %c0_90, %c0_91] : memref<2x8x32xf32, #tpu.memory_space<vmem>>, vector<1x8x32xf32>
    %364 = vector.shape_cast %363 : vector<1x8x32xf32> to vector<8x32xf32>
    %365 = vector.shape_cast %336 : vector<8x32xf32> to vector<1x8x32xf32>
    tpu.vector_store %arg13[%c0_89, %c0_90, %c0_91], %365 {strides = array<i32>} : memref<2x8x32xf32, #tpu.memory_space<vmem>>, vector<1x8x32xf32>,
    %c1_92 = arith.constant 1 : index
    %c0_93 = arith.constant 0 : index
    %c0_94 = arith.constant 0 : index
    %366 = vector.load %arg12[%c1_92, %c0_93, %c0_94] : memref<2x8x32xf32, #tpu.memory_space<vmem>>, vector<1x8x32xf32>
    %367 = vector.shape_cast %366 : vector<1x8x32xf32> to vector<8x32xf32>
    %368 = vector.shape_cast %359 : vector<8x32xf32> to vector<1x8x32xf32>
    tpu.vector_store %arg12[%c1_92, %c0_93, %c0_94], %368 {strides = array<i32>} : memref<2x8x32xf32, #tpu.memory_space<vmem>>, vector<1x8x32xf32>,
    %c1_95 = arith.constant 1 : index
    %c0_96 = arith.constant 0 : index
    %c0_97 = arith.constant 0 : index
    %369 = vector.load %arg13[%c1_95, %c0_96, %c0_97] : memref<2x8x32xf32, #tpu.memory_space<vmem>>, vector<1x8x32xf32>
    %370 = vector.shape_cast %369 : vector<1x8x32xf32> to vector<8x32xf32>
    %371 = vector.shape_cast %357 : vector<8x32xf32> to vector<1x8x32xf32>
    tpu.vector_store %arg13[%c1_95, %c0_96, %c0_97], %371 {strides = array<i32>} : memref<2x8x32xf32, #tpu.memory_space<vmem>>, vector<1x8x32xf32>,
    %c0_i32_98 = arith.constant 0 : i32
    %372 = arith.cmpi eq, %arg1, %c0_i32_98 : i32
    %373 = arith.extui %372 : i1 to i32
    %c0_i32_99 = arith.constant 0 : i32
    %374 = arith.cmpi ne, %373, %c0_i32_99 : i32
    scf.if %374 {
      %c0_100 = arith.constant 0 : index
      %c0_101 = arith.constant 0 : index
      %375 = vector.load %arg9[%c0_100, %c0_101] : memref<32x128xf32, #tpu.memory_space<vmem>>, vector<32x128xf32>
      %cst_102 = arith.constant dense<0.000000e+00> : vector<8x128xf32>
      %376 = tpu.matmul %359, %375, %cst_102 {dimension_numbers = #tpu.dot_dimension_numbers<[1], [0], [0], [1], [0, 0, 1, 1], [], []>} : vector<8x32xf32>, vector<32x128xf32>, vector<8x128xf32> -> vector<8x128xf32>
      %c0_103 = arith.constant 0 : index
      %c0_104 = arith.constant 0 : index
      %377 = vector.load %arg10[%c0_103, %c0_104] : memref<1x128xf32, #tpu.memory_space<vmem>>, vector<1x128xf32>
      %378 = vector.broadcast %377 : vector<1x128xf32> to vector<8x128xf32>
      %379 = arith.addf %376, %378 : vector<8x128xf32>
      %c0_105 = arith.constant 0 : index
      %c0_106 = arith.constant 0 : index
      %380 = vector.load %arg11[%c0_105, %c0_106] : memref<8x128xf32, #tpu.memory_space<vmem>>, vector<8x128xf32>
      tpu.vector_store %arg11[%c0_105, %c0_106], %379 {strides = array<i32>} : memref<8x128xf32, #tpu.memory_space<vmem>>, vector<8x128xf32>,
    } else {
    }
    return
  }
  func.func @transform_0(%arg0: i32, %arg1: i32) -> (i32, i32, i32) {
    %c0_i32 = arith.constant 0 : i32
    %c0_i32_0 = arith.constant 0 : i32
    return %arg1, %arg0, %c0_i32 : i32, i32, i32
  }
  func.func @transform_1(%arg0: i32, %arg1: i32) -> (i32, i32) {
    %c0_i32 = arith.constant 0 : i32
    %c0_i32_0 = arith.constant 0 : i32
    %c0_i32_1 = arith.constant 0 : i32
    return %c0_i32, %c0_i32_0 : i32, i32
  }
  func.func @transform_2(%arg0: i32, %arg1: i32) -> (i32, i32) {
    %c0_i32 = arith.constant 0 : i32
    %c0_i32_0 = arith.constant 0 : i32
    %c0_i32_1 = arith.constant 0 : i32
    return %c0_i32, %c0_i32_0 : i32, i32
  }
  func.func @transform_3(%arg0: i32, %arg1: i32) -> (i32, i32) {
    %c0_i32 = arith.constant 0 : i32
    %c0_i32_0 = arith.constant 0 : i32
    %c0_i32_1 = arith.constant 0 : i32
    return %c0_i32, %c0_i32_0 : i32, i32
  }
  func.func @transform_4(%arg0: i32, %arg1: i32) -> (i32, i32) {
    %c0_i32 = arith.constant 0 : i32
    %c0_i32_0 = arith.constant 0 : i32
    %c0_i32_1 = arith.constant 0 : i32
    return %c0_i32, %c0_i32_0 : i32, i32
  }
  func.func @transform_5(%arg0: i32, %arg1: i32) -> (i32, i32) {
    %c0_i32 = arith.constant 0 : i32
    %c0_i32_0 = arith.constant 0 : i32
    %c0_i32_1 = arith.constant 0 : i32
    return %c0_i32, %c0_i32_0 : i32, i32
  }
  func.func @transform_6(%arg0: i32, %arg1: i32) -> (i32, i32) {
    %c0_i32 = arith.constant 0 : i32
    %c0_i32_0 = arith.constant 0 : i32
    %c0_i32_1 = arith.constant 0 : i32
    return %c0_i32, %c0_i32_0 : i32, i32
  }
  func.func @transform_7(%arg0: i32, %arg1: i32) -> (i32, i32) {
    %c0_i32 = arith.constant 0 : i32
    %c0_i32_0 = arith.constant 0 : i32
    %c0_i32_1 = arith.constant 0 : i32
    return %c0_i32, %c0_i32_0 : i32, i32
  }
  func.func @transform_8(%arg0: i32, %arg1: i32) -> (i32, i32) {
    %c0_i32 = arith.constant 0 : i32
    %c0_i32_0 = arith.constant 0 : i32
    %c0_i32_1 = arith.constant 0 : i32
    return %c0_i32, %c0_i32_0 : i32, i32
  }
  func.func @transform_9(%arg0: i32, %arg1: i32) -> (i32, i32) {
    %c0_i32 = arith.constant 0 : i32
    %c0_i32_0 = arith.constant 0 : i32
    return %arg0, %c0_i32 : i32, i32
  }
}

module attributes {stable_mosaic.version = 11 : i64} {
  func.func @kernel(%arg0: i32, %arg1: i32, %arg2: memref<8x8x16xf32, #tpu.memory_space<vmem>>, %arg3: memref<16x128xf32, #tpu.memory_space<vmem>>, %arg4: memref<1x128xf32, #tpu.memory_space<vmem>>, %arg5: memref<32x128xf32, #tpu.memory_space<vmem>>, %arg6: memref<32x128xf32, #tpu.memory_space<vmem>>, %arg7: memref<32x128xf32, #tpu.memory_space<vmem>>, %arg8: memref<1x128xf32, #tpu.memory_space<vmem>>, %arg9: memref<32x128xf32, #tpu.memory_space<vmem>>, %arg10: memref<1x128xf32, #tpu.memory_space<vmem>>, %arg11: memref<8x128xf32, #tpu.memory_space<vmem>>, %arg12: memref<2x8x32xf32, #tpu.memory_space<vmem>>, %arg13: memref<2x8x32xf32, #tpu.memory_space<vmem>>, %arg14: memref<8x8x128xf32, #tpu.memory_space<vmem>>) attributes {dimension_semantics = [#tpu.dimension_semantics<parallel>, #tpu.dimension_semantics<arbitrary>], iteration_bounds = array<i64: 1, 1>, scalar_prefetch = 0 : i64, scratch_operands = 3 : i64, tpu.core_type = #tpu.core_type<tc>, window_params = [{transform_indices = @transform_0, window_bounds = array<i64: 8, 8, 16>}, {pipeline_mode = #tpu.pipeline_mode<synchronous>, transform_indices = @transform_1, window_bounds = array<i64: 16, 128>}, {pipeline_mode = #tpu.pipeline_mode<synchronous>, transform_indices = @transform_2, window_bounds = array<i64: 1, 128>}, {pipeline_mode = #tpu.pipeline_mode<synchronous>, transform_indices = @transform_3, window_bounds = array<i64: 32, 128>}, {pipeline_mode = #tpu.pipeline_mode<synchronous>, transform_indices = @transform_4, window_bounds = array<i64: 32, 128>}, {pipeline_mode = #tpu.pipeline_mode<synchronous>, transform_indices = @transform_5, window_bounds = array<i64: 32, 128>}, {pipeline_mode = #tpu.pipeline_mode<synchronous>, transform_indices = @transform_6, window_bounds = array<i64: 1, 128>}, {pipeline_mode = #tpu.pipeline_mode<synchronous>, transform_indices = @transform_7, window_bounds = array<i64: 32, 128>}, {pipeline_mode = #tpu.pipeline_mode<synchronous>, transform_indices = @transform_8, window_bounds = array<i64: 1, 128>}, {transform_indices = @transform_9, window_bounds = array<i64: 8, 128>}]} {
    %c0_i32 = arith.constant 0 : i32
    %0 = arith.cmpi eq, %arg1, %c0_i32 : i32
    %1 = arith.extui %0 : i1 to i32
    %c0_i32_0 = arith.constant 0 : i32
    %2 = arith.cmpi ne, %1, %c0_i32_0 : i32
    scf.if %2 {
      %cst_100 = arith.constant 0.000000e+00 : f32
      %375 = vector.broadcast %cst_100 : f32 to vector<2x8x32xf32>
      %c0_101 = arith.constant 0 : index
      %c0_102 = arith.constant 0 : index
      %c0_103 = arith.constant 0 : index
      %376 = vector.load %arg12[%c0_101, %c0_102, %c0_103] : memref<2x8x32xf32, #tpu.memory_space<vmem>>, vector<2x8x32xf32>
      tpu.vector_store %arg12[%c0_101, %c0_102, %c0_103], %375 {strides = array<i32>} : memref<2x8x32xf32, #tpu.memory_space<vmem>>, vector<2x8x32xf32>,
      %cst_104 = arith.constant 0.000000e+00 : f32
      %377 = vector.broadcast %cst_104 : f32 to vector<2x8x32xf32>
      %c0_105 = arith.constant 0 : index
      %c0_106 = arith.constant 0 : index
      %c0_107 = arith.constant 0 : index
      %378 = vector.load %arg13[%c0_105, %c0_106, %c0_107] : memref<2x8x32xf32, #tpu.memory_space<vmem>>, vector<2x8x32xf32>
      tpu.vector_store %arg13[%c0_105, %c0_106, %c0_107], %377 {strides = array<i32>} : memref<2x8x32xf32, #tpu.memory_space<vmem>>, vector<2x8x32xf32>,
    } else {
    }
    %c0 = arith.constant 0 : index
    %c0_1 = arith.constant 0 : index
    %c0_2 = arith.constant 0 : index
    %3 = vector.load %arg2[%c0, %c0_1, %c0_2] : memref<8x8x16xf32, #tpu.memory_space<vmem>>, vector<8x8x16xf32>
    %4 = vector.shape_cast %3 : vector<8x8x16xf32> to vector<64x16xf32>
    %c0_3 = arith.constant 0 : index
    %c0_4 = arith.constant 0 : index
    %5 = vector.load %arg3[%c0_3, %c0_4] : memref<16x128xf32, #tpu.memory_space<vmem>>, vector<16x128xf32>
    %cst = arith.constant dense<0.000000e+00> : vector<64x128xf32>
    %6 = tpu.matmul %4, %5, %cst {dimension_numbers = #tpu.dot_dimension_numbers<[1], [0], [0], [1], [0, 0, 1, 1], [], []>} : vector<64x16xf32>, vector<16x128xf32>, vector<64x128xf32> -> vector<64x128xf32>
    %c0_5 = arith.constant 0 : index
    %c0_6 = arith.constant 0 : index
    %7 = vector.load %arg4[%c0_5, %c0_6] : memref<1x128xf32, #tpu.memory_space<vmem>>, vector<1x128xf32>
    %8 = vector.broadcast %7 : vector<1x128xf32> to vector<64x128xf32>
    %9 = arith.addf %6, %8 : vector<64x128xf32>
    %10 = vector.shape_cast %9 : vector<64x128xf32> to vector<8x8x128xf32>
    %c0_7 = arith.constant 0 : index
    %c0_8 = arith.constant 0 : index
    %c0_9 = arith.constant 0 : index
    %11 = vector.load %arg14[%c0_7, %c0_8, %c0_9] : memref<8x8x128xf32, #tpu.memory_space<vmem>>, vector<8x8x128xf32>
    tpu.vector_store %arg14[%c0_7, %c0_8, %c0_9], %10 {strides = array<i32>} : memref<8x8x128xf32, #tpu.memory_space<vmem>>, vector<8x8x128xf32>,
    %c0_10 = arith.constant 0 : index
    %c0_11 = arith.constant 0 : index
    %12 = vector.load %arg5[%c0_10, %c0_11] : memref<32x128xf32, #tpu.memory_space<vmem>>, vector<32x128xf32>
    %c0_12 = arith.constant 0 : index
    %c0_13 = arith.constant 0 : index
    %13 = vector.load %arg6[%c0_12, %c0_13] : memref<32x128xf32, #tpu.memory_space<vmem>>, vector<32x128xf32>
    %c0_14 = arith.constant 0 : index
    %c0_15 = arith.constant 0 : index
    %14 = vector.load %arg7[%c0_14, %c0_15] : memref<32x128xf32, #tpu.memory_space<vmem>>, vector<32x128xf32>
    %c0_16 = arith.constant 0 : index
    %c0_17 = arith.constant 0 : index
    %15 = vector.load %arg8[%c0_16, %c0_17] : memref<1x128xf32, #tpu.memory_space<vmem>>, vector<1x128xf32>
    %c0_18 = arith.constant 0 : index
    %c0_19 = arith.constant 0 : index
    %c0_20 = arith.constant 0 : index
    %16 = vector.load %arg12[%c0_18, %c0_19, %c0_20] : memref<2x8x32xf32, #tpu.memory_space<vmem>>, vector<1x8x32xf32>
    %17 = vector.shape_cast %16 : vector<1x8x32xf32> to vector<8x32xf32>
    %c1 = arith.constant 1 : index
    %c0_21 = arith.constant 0 : index
    %c0_22 = arith.constant 0 : index
    %18 = vector.load %arg12[%c1, %c0_21, %c0_22] : memref<2x8x32xf32, #tpu.memory_space<vmem>>, vector<1x8x32xf32>
    %19 = vector.shape_cast %18 : vector<1x8x32xf32> to vector<8x32xf32>
    %c0_23 = arith.constant 0 : index
    %c0_24 = arith.constant 0 : index
    %c0_25 = arith.constant 0 : index
    %20 = vector.load %arg13[%c0_23, %c0_24, %c0_25] : memref<2x8x32xf32, #tpu.memory_space<vmem>>, vector<1x8x32xf32>
    %21 = vector.shape_cast %20 : vector<1x8x32xf32> to vector<8x32xf32>
    %c1_26 = arith.constant 1 : index
    %c0_27 = arith.constant 0 : index
    %c0_28 = arith.constant 0 : index
    %22 = vector.load %arg13[%c1_26, %c0_27, %c0_28] : memref<2x8x32xf32, #tpu.memory_space<vmem>>, vector<1x8x32xf32>
    %23 = vector.shape_cast %22 : vector<1x8x32xf32> to vector<8x32xf32>
    %c0_i32_29 = arith.constant 0 : i32
    %24 = arith.index_cast %c0_i32_29 : i32 to index
    %c0_30 = arith.constant 0 : index
    %c0_31 = arith.constant 0 : index
    %25 = vector.load %arg14[%24, %c0_30, %c0_31] : memref<8x8x128xf32, #tpu.memory_space<vmem>>, vector<1x8x128xf32>
    %26 = vector.shape_cast %25 : vector<1x8x128xf32> to vector<8x128xf32>
    %cst_32 = arith.constant dense<0.000000e+00> : vector<8x128xf32>
    %27 = tpu.matmul %17, %12, %cst_32 {dimension_numbers = #tpu.dot_dimension_numbers<[1], [0], [0], [1], [0, 0, 1, 1], [], []>} : vector<8x32xf32>, vector<32x128xf32>, vector<8x128xf32> -> vector<8x128xf32>
    %28 = arith.addf %26, %27 : vector<8x128xf32>
    %29 = vector.extract_strided_slice %28 {offsets = [0, 0], sizes = [8, 96], strides = [1, 1]} : vector<8x128xf32> to vector<8x96xf32>
    %30 = arith.negf %29 : vector<8x96xf32>
    %31 = math.exp %30 : vector<8x96xf32>
    %cst_33 = arith.constant 1.000000e+00 : f32
    %32 = vector.broadcast %cst_33 : f32 to vector<8x96xf32>
    %33 = arith.addf %32, %31 : vector<8x96xf32>
    %34 = arith.divf %32, %33 : vector<8x96xf32>
    %35 = vector.extract_strided_slice %28 {offsets = [0, 96], sizes = [8, 32], strides = [1, 1]} : vector<8x128xf32> to vector<8x32xf32>
    %36 = math.tanh %35 : vector<8x32xf32>
    %37 = vector.extract_strided_slice %34 {offsets = [0, 0], sizes = [8, 32], strides = [1, 1]} : vector<8x96xf32> to vector<8x32xf32>
    %38 = vector.extract_strided_slice %34 {offsets = [0, 32], sizes = [8, 32], strides = [1, 1]} : vector<8x96xf32> to vector<8x32xf32>
    %39 = vector.extract_strided_slice %34 {offsets = [0, 64], sizes = [8, 32], strides = [1, 1]} : vector<8x96xf32> to vector<8x32xf32>
    %40 = arith.mulf %38, %21 : vector<8x32xf32>
    %41 = arith.mulf %37, %36 : vector<8x32xf32>
    %42 = arith.addf %40, %41 : vector<8x32xf32>
    %43 = math.tanh %42 : vector<8x32xf32>
    %44 = arith.mulf %39, %43 : vector<8x32xf32>
    %cst_34 = arith.constant dense<0.000000e+00> : vector<8x128xf32>
    %45 = tpu.matmul %44, %13, %cst_34 {dimension_numbers = #tpu.dot_dimension_numbers<[1], [0], [0], [1], [0, 0, 1, 1], [], []>} : vector<8x32xf32>, vector<32x128xf32>, vector<8x128xf32> -> vector<8x128xf32>
    %cst_35 = arith.constant dense<0.000000e+00> : vector<8x128xf32>
    %46 = tpu.matmul %19, %14, %cst_35 {dimension_numbers = #tpu.dot_dimension_numbers<[1], [0], [0], [1], [0, 0, 1, 1], [], []>} : vector<8x32xf32>, vector<32x128xf32>, vector<8x128xf32> -> vector<8x128xf32>
    %47 = arith.addf %45, %46 : vector<8x128xf32>
    %48 = vector.broadcast %15 : vector<1x128xf32> to vector<8x128xf32>
    %49 = arith.addf %47, %48 : vector<8x128xf32>
    %50 = vector.extract_strided_slice %49 {offsets = [0, 0], sizes = [8, 96], strides = [1, 1]} : vector<8x128xf32> to vector<8x96xf32>
    %51 = arith.negf %50 : vector<8x96xf32>
    %52 = math.exp %51 : vector<8x96xf32>
    %cst_36 = arith.constant 1.000000e+00 : f32
    %53 = vector.broadcast %cst_36 : f32 to vector<8x96xf32>
    %54 = arith.addf %53, %52 : vector<8x96xf32>
    %55 = arith.divf %53, %54 : vector<8x96xf32>
    %56 = vector.extract_strided_slice %49 {offsets = [0, 96], sizes = [8, 32], strides = [1, 1]} : vector<8x128xf32> to vector<8x32xf32>
    %57 = math.tanh %56 : vector<8x32xf32>
    %58 = vector.extract_strided_slice %55 {offsets = [0, 0], sizes = [8, 32], strides = [1, 1]} : vector<8x96xf32> to vector<8x32xf32>
    %59 = vector.extract_strided_slice %55 {offsets = [0, 32], sizes = [8, 32], strides = [1, 1]} : vector<8x96xf32> to vector<8x32xf32>
    %60 = vector.extract_strided_slice %55 {offsets = [0, 64], sizes = [8, 32], strides = [1, 1]} : vector<8x96xf32> to vector<8x32xf32>
    %61 = arith.mulf %59, %23 : vector<8x32xf32>
    %62 = arith.mulf %58, %57 : vector<8x32xf32>
    %63 = arith.addf %61, %62 : vector<8x32xf32>
    %64 = math.tanh %63 : vector<8x32xf32>
    %65 = arith.mulf %60, %64 : vector<8x32xf32>
    %c1_i32 = arith.constant 1 : i32
    %66 = arith.index_cast %c1_i32 : i32 to index
    %c0_37 = arith.constant 0 : index
    %c0_38 = arith.constant 0 : index
    %67 = vector.load %arg14[%66, %c0_37, %c0_38] : memref<8x8x128xf32, #tpu.memory_space<vmem>>, vector<1x8x128xf32>
    %68 = vector.shape_cast %67 : vector<1x8x128xf32> to vector<8x128xf32>
    %cst_39 = arith.constant dense<0.000000e+00> : vector<8x128xf32>
    %69 = tpu.matmul %44, %12, %cst_39 {dimension_numbers = #tpu.dot_dimension_numbers<[1], [0], [0], [1], [0, 0, 1, 1], [], []>} : vector<8x32xf32>, vector<32x128xf32>, vector<8x128xf32> -> vector<8x128xf32>
    %70 = arith.addf %68, %69 : vector<8x128xf32>
    %71 = vector.extract_strided_slice %70 {offsets = [0, 0], sizes = [8, 96], strides = [1, 1]} : vector<8x128xf32> to vector<8x96xf32>
    %72 = arith.negf %71 : vector<8x96xf32>
    %73 = math.exp %72 : vector<8x96xf32>
    %cst_40 = arith.constant 1.000000e+00 : f32
    %74 = vector.broadcast %cst_40 : f32 to vector<8x96xf32>
    %75 = arith.addf %74, %73 : vector<8x96xf32>
    %76 = arith.divf %74, %75 : vector<8x96xf32>
    %77 = vector.extract_strided_slice %70 {offsets = [0, 96], sizes = [8, 32], strides = [1, 1]} : vector<8x128xf32> to vector<8x32xf32>
    %78 = math.tanh %77 : vector<8x32xf32>
    %79 = vector.extract_strided_slice %76 {offsets = [0, 0], sizes = [8, 32], strides = [1, 1]} : vector<8x96xf32> to vector<8x32xf32>
    %80 = vector.extract_strided_slice %76 {offsets = [0, 32], sizes = [8, 32], strides = [1, 1]} : vector<8x96xf32> to vector<8x32xf32>
    %81 = vector.extract_strided_slice %76 {offsets = [0, 64], sizes = [8, 32], strides = [1, 1]} : vector<8x96xf32> to vector<8x32xf32>
    %82 = arith.mulf %80, %42 : vector<8x32xf32>
    %83 = arith.mulf %79, %78 : vector<8x32xf32>
    %84 = arith.addf %82, %83 : vector<8x32xf32>
    %85 = math.tanh %84 : vector<8x32xf32>
    %86 = arith.mulf %81, %85 : vector<8x32xf32>
    %cst_41 = arith.constant dense<0.000000e+00> : vector<8x128xf32>
    %87 = tpu.matmul %86, %13, %cst_41 {dimension_numbers = #tpu.dot_dimension_numbers<[1], [0], [0], [1], [0, 0, 1, 1], [], []>} : vector<8x32xf32>, vector<32x128xf32>, vector<8x128xf32> -> vector<8x128xf32>
    %cst_42 = arith.constant dense<0.000000e+00> : vector<8x128xf32>
    %88 = tpu.matmul %65, %14, %cst_42 {dimension_numbers = #tpu.dot_dimension_numbers<[1], [0], [0], [1], [0, 0, 1, 1], [], []>} : vector<8x32xf32>, vector<32x128xf32>, vector<8x128xf32> -> vector<8x128xf32>
    %89 = arith.addf %87, %88 : vector<8x128xf32>
    %90 = vector.broadcast %15 : vector<1x128xf32> to vector<8x128xf32>
    %91 = arith.addf %89, %90 : vector<8x128xf32>
    %92 = vector.extract_strided_slice %91 {offsets = [0, 0], sizes = [8, 96], strides = [1, 1]} : vector<8x128xf32> to vector<8x96xf32>
    %93 = arith.negf %92 : vector<8x96xf32>
    %94 = math.exp %93 : vector<8x96xf32>
    %cst_43 = arith.constant 1.000000e+00 : f32
    %95 = vector.broadcast %cst_43 : f32 to vector<8x96xf32>
    %96 = arith.addf %95, %94 : vector<8x96xf32>
    %97 = arith.divf %95, %96 : vector<8x96xf32>
    %98 = vector.extract_strided_slice %91 {offsets = [0, 96], sizes = [8, 32], strides = [1, 1]} : vector<8x128xf32> to vector<8x32xf32>
    %99 = math.tanh %98 : vector<8x32xf32>
    %100 = vector.extract_strided_slice %97 {offsets = [0, 0], sizes = [8, 32], strides = [1, 1]} : vector<8x96xf32> to vector<8x32xf32>
    %101 = vector.extract_strided_slice %97 {offsets = [0, 32], sizes = [8, 32], strides = [1, 1]} : vector<8x96xf32> to vector<8x32xf32>
    %102 = vector.extract_strided_slice %97 {offsets = [0, 64], sizes = [8, 32], strides = [1, 1]} : vector<8x96xf32> to vector<8x32xf32>
    %103 = arith.mulf %101, %63 : vector<8x32xf32>
    %104 = arith.mulf %100, %99 : vector<8x32xf32>
    %105 = arith.addf %103, %104 : vector<8x32xf32>
    %106 = math.tanh %105 : vector<8x32xf32>
    %107 = arith.mulf %102, %106 : vector<8x32xf32>
    %c2_i32 = arith.constant 2 : i32
    %108 = arith.index_cast %c2_i32 : i32 to index
    %c0_44 = arith.constant 0 : index
    %c0_45 = arith.constant 0 : index
    %109 = vector.load %arg14[%108, %c0_44, %c0_45] : memref<8x8x128xf32, #tpu.memory_space<vmem>>, vector<1x8x128xf32>
    %110 = vector.shape_cast %109 : vector<1x8x128xf32> to vector<8x128xf32>
    %cst_46 = arith.constant dense<0.000000e+00> : vector<8x128xf32>
    %111 = tpu.matmul %86, %12, %cst_46 {dimension_numbers = #tpu.dot_dimension_numbers<[1], [0], [0], [1], [0, 0, 1, 1], [], []>} : vector<8x32xf32>, vector<32x128xf32>, vector<8x128xf32> -> vector<8x128xf32>
    %112 = arith.addf %110, %111 : vector<8x128xf32>
    %113 = vector.extract_strided_slice %112 {offsets = [0, 0], sizes = [8, 96], strides = [1, 1]} : vector<8x128xf32> to vector<8x96xf32>
    %114 = arith.negf %113 : vector<8x96xf32>
    %115 = math.exp %114 : vector<8x96xf32>
    %cst_47 = arith.constant 1.000000e+00 : f32
    %116 = vector.broadcast %cst_47 : f32 to vector<8x96xf32>
    %117 = arith.addf %116, %115 : vector<8x96xf32>
    %118 = arith.divf %116, %117 : vector<8x96xf32>
    %119 = vector.extract_strided_slice %112 {offsets = [0, 96], sizes = [8, 32], strides = [1, 1]} : vector<8x128xf32> to vector<8x32xf32>
    %120 = math.tanh %119 : vector<8x32xf32>
    %121 = vector.extract_strided_slice %118 {offsets = [0, 0], sizes = [8, 32], strides = [1, 1]} : vector<8x96xf32> to vector<8x32xf32>
    %122 = vector.extract_strided_slice %118 {offsets = [0, 32], sizes = [8, 32], strides = [1, 1]} : vector<8x96xf32> to vector<8x32xf32>
    %123 = vector.extract_strided_slice %118 {offsets = [0, 64], sizes = [8, 32], strides = [1, 1]} : vector<8x96xf32> to vector<8x32xf32>
    %124 = arith.mulf %122, %84 : vector<8x32xf32>
    %125 = arith.mulf %121, %120 : vector<8x32xf32>
    %126 = arith.addf %124, %125 : vector<8x32xf32>
    %127 = math.tanh %126 : vector<8x32xf32>
    %128 = arith.mulf %123, %127 : vector<8x32xf32>
    %cst_48 = arith.constant dense<0.000000e+00> : vector<8x128xf32>
    %129 = tpu.matmul %128, %13, %cst_48 {dimension_numbers = #tpu.dot_dimension_numbers<[1], [0], [0], [1], [0, 0, 1, 1], [], []>} : vector<8x32xf32>, vector<32x128xf32>, vector<8x128xf32> -> vector<8x128xf32>
    %cst_49 = arith.constant dense<0.000000e+00> : vector<8x128xf32>
    %130 = tpu.matmul %107, %14, %cst_49 {dimension_numbers = #tpu.dot_dimension_numbers<[1], [0], [0], [1], [0, 0, 1, 1], [], []>} : vector<8x32xf32>, vector<32x128xf32>, vector<8x128xf32> -> vector<8x128xf32>
    %131 = arith.addf %129, %130 : vector<8x128xf32>
    %132 = vector.broadcast %15 : vector<1x128xf32> to vector<8x128xf32>
    %133 = arith.addf %131, %132 : vector<8x128xf32>
    %134 = vector.extract_strided_slice %133 {offsets = [0, 0], sizes = [8, 96], strides = [1, 1]} : vector<8x128xf32> to vector<8x96xf32>
    %135 = arith.negf %134 : vector<8x96xf32>
    %136 = math.exp %135 : vector<8x96xf32>
    %cst_50 = arith.constant 1.000000e+00 : f32
    %137 = vector.broadcast %cst_50 : f32 to vector<8x96xf32>
    %138 = arith.addf %137, %136 : vector<8x96xf32>
    %139 = arith.divf %137, %138 : vector<8x96xf32>
    %140 = vector.extract_strided_slice %133 {offsets = [0, 96], sizes = [8, 32], strides = [1, 1]} : vector<8x128xf32> to vector<8x32xf32>
    %141 = math.tanh %140 : vector<8x32xf32>
    %142 = vector.extract_strided_slice %139 {offsets = [0, 0], sizes = [8, 32], strides = [1, 1]} : vector<8x96xf32> to vector<8x32xf32>
    %143 = vector.extract_strided_slice %139 {offsets = [0, 32], sizes = [8, 32], strides = [1, 1]} : vector<8x96xf32> to vector<8x32xf32>
    %144 = vector.extract_strided_slice %139 {offsets = [0, 64], sizes = [8, 32], strides = [1, 1]} : vector<8x96xf32> to vector<8x32xf32>
    %145 = arith.mulf %143, %105 : vector<8x32xf32>
    %146 = arith.mulf %142, %141 : vector<8x32xf32>
    %147 = arith.addf %145, %146 : vector<8x32xf32>
    %148 = math.tanh %147 : vector<8x32xf32>
    %149 = arith.mulf %144, %148 : vector<8x32xf32>
    %c3_i32 = arith.constant 3 : i32
    %150 = arith.index_cast %c3_i32 : i32 to index
    %c0_51 = arith.constant 0 : index
    %c0_52 = arith.constant 0 : index
    %151 = vector.load %arg14[%150, %c0_51, %c0_52] : memref<8x8x128xf32, #tpu.memory_space<vmem>>, vector<1x8x128xf32>
    %152 = vector.shape_cast %151 : vector<1x8x128xf32> to vector<8x128xf32>
    %cst_53 = arith.constant dense<0.000000e+00> : vector<8x128xf32>
    %153 = tpu.matmul %128, %12, %cst_53 {dimension_numbers = #tpu.dot_dimension_numbers<[1], [0], [0], [1], [0, 0, 1, 1], [], []>} : vector<8x32xf32>, vector<32x128xf32>, vector<8x128xf32> -> vector<8x128xf32>
    %154 = arith.addf %152, %153 : vector<8x128xf32>
    %155 = vector.extract_strided_slice %154 {offsets = [0, 0], sizes = [8, 96], strides = [1, 1]} : vector<8x128xf32> to vector<8x96xf32>
    %156 = arith.negf %155 : vector<8x96xf32>
    %157 = math.exp %156 : vector<8x96xf32>
    %cst_54 = arith.constant 1.000000e+00 : f32
    %158 = vector.broadcast %cst_54 : f32 to vector<8x96xf32>
    %159 = arith.addf %158, %157 : vector<8x96xf32>
    %160 = arith.divf %158, %159 : vector<8x96xf32>
    %161 = vector.extract_strided_slice %154 {offsets = [0, 96], sizes = [8, 32], strides = [1, 1]} : vector<8x128xf32> to vector<8x32xf32>
    %162 = math.tanh %161 : vector<8x32xf32>
    %163 = vector.extract_strided_slice %160 {offsets = [0, 0], sizes = [8, 32], strides = [1, 1]} : vector<8x96xf32> to vector<8x32xf32>
    %164 = vector.extract_strided_slice %160 {offsets = [0, 32], sizes = [8, 32], strides = [1, 1]} : vector<8x96xf32> to vector<8x32xf32>
    %165 = vector.extract_strided_slice %160 {offsets = [0, 64], sizes = [8, 32], strides = [1, 1]} : vector<8x96xf32> to vector<8x32xf32>
    %166 = arith.mulf %164, %126 : vector<8x32xf32>
    %167 = arith.mulf %163, %162 : vector<8x32xf32>
    %168 = arith.addf %166, %167 : vector<8x32xf32>
    %169 = math.tanh %168 : vector<8x32xf32>
    %170 = arith.mulf %165, %169 : vector<8x32xf32>
    %cst_55 = arith.constant dense<0.000000e+00> : vector<8x128xf32>
    %171 = tpu.matmul %170, %13, %cst_55 {dimension_numbers = #tpu.dot_dimension_numbers<[1], [0], [0], [1], [0, 0, 1, 1], [], []>} : vector<8x32xf32>, vector<32x128xf32>, vector<8x128xf32> -> vector<8x128xf32>
    %cst_56 = arith.constant dense<0.000000e+00> : vector<8x128xf32>
    %172 = tpu.matmul %149, %14, %cst_56 {dimension_numbers = #tpu.dot_dimension_numbers<[1], [0], [0], [1], [0, 0, 1, 1], [], []>} : vector<8x32xf32>, vector<32x128xf32>, vector<8x128xf32> -> vector<8x128xf32>
    %173 = arith.addf %171, %172 : vector<8x128xf32>
    %174 = vector.broadcast %15 : vector<1x128xf32> to vector<8x128xf32>
    %175 = arith.addf %173, %174 : vector<8x128xf32>
    %176 = vector.extract_strided_slice %175 {offsets = [0, 0], sizes = [8, 96], strides = [1, 1]} : vector<8x128xf32> to vector<8x96xf32>
    %177 = arith.negf %176 : vector<8x96xf32>
    %178 = math.exp %177 : vector<8x96xf32>
    %cst_57 = arith.constant 1.000000e+00 : f32
    %179 = vector.broadcast %cst_57 : f32 to vector<8x96xf32>
    %180 = arith.addf %179, %178 : vector<8x96xf32>
    %181 = arith.divf %179, %180 : vector<8x96xf32>
    %182 = vector.extract_strided_slice %175 {offsets = [0, 96], sizes = [8, 32], strides = [1, 1]} : vector<8x128xf32> to vector<8x32xf32>
    %183 = math.tanh %182 : vector<8x32xf32>
    %184 = vector.extract_strided_slice %181 {offsets = [0, 0], sizes = [8, 32], strides = [1, 1]} : vector<8x96xf32> to vector<8x32xf32>
    %185 = vector.extract_strided_slice %181 {offsets = [0, 32], sizes = [8, 32], strides = [1, 1]} : vector<8x96xf32> to vector<8x32xf32>
    %186 = vector.extract_strided_slice %181 {offsets = [0, 64], sizes = [8, 32], strides = [1, 1]} : vector<8x96xf32> to vector<8x32xf32>
    %187 = arith.mulf %185, %147 : vector<8x32xf32>
    %188 = arith.mulf %184, %183 : vector<8x32xf32>
    %189 = arith.addf %187, %188 : vector<8x32xf32>
    %190 = math.tanh %189 : vector<8x32xf32>
    %191 = arith.mulf %186, %190 : vector<8x32xf32>
    %c4_i32 = arith.constant 4 : i32
    %192 = arith.index_cast %c4_i32 : i32 to index
    %c0_58 = arith.constant 0 : index
    %c0_59 = arith.constant 0 : index
    %193 = vector.load %arg14[%192, %c0_58, %c0_59] : memref<8x8x128xf32, #tpu.memory_space<vmem>>, vector<1x8x128xf32>
    %194 = vector.shape_cast %193 : vector<1x8x128xf32> to vector<8x128xf32>
    %cst_60 = arith.constant dense<0.000000e+00> : vector<8x128xf32>
    %195 = tpu.matmul %170, %12, %cst_60 {dimension_numbers = #tpu.dot_dimension_numbers<[1], [0], [0], [1], [0, 0, 1, 1], [], []>} : vector<8x32xf32>, vector<32x128xf32>, vector<8x128xf32> -> vector<8x128xf32>
    %196 = arith.addf %194, %195 : vector<8x128xf32>
    %197 = vector.extract_strided_slice %196 {offsets = [0, 0], sizes = [8, 96], strides = [1, 1]} : vector<8x128xf32> to vector<8x96xf32>
    %198 = arith.negf %197 : vector<8x96xf32>
    %199 = math.exp %198 : vector<8x96xf32>
    %cst_61 = arith.constant 1.000000e+00 : f32
    %200 = vector.broadcast %cst_61 : f32 to vector<8x96xf32>
    %201 = arith.addf %200, %199 : vector<8x96xf32>
    %202 = arith.divf %200, %201 : vector<8x96xf32>
    %203 = vector.extract_strided_slice %196 {offsets = [0, 96], sizes = [8, 32], strides = [1, 1]} : vector<8x128xf32> to vector<8x32xf32>
    %204 = math.tanh %203 : vector<8x32xf32>
    %205 = vector.extract_strided_slice %202 {offsets = [0, 0], sizes = [8, 32], strides = [1, 1]} : vector<8x96xf32> to vector<8x32xf32>
    %206 = vector.extract_strided_slice %202 {offsets = [0, 32], sizes = [8, 32], strides = [1, 1]} : vector<8x96xf32> to vector<8x32xf32>
    %207 = vector.extract_strided_slice %202 {offsets = [0, 64], sizes = [8, 32], strides = [1, 1]} : vector<8x96xf32> to vector<8x32xf32>
    %208 = arith.mulf %206, %168 : vector<8x32xf32>
    %209 = arith.mulf %205, %204 : vector<8x32xf32>
    %210 = arith.addf %208, %209 : vector<8x32xf32>
    %211 = math.tanh %210 : vector<8x32xf32>
    %212 = arith.mulf %207, %211 : vector<8x32xf32>
    %cst_62 = arith.constant dense<0.000000e+00> : vector<8x128xf32>
    %213 = tpu.matmul %212, %13, %cst_62 {dimension_numbers = #tpu.dot_dimension_numbers<[1], [0], [0], [1], [0, 0, 1, 1], [], []>} : vector<8x32xf32>, vector<32x128xf32>, vector<8x128xf32> -> vector<8x128xf32>
    %cst_63 = arith.constant dense<0.000000e+00> : vector<8x128xf32>
    %214 = tpu.matmul %191, %14, %cst_63 {dimension_numbers = #tpu.dot_dimension_numbers<[1], [0], [0], [1], [0, 0, 1, 1], [], []>} : vector<8x32xf32>, vector<32x128xf32>, vector<8x128xf32> -> vector<8x128xf32>
    %215 = arith.addf %213, %214 : vector<8x128xf32>
    %216 = vector.broadcast %15 : vector<1x128xf32> to vector<8x128xf32>
    %217 = arith.addf %215, %216 : vector<8x128xf32>
    %218 = vector.extract_strided_slice %217 {offsets = [0, 0], sizes = [8, 96], strides = [1, 1]} : vector<8x128xf32> to vector<8x96xf32>
    %219 = arith.negf %218 : vector<8x96xf32>
    %220 = math.exp %219 : vector<8x96xf32>
    %cst_64 = arith.constant 1.000000e+00 : f32
    %221 = vector.broadcast %cst_64 : f32 to vector<8x96xf32>
    %222 = arith.addf %221, %220 : vector<8x96xf32>
    %223 = arith.divf %221, %222 : vector<8x96xf32>
    %224 = vector.extract_strided_slice %217 {offsets = [0, 96], sizes = [8, 32], strides = [1, 1]} : vector<8x128xf32> to vector<8x32xf32>
    %225 = math.tanh %224 : vector<8x32xf32>
    %226 = vector.extract_strided_slice %223 {offsets = [0, 0], sizes = [8, 32], strides = [1, 1]} : vector<8x96xf32> to vector<8x32xf32>
    %227 = vector.extract_strided_slice %223 {offsets = [0, 32], sizes = [8, 32], strides = [1, 1]} : vector<8x96xf32> to vector<8x32xf32>
    %228 = vector.extract_strided_slice %223 {offsets = [0, 64], sizes = [8, 32], strides = [1, 1]} : vector<8x96xf32> to vector<8x32xf32>
    %229 = arith.mulf %227, %189 : vector<8x32xf32>
    %230 = arith.mulf %226, %225 : vector<8x32xf32>
    %231 = arith.addf %229, %230 : vector<8x32xf32>
    %232 = math.tanh %231 : vector<8x32xf32>
    %233 = arith.mulf %228, %232 : vector<8x32xf32>
    %c5_i32 = arith.constant 5 : i32
    %234 = arith.index_cast %c5_i32 : i32 to index
    %c0_65 = arith.constant 0 : index
    %c0_66 = arith.constant 0 : index
    %235 = vector.load %arg14[%234, %c0_65, %c0_66] : memref<8x8x128xf32, #tpu.memory_space<vmem>>, vector<1x8x128xf32>
    %236 = vector.shape_cast %235 : vector<1x8x128xf32> to vector<8x128xf32>
    %cst_67 = arith.constant dense<0.000000e+00> : vector<8x128xf32>
    %237 = tpu.matmul %212, %12, %cst_67 {dimension_numbers = #tpu.dot_dimension_numbers<[1], [0], [0], [1], [0, 0, 1, 1], [], []>} : vector<8x32xf32>, vector<32x128xf32>, vector<8x128xf32> -> vector<8x128xf32>
    %238 = arith.addf %236, %237 : vector<8x128xf32>
    %239 = vector.extract_strided_slice %238 {offsets = [0, 0], sizes = [8, 96], strides = [1, 1]} : vector<8x128xf32> to vector<8x96xf32>
    %240 = arith.negf %239 : vector<8x96xf32>
    %241 = math.exp %240 : vector<8x96xf32>
    %cst_68 = arith.constant 1.000000e+00 : f32
    %242 = vector.broadcast %cst_68 : f32 to vector<8x96xf32>
    %243 = arith.addf %242, %241 : vector<8x96xf32>
    %244 = arith.divf %242, %243 : vector<8x96xf32>
    %245 = vector.extract_strided_slice %238 {offsets = [0, 96], sizes = [8, 32], strides = [1, 1]} : vector<8x128xf32> to vector<8x32xf32>
    %246 = math.tanh %245 : vector<8x32xf32>
    %247 = vector.extract_strided_slice %244 {offsets = [0, 0], sizes = [8, 32], strides = [1, 1]} : vector<8x96xf32> to vector<8x32xf32>
    %248 = vector.extract_strided_slice %244 {offsets = [0, 32], sizes = [8, 32], strides = [1, 1]} : vector<8x96xf32> to vector<8x32xf32>
    %249 = vector.extract_strided_slice %244 {offsets = [0, 64], sizes = [8, 32], strides = [1, 1]} : vector<8x96xf32> to vector<8x32xf32>
    %250 = arith.mulf %248, %210 : vector<8x32xf32>
    %251 = arith.mulf %247, %246 : vector<8x32xf32>
    %252 = arith.addf %250, %251 : vector<8x32xf32>
    %253 = math.tanh %252 : vector<8x32xf32>
    %254 = arith.mulf %249, %253 : vector<8x32xf32>
    %cst_69 = arith.constant dense<0.000000e+00> : vector<8x128xf32>
    %255 = tpu.matmul %254, %13, %cst_69 {dimension_numbers = #tpu.dot_dimension_numbers<[1], [0], [0], [1], [0, 0, 1, 1], [], []>} : vector<8x32xf32>, vector<32x128xf32>, vector<8x128xf32> -> vector<8x128xf32>
    %cst_70 = arith.constant dense<0.000000e+00> : vector<8x128xf32>
    %256 = tpu.matmul %233, %14, %cst_70 {dimension_numbers = #tpu.dot_dimension_numbers<[1], [0], [0], [1], [0, 0, 1, 1], [], []>} : vector<8x32xf32>, vector<32x128xf32>, vector<8x128xf32> -> vector<8x128xf32>
    %257 = arith.addf %255, %256 : vector<8x128xf32>
    %258 = vector.broadcast %15 : vector<1x128xf32> to vector<8x128xf32>
    %259 = arith.addf %257, %258 : vector<8x128xf32>
    %260 = vector.extract_strided_slice %259 {offsets = [0, 0], sizes = [8, 96], strides = [1, 1]} : vector<8x128xf32> to vector<8x96xf32>
    %261 = arith.negf %260 : vector<8x96xf32>
    %262 = math.exp %261 : vector<8x96xf32>
    %cst_71 = arith.constant 1.000000e+00 : f32
    %263 = vector.broadcast %cst_71 : f32 to vector<8x96xf32>
    %264 = arith.addf %263, %262 : vector<8x96xf32>
    %265 = arith.divf %263, %264 : vector<8x96xf32>
    %266 = vector.extract_strided_slice %259 {offsets = [0, 96], sizes = [8, 32], strides = [1, 1]} : vector<8x128xf32> to vector<8x32xf32>
    %267 = math.tanh %266 : vector<8x32xf32>
    %268 = vector.extract_strided_slice %265 {offsets = [0, 0], sizes = [8, 32], strides = [1, 1]} : vector<8x96xf32> to vector<8x32xf32>
    %269 = vector.extract_strided_slice %265 {offsets = [0, 32], sizes = [8, 32], strides = [1, 1]} : vector<8x96xf32> to vector<8x32xf32>
    %270 = vector.extract_strided_slice %265 {offsets = [0, 64], sizes = [8, 32], strides = [1, 1]} : vector<8x96xf32> to vector<8x32xf32>
    %271 = arith.mulf %269, %231 : vector<8x32xf32>
    %272 = arith.mulf %268, %267 : vector<8x32xf32>
    %273 = arith.addf %271, %272 : vector<8x32xf32>
    %274 = math.tanh %273 : vector<8x32xf32>
    %275 = arith.mulf %270, %274 : vector<8x32xf32>
    %c6_i32 = arith.constant 6 : i32
    %276 = arith.index_cast %c6_i32 : i32 to index
    %c0_72 = arith.constant 0 : index
    %c0_73 = arith.constant 0 : index
    %277 = vector.load %arg14[%276, %c0_72, %c0_73] : memref<8x8x128xf32, #tpu.memory_space<vmem>>, vector<1x8x128xf32>
    %278 = vector.shape_cast %277 : vector<1x8x128xf32> to vector<8x128xf32>
    %cst_74 = arith.constant dense<0.000000e+00> : vector<8x128xf32>
    %279 = tpu.matmul %254, %12, %cst_74 {dimension_numbers = #tpu.dot_dimension_numbers<[1], [0], [0], [1], [0, 0, 1, 1], [], []>} : vector<8x32xf32>, vector<32x128xf32>, vector<8x128xf32> -> vector<8x128xf32>
    %280 = arith.addf %278, %279 : vector<8x128xf32>
    %281 = vector.extract_strided_slice %280 {offsets = [0, 0], sizes = [8, 96], strides = [1, 1]} : vector<8x128xf32> to vector<8x96xf32>
    %282 = arith.negf %281 : vector<8x96xf32>
    %283 = math.exp %282 : vector<8x96xf32>
    %cst_75 = arith.constant 1.000000e+00 : f32
    %284 = vector.broadcast %cst_75 : f32 to vector<8x96xf32>
    %285 = arith.addf %284, %283 : vector<8x96xf32>
    %286 = arith.divf %284, %285 : vector<8x96xf32>
    %287 = vector.extract_strided_slice %280 {offsets = [0, 96], sizes = [8, 32], strides = [1, 1]} : vector<8x128xf32> to vector<8x32xf32>
    %288 = math.tanh %287 : vector<8x32xf32>
    %289 = vector.extract_strided_slice %286 {offsets = [0, 0], sizes = [8, 32], strides = [1, 1]} : vector<8x96xf32> to vector<8x32xf32>
    %290 = vector.extract_strided_slice %286 {offsets = [0, 32], sizes = [8, 32], strides = [1, 1]} : vector<8x96xf32> to vector<8x32xf32>
    %291 = vector.extract_strided_slice %286 {offsets = [0, 64], sizes = [8, 32], strides = [1, 1]} : vector<8x96xf32> to vector<8x32xf32>
    %292 = arith.mulf %290, %252 : vector<8x32xf32>
    %293 = arith.mulf %289, %288 : vector<8x32xf32>
    %294 = arith.addf %292, %293 : vector<8x32xf32>
    %295 = math.tanh %294 : vector<8x32xf32>
    %296 = arith.mulf %291, %295 : vector<8x32xf32>
    %cst_76 = arith.constant dense<0.000000e+00> : vector<8x128xf32>
    %297 = tpu.matmul %296, %13, %cst_76 {dimension_numbers = #tpu.dot_dimension_numbers<[1], [0], [0], [1], [0, 0, 1, 1], [], []>} : vector<8x32xf32>, vector<32x128xf32>, vector<8x128xf32> -> vector<8x128xf32>
    %cst_77 = arith.constant dense<0.000000e+00> : vector<8x128xf32>
    %298 = tpu.matmul %275, %14, %cst_77 {dimension_numbers = #tpu.dot_dimension_numbers<[1], [0], [0], [1], [0, 0, 1, 1], [], []>} : vector<8x32xf32>, vector<32x128xf32>, vector<8x128xf32> -> vector<8x128xf32>
    %299 = arith.addf %297, %298 : vector<8x128xf32>
    %300 = vector.broadcast %15 : vector<1x128xf32> to vector<8x128xf32>
    %301 = arith.addf %299, %300 : vector<8x128xf32>
    %302 = vector.extract_strided_slice %301 {offsets = [0, 0], sizes = [8, 96], strides = [1, 1]} : vector<8x128xf32> to vector<8x96xf32>
    %303 = arith.negf %302 : vector<8x96xf32>
    %304 = math.exp %303 : vector<8x96xf32>
    %cst_78 = arith.constant 1.000000e+00 : f32
    %305 = vector.broadcast %cst_78 : f32 to vector<8x96xf32>
    %306 = arith.addf %305, %304 : vector<8x96xf32>
    %307 = arith.divf %305, %306 : vector<8x96xf32>
    %308 = vector.extract_strided_slice %301 {offsets = [0, 96], sizes = [8, 32], strides = [1, 1]} : vector<8x128xf32> to vector<8x32xf32>
    %309 = math.tanh %308 : vector<8x32xf32>
    %310 = vector.extract_strided_slice %307 {offsets = [0, 0], sizes = [8, 32], strides = [1, 1]} : vector<8x96xf32> to vector<8x32xf32>
    %311 = vector.extract_strided_slice %307 {offsets = [0, 32], sizes = [8, 32], strides = [1, 1]} : vector<8x96xf32> to vector<8x32xf32>
    %312 = vector.extract_strided_slice %307 {offsets = [0, 64], sizes = [8, 32], strides = [1, 1]} : vector<8x96xf32> to vector<8x32xf32>
    %313 = arith.mulf %311, %273 : vector<8x32xf32>
    %314 = arith.mulf %310, %309 : vector<8x32xf32>
    %315 = arith.addf %313, %314 : vector<8x32xf32>
    %316 = math.tanh %315 : vector<8x32xf32>
    %317 = arith.mulf %312, %316 : vector<8x32xf32>
    %c7_i32 = arith.constant 7 : i32
    %318 = arith.index_cast %c7_i32 : i32 to index
    %c0_79 = arith.constant 0 : index
    %c0_80 = arith.constant 0 : index
    %319 = vector.load %arg14[%318, %c0_79, %c0_80] : memref<8x8x128xf32, #tpu.memory_space<vmem>>, vector<1x8x128xf32>
    %320 = vector.shape_cast %319 : vector<1x8x128xf32> to vector<8x128xf32>
    %cst_81 = arith.constant dense<0.000000e+00> : vector<8x128xf32>
    %321 = tpu.matmul %296, %12, %cst_81 {dimension_numbers = #tpu.dot_dimension_numbers<[1], [0], [0], [1], [0, 0, 1, 1], [], []>} : vector<8x32xf32>, vector<32x128xf32>, vector<8x128xf32> -> vector<8x128xf32>
    %322 = arith.addf %320, %321 : vector<8x128xf32>
    %323 = vector.extract_strided_slice %322 {offsets = [0, 0], sizes = [8, 96], strides = [1, 1]} : vector<8x128xf32> to vector<8x96xf32>
    %324 = arith.negf %323 : vector<8x96xf32>
    %325 = math.exp %324 : vector<8x96xf32>
    %cst_82 = arith.constant 1.000000e+00 : f32
    %326 = vector.broadcast %cst_82 : f32 to vector<8x96xf32>
    %327 = arith.addf %326, %325 : vector<8x96xf32>
    %328 = arith.divf %326, %327 : vector<8x96xf32>
    %329 = vector.extract_strided_slice %322 {offsets = [0, 96], sizes = [8, 32], strides = [1, 1]} : vector<8x128xf32> to vector<8x32xf32>
    %330 = math.tanh %329 : vector<8x32xf32>
    %331 = vector.extract_strided_slice %328 {offsets = [0, 0], sizes = [8, 32], strides = [1, 1]} : vector<8x96xf32> to vector<8x32xf32>
    %332 = vector.extract_strided_slice %328 {offsets = [0, 32], sizes = [8, 32], strides = [1, 1]} : vector<8x96xf32> to vector<8x32xf32>
    %333 = vector.extract_strided_slice %328 {offsets = [0, 64], sizes = [8, 32], strides = [1, 1]} : vector<8x96xf32> to vector<8x32xf32>
    %334 = arith.mulf %332, %294 : vector<8x32xf32>
    %335 = arith.mulf %331, %330 : vector<8x32xf32>
    %336 = arith.addf %334, %335 : vector<8x32xf32>
    %337 = math.tanh %336 : vector<8x32xf32>
    %338 = arith.mulf %333, %337 : vector<8x32xf32>
    %cst_83 = arith.constant dense<0.000000e+00> : vector<8x128xf32>
    %339 = tpu.matmul %338, %13, %cst_83 {dimension_numbers = #tpu.dot_dimension_numbers<[1], [0], [0], [1], [0, 0, 1, 1], [], []>} : vector<8x32xf32>, vector<32x128xf32>, vector<8x128xf32> -> vector<8x128xf32>
    %cst_84 = arith.constant dense<0.000000e+00> : vector<8x128xf32>
    %340 = tpu.matmul %317, %14, %cst_84 {dimension_numbers = #tpu.dot_dimension_numbers<[1], [0], [0], [1], [0, 0, 1, 1], [], []>} : vector<8x32xf32>, vector<32x128xf32>, vector<8x128xf32> -> vector<8x128xf32>
    %341 = arith.addf %339, %340 : vector<8x128xf32>
    %342 = vector.broadcast %15 : vector<1x128xf32> to vector<8x128xf32>
    %343 = arith.addf %341, %342 : vector<8x128xf32>
    %344 = vector.extract_strided_slice %343 {offsets = [0, 0], sizes = [8, 96], strides = [1, 1]} : vector<8x128xf32> to vector<8x96xf32>
    %345 = arith.negf %344 : vector<8x96xf32>
    %346 = math.exp %345 : vector<8x96xf32>
    %cst_85 = arith.constant 1.000000e+00 : f32
    %347 = vector.broadcast %cst_85 : f32 to vector<8x96xf32>
    %348 = arith.addf %347, %346 : vector<8x96xf32>
    %349 = arith.divf %347, %348 : vector<8x96xf32>
    %350 = vector.extract_strided_slice %343 {offsets = [0, 96], sizes = [8, 32], strides = [1, 1]} : vector<8x128xf32> to vector<8x32xf32>
    %351 = math.tanh %350 : vector<8x32xf32>
    %352 = vector.extract_strided_slice %349 {offsets = [0, 0], sizes = [8, 32], strides = [1, 1]} : vector<8x96xf32> to vector<8x32xf32>
    %353 = vector.extract_strided_slice %349 {offsets = [0, 32], sizes = [8, 32], strides = [1, 1]} : vector<8x96xf32> to vector<8x32xf32>
    %354 = vector.extract_strided_slice %349 {offsets = [0, 64], sizes = [8, 32], strides = [1, 1]} : vector<8x96xf32> to vector<8x32xf32>
    %355 = arith.mulf %353, %315 : vector<8x32xf32>
    %356 = arith.mulf %352, %351 : vector<8x32xf32>
    %357 = arith.addf %355, %356 : vector<8x32xf32>
    %358 = math.tanh %357 : vector<8x32xf32>
    %359 = arith.mulf %354, %358 : vector<8x32xf32>
    %c8_i32 = arith.constant 8 : i32
    %c0_86 = arith.constant 0 : index
    %c0_87 = arith.constant 0 : index
    %c0_88 = arith.constant 0 : index
    %360 = vector.load %arg12[%c0_86, %c0_87, %c0_88] : memref<2x8x32xf32, #tpu.memory_space<vmem>>, vector<1x8x32xf32>
    %361 = vector.shape_cast %360 : vector<1x8x32xf32> to vector<8x32xf32>
    %362 = vector.shape_cast %338 : vector<8x32xf32> to vector<1x8x32xf32>
    tpu.vector_store %arg12[%c0_86, %c0_87, %c0_88], %362 {strides = array<i32>} : memref<2x8x32xf32, #tpu.memory_space<vmem>>, vector<1x8x32xf32>,
    %c0_89 = arith.constant 0 : index
    %c0_90 = arith.constant 0 : index
    %c0_91 = arith.constant 0 : index
    %363 = vector.load %arg13[%c0_89, %c0_90, %c0_91] : memref<2x8x32xf32, #tpu.memory_space<vmem>>, vector<1x8x32xf32>
    %364 = vector.shape_cast %363 : vector<1x8x32xf32> to vector<8x32xf32>
    %365 = vector.shape_cast %336 : vector<8x32xf32> to vector<1x8x32xf32>
    tpu.vector_store %arg13[%c0_89, %c0_90, %c0_91], %365 {strides = array<i32>} : memref<2x8x32xf32, #tpu.memory_space<vmem>>, vector<1x8x32xf32>,
    %c1_92 = arith.constant 1 : index
    %c0_93 = arith.constant 0 : index
    %c0_94 = arith.constant 0 : index
    %366 = vector.load %arg12[%c1_92, %c0_93, %c0_94] : memref<2x8x32xf32, #tpu.memory_space<vmem>>, vector<1x8x32xf32>
    %367 = vector.shape_cast %366 : vector<1x8x32xf32> to vector<8x32xf32>
    %368 = vector.shape_cast %359 : vector<8x32xf32> to vector<1x8x32xf32>
    tpu.vector_store %arg12[%c1_92, %c0_93, %c0_94], %368 {strides = array<i32>} : memref<2x8x32xf32, #tpu.memory_space<vmem>>, vector<1x8x32xf32>,
    %c1_95 = arith.constant 1 : index
    %c0_96 = arith.constant 0 : index
    %c0_97 = arith.constant 0 : index
    %369 = vector.load %arg13[%c1_95, %c0_96, %c0_97] : memref<2x8x32xf32, #tpu.memory_space<vmem>>, vector<1x8x32xf32>
    %370 = vector.shape_cast %369 : vector<1x8x32xf32> to vector<8x32xf32>
    %371 = vector.shape_cast %357 : vector<8x32xf32> to vector<1x8x32xf32>
    tpu.vector_store %arg13[%c1_95, %c0_96, %c0_97], %371 {strides = array<i32>} : memref<2x8x32xf32, #tpu.memory_space<vmem>>, vector<1x8x32xf32>,
    %c0_i32_98 = arith.constant 0 : i32
    %372 = arith.cmpi eq, %arg1, %c0_i32_98 : i32
    %373 = arith.extui %372 : i1 to i32
    %c0_i32_99 = arith.constant 0 : i32
    %374 = arith.cmpi ne, %373, %c0_i32_99 : i32
    scf.if %374 {
      %c0_100 = arith.constant 0 : index
      %c0_101 = arith.constant 0 : index
      %375 = vector.load %arg9[%c0_100, %c0_101] : memref<32x128xf32, #tpu.memory_space<vmem>>, vector<32x128xf32>
      %cst_102 = arith.constant dense<0.000000e+00> : vector<8x128xf32>
      %376 = tpu.matmul %359, %375, %cst_102 {dimension_numbers = #tpu.dot_dimension_numbers<[1], [0], [0], [1], [0, 0, 1, 1], [], []>} : vector<8x32xf32>, vector<32x128xf32>, vector<8x128xf32> -> vector<8x128xf32>
      %c0_103 = arith.constant 0 : index
      %c0_104 = arith.constant 0 : index
      %377 = vector.load %arg10[%c0_103, %c0_104] : memref<1x128xf32, #tpu.memory_space<vmem>>, vector<1x128xf32>
      %378 = vector.broadcast %377 : vector<1x128xf32> to vector<8x128xf32>
      %379 = arith.addf %376, %378 : vector<8x128xf32>
      %c0_105 = arith.constant 0 : index
      %c0_106 = arith.constant 0 : index
      %380 = vector.load %arg11[%c0_105, %c0_106] : memref<8x128xf32, #tpu.memory_space<vmem>>, vector<8x128xf32>
      tpu.vector_store %arg11[%c0_105, %c0_106], %379 {strides = array<i32>} : memref<8x128xf32, #tpu.memory_space<vmem>>, vector<8x128xf32>,
    } else {
    }
    return
  }
  func.func @transform_0(%arg0: i32, %arg1: i32) -> (i32, i32, i32) {
    %c0_i32 = arith.constant 0 : i32
    %c0_i32_0 = arith.constant 0 : i32
    return %arg1, %arg0, %c0_i32 : i32, i32, i32
  }
  func.func @transform_1(%arg0: i32, %arg1: i32) -> (i32, i32) {
    %c0_i32 = arith.constant 0 : i32
    %c0_i32_0 = arith.constant 0 : i32
    %c0_i32_1 = arith.constant 0 : i32
    return %c0_i32, %c0_i32_0 : i32, i32
  }
  func.func @transform_2(%arg0: i32, %arg1: i32) -> (i32, i32) {
    %c0_i32 = arith.constant 0 : i32
    %c0_i32_0 = arith.constant 0 : i32
    %c0_i32_1 = arith.constant 0 : i32
    return %c0_i32, %c0_i32_0 : i32, i32
  }
  func.func @transform_3(%arg0: i32, %arg1: i32) -> (i32, i32) {
    %c0_i32 = arith.constant 0 : i32
    %c0_i32_0 = arith.constant 0 : i32
    %c0_i32_1 = arith.constant 0 : i32
    return %c0_i32, %c0_i32_0 : i32, i32
  }
  func.func @transform_4(%arg0: i32, %arg1: i32) -> (i32, i32) {
    %c0_i32 = arith.constant 0 : i32
    %c0_i32_0 = arith.constant 0 : i32
    %c0_i32_1 = arith.constant 0 : i32
    return %c0_i32, %c0_i32_0 : i32, i32
  }
  func.func @transform_5(%arg0: i32, %arg1: i32) -> (i32, i32) {
    %c0_i32 = arith.constant 0 : i32
    %c0_i32_0 = arith.constant 0 : i32
    %c0_i32_1 = arith.constant 0 : i32
    return %c0_i32, %c0_i32_0 : i32, i32
  }
  func.func @transform_6(%arg0: i32, %arg1: i32) -> (i32, i32) {
    %c0_i32 = arith.constant 0 : i32
    %c0_i32_0 = arith.constant 0 : i32
    %c0_i32_1 = arith.constant 0 : i32
    return %c0_i32, %c0_i32_0 : i32, i32
  }
  func.func @transform_7(%arg0: i32, %arg1: i32) -> (i32, i32) {
    %c0_i32 = arith.constant 0 : i32
    %c0_i32_0 = arith.constant 0 : i32
    %c0_i32_1 = arith.constant 0 : i32
    return %c0_i32, %c0_i32_0 : i32, i32
  }
  func.func @transform_8(%arg0: i32, %arg1: i32) -> (i32, i32) {
    %c0_i32 = arith.constant 0 : i32
    %c0_i32_0 = arith.constant 0 : i32
    %c0_i32_1 = arith.constant 0 : i32
    return %c0_i32, %c0_i32_0 : i32, i32
  }
  func.func @transform_9(%arg0: i32, %arg1: i32) -> (i32, i32) {
    %c0_i32 = arith.constant 0 : i32
    %c0_i32_0 = arith.constant 0 : i32
    return %arg0, %c0_i32 : i32, i32
  }
}

</mosaic_0001>

<bundles_post_ra>
// kernel: tpu_custom_call.1
= control target key start
LH: loop header
LB: loop body
LE: loop exit
PB: predicated region body
PF: predicated region fallthrough
CT: control target
= control target key end

     0   :  { %14 = vsyncpa [#allocation6], 0  ;;  %s4114_s0 = inlined_call_operand.hbm [shape: f32[8,8,16], index: 0, kind: input, shape index: {}]   ;;  %s4115_s1 = inlined_call_operand.hbm [shape: f32[16,128], index: 1, kind: input, shape index: {}]   ;;  %s4116_s2 = inlined_call_operand.vmem [shape: f32[1,128], index: 2, kind: input, shape index: {}]   ;;  %s4117_s3 = inlined_call_operand.hbm [shape: f32[32,128], index: 3, kind: input, shape index: {}]   ;;  %s4118_s4 = inlined_call_operand.hbm [shape: f32[32,128], index: 4, kind: input, shape index: {}]   ;;  %s4119_s5 = inlined_call_operand.hbm [shape: f32[32,128], index: 5, kind: input, shape index: {}]   ;;  %s4120_s6 = inlined_call_operand.vmem [shape: f32[1,128], index: 6, kind: input, shape index: {}]   ;;  %s4121_s7 = inlined_call_operand.hbm [shape: f32[32,128], index: 7, kind: input, shape index: {}]   ;;  %s4122_s8 = inlined_call_operand.vmem [shape: f32[1,128], index: 8, kind: input, shape index: {}]   ;;  %s4123_s9 = inlined_call_operand.hbm [shape: f32[8,128], index: 9, kind: output, shape index: {}]  }
   0x1   :  { %15 = vsyncpa [#allocation9], 0 }
   0x2   :  { %16 = vsyncpa [#allocation12], 0 }
   0x3   :  { %17 = vsyncpa [#allocation15], 0 }
   0x4   :  { %18 = vsyncpa [#allocation7], 0  ;;  %s3551_s30 = smov [#allocation8]   ;;  %s3552_s11 = smov [#allocation11]  }
   0x5   :  { %s36_s10 = sshll.u32 %s3551_s30, 4  ;;  %s62_s12 = sshll.u32 %s3552_s11, 4  ;;  %s37_s10 = int_to_ptr.vmem [resolvable:$true] %s36_s10  ;;  %s3616_s12 = int_to_ptr.vmem [resolvable:$true] %s62_s12 }
   0x6   :  { %s3387_s15 = scalar_lea.hbm %s4115_s1, 256 }
   0x7   :  { %p3388_p0 = scmp.ne.s32.totalorder %s4115_s1, %s3387_s15  ;;  %p3391_p1 = scmp.lt.u32.totalorder %s3387_s15, %s4115_s1 }
   0x9   :  { %p3393_p2 = pnand %p3391_p1, %p3388_p0 }
   0xb   :  { %3396 = shalt.err (!%p3393_p2)
}
   0xc   :  { %s3397_s20 = scalar_lea.vmem %s37_s10, 256  ;;  %p3402_p4 = scmp.lt.s32.totalorder %s37_s10, %s37_s10 }
   0xd   :  { %p3398_p3 = scmp.ne.s32.totalorder %s37_s10, %s3397_s20  ;;  %p3403_p5 = scmp.lt.s32.totalorder %s3397_s20, %s3397_s20 }
   0xf   :  { %p3404_p6 = por %p3403_p5, %p3402_p4 }
  0x11   :  { %p3405_p7 = pnand %p3404_p6, %p3398_p3 }
  0x13   :  { %3408 = shalt.err (!%p3405_p7)
}
  0x14   :  { %s3553_s21 = smov 128   ;;  %s3554_s22 = smov 8  }
  0x15   :  { %42 = dma.hbm_to_vmem [thread:$0]  %s4115_s1, 256, %s37_s10, [#allocation9], %s3553_s21, %s3553_s21, %s3554_s22  }
  0x16   :  { %s3409_s27 = scalar_lea.hbm %s4118_s4, 512 }
  0x17   :  { %p3410_p8 = scmp.ne.s32.totalorder %s4118_s4, %s3409_s27  ;;  %p3413_p9 = scmp.lt.u32.totalorder %s3409_s27, %s4118_s4 }
  0x19   :  { %p3415_p10 = pnand %p3413_p9, %p3410_p8 }
  0x1b   :  { %3418 = shalt.err (!%p3415_p10)
}
  0x1c   :  { %s3419_s13 = scalar_lea.vmem %s3616_s12, 512  ;;  %p3424_p12 = scmp.lt.s32.totalorder %s3616_s12, %s3616_s12 }
  0x1d   :  { %p3420_p11 = scmp.ne.s32.totalorder %s3616_s12, %s3419_s13  ;;  %p3425_p13 = scmp.lt.s32.totalorder %s3419_s13, %s3419_s13 }
  0x1f   :  { %p3426_p0 = por %p3425_p13, %p3424_p12 }
  0x21   :  { %p3427_p1 = pnand %p3426_p0, %p3420_p11 }
  0x23   :  { %3430 = shalt.err (!%p3427_p1)
}
  0x24   :  { %68 = dma.hbm_to_vmem [thread:$0]  %s4118_s4, 512, %s3616_s12, [#allocation12], %s3553_s21, %s3553_s21, %s3554_s22  }
  0x25   :  { %s3555_s14 = smov [#allocation5]   ;;  %s3556_s16 = smov [#allocation10]  }
  0x26   :  { %s24_s15 = sshll.u32 %s3555_s14, 4  ;;  %s50_s17 = sshll.u32 %s3556_s16, 4  ;;  %s25_s15 = int_to_ptr.vmem [resolvable:$true] %s24_s15  ;;  %s3653_s17 = int_to_ptr.vmem [resolvable:$true] %s50_s17 }
  0x27   :  { %s3431_s20 = scalar_lea.hbm %s4114_s0, 1024 }
  0x28   :  { %p3432_p2 = scmp.ne.s32.totalorder %s4114_s0, %s3431_s20  ;;  %p3435_p3 = scmp.lt.u32.totalorder %s3431_s20, %s4114_s0 }
  0x2a   :  { %p3437_p4 = pnand %p3435_p3, %p3432_p2 }
  0x2c   :  { %3440 = shalt.err (!%p3437_p4)
}
  0x2d   :  { %s3441_s4 = scalar_lea.vmem %s25_s15, 1024  ;;  %p3446_p6 = scmp.lt.s32.totalorder %s25_s15, %s25_s15 }
  0x2e   :  { %p3442_p5 = scmp.ne.s32.totalorder %s25_s15, %s3441_s4  ;;  %p3447_p7 = scmp.lt.s32.totalorder %s3441_s4, %s3441_s4 }
  0x30   :  { %p3448_p8 = por %p3447_p7, %p3446_p6 }
  0x32   :  { %p3449_p9 = pnand %p3448_p8, %p3442_p5 }
  0x34   :  { %3452 = shalt.err (!%p3449_p9)
}
  0x35   :  { %30 = dma.hbm_to_vmem [thread:$0]  %s4114_s0, 1024, %s25_s15, [#allocation6], %s3553_s21, %s3553_s21, %s3554_s22  }
  0x36   :  { %s3453_s30 = scalar_lea.hbm %s4117_s3, 512 }
  0x37   :  { %p3454_p10 = scmp.ne.s32.totalorder %s4117_s3, %s3453_s30  ;;  %p3457_p11 = scmp.lt.u32.totalorder %s3453_s30, %s4117_s3 }
  0x39   :  { %p3459_p12 = pnand %p3457_p11, %p3454_p10 }
  0x3b   :  { %3462 = shalt.err (!%p3459_p12)
}
  0x3c   :  { %s3463_s14 = scalar_lea.vmem %s3653_s17, 512  ;;  %p3468_p0 = scmp.lt.s32.totalorder %s3653_s17, %s3653_s17 }
  0x3d   :  { %p3464_p13 = scmp.ne.s32.totalorder %s3653_s17, %s3463_s14  ;;  %p3469_p1 = scmp.lt.s32.totalorder %s3463_s14, %s3463_s14 }
  0x3f   :  { %p3470_p2 = por %p3469_p1, %p3468_p0 }
  0x41   :  { %p3471_p3 = pnand %p3470_p2, %p3464_p13 }
  0x43   :  { %3474 = shalt.err (!%p3471_p3)
}
  0x44   :  { %56 = dma.hbm_to_vmem [thread:$0]  %s4117_s3, 512, %s3653_s17, [#allocation9], %s3553_s21, %s3553_s21, %s3554_s22  }
  0x45   :  { %s3557_s16 = smov [#allocation13]   ;;  %s3558_s19 = smov [#allocation14]  }
  0x46   :  { %s74_s18 = sshll.u32 %s3557_s16, 4  ;;  %s88_s20 = sshll.u32 %s3558_s19, 4  ;;  %s75_s18 = int_to_ptr.vmem [resolvable:$true] %s74_s18  ;;  %s3690_s20 = int_to_ptr.vmem [resolvable:$true] %s88_s20 }
  0x47   :  { %s3475_s25 = scalar_lea.hbm %s4119_s5, 512 }
  0x48   :  { %p3476_p4 = scmp.ne.s32.totalorder %s4119_s5, %s3475_s25  ;;  %p3479_p5 = scmp.lt.u32.totalorder %s3475_s25, %s4119_s5 }
  0x4a   :  { %p3481_p6 = pnand %p3479_p5, %p3476_p4 }
  0x4c   :  { %3484 = shalt.err (!%p3481_p6)
}
  0x4d   :  { %s3485_s3 = scalar_lea.vmem %s75_s18, 512  ;;  %p3490_p8 = scmp.lt.s32.totalorder %s75_s18, %s75_s18 }
  0x4e   :  { %p3486_p7 = scmp.ne.s32.totalorder %s75_s18, %s3485_s3  ;;  %p3491_p9 = scmp.lt.s32.totalorder %s3485_s3, %s3485_s3 }
  0x50   :  { %p3492_p10 = por %p3491_p9, %p3490_p8 }
  0x52   :  { %p3493_p11 = pnand %p3492_p10, %p3486_p7 }
  0x54   :  { %3496 = shalt.err (!%p3493_p11)
}
  0x55   :  { %80 = dma.hbm_to_vmem [thread:$0]  %s4119_s5, 512, %s75_s18, [#allocation12], %s3553_s21, %s3553_s21, %s3554_s22  }
  0x56   :  { %s3497_s11 = scalar_lea.hbm %s4121_s7, 512 }
  0x57   :  { %p3498_p12 = scmp.ne.s32.totalorder %s4121_s7, %s3497_s11  ;;  %p3501_p13 = scmp.lt.u32.totalorder %s3497_s11, %s4121_s7 }
  0x59   :  { %p3503_p0 = pnand %p3501_p13, %p3498_p12 }
  0x5b   :  { %3506 = shalt.err (!%p3503_p0)
}
  0x5c   :  { %s3507_s0 = scalar_lea.vmem %s3690_s20, 512  ;;  %p3512_p2 = scmp.lt.s32.totalorder %s3690_s20, %s3690_s20 }
  0x5d   :  { %p3508_p1 = scmp.ne.s32.totalorder %s3690_s20, %s3507_s0  ;;  %p3513_p3 = scmp.lt.s32.totalorder %s3507_s0, %s3507_s0 }
  0x5f   :  { %p3514_p4 = por %p3513_p3, %p3512_p2 }
  0x61   :  { %p3515_p5 = pnand %p3514_p4, %p3508_p1 }
  0x63   :  { %3518 = shalt.err (!%p3515_p5)
}
  0x64   :  { %94 = dma.hbm_to_vmem [thread:$0]  %s4121_s7, 512, %s3690_s20, [#allocation15], %s3553_s21, %s3553_s21, %s3554_s22  }
  0x65   :  { %3541 = dma.done.wait [#allocation6], 1024  }
  0x66   :  { %3542 = vsyncadd [#allocation6], 4294966272 }
  0x67   :  { %3543 = dma.done.wait [#allocation9], 768  }
  0x68   :  { %3544 = vsyncadd [#allocation9], 4294966528 }
  0x69   :  { %3545 = dma.done.wait [#allocation12], 1024  }
  0x6a   :  { %3546 = vsyncadd [#allocation12], 4294966272 }
  0x6b   :  { %3547 = dma.done.wait [#allocation15], 512  }
  0x6c   :  { %3548 = vsyncadd [#allocation15], 4294966784  ;;  %v3559_v0 = vmov 0.0|0.0   ;;  %vm3560_vm0 = vmmov 0   ;;  %v3561_v1 = vmov 0.0   ;;  %vm119_vm1 = vcmask 261120  }
  0x6d   :  { %3093 = vmatprep.subr.bf16.mxu1 %v3559_v0  ;;  %2822 = vmatprep.mubr.msk.f32.mxu1 %vm3560_vm0, %v3561_v1  ;;  %120 = vst.msk [vmem:[#allocation2] sm:$0xff] %vm119_vm1, %v3561_v1  ;;  %121 = vst.msk [vmem:[#allocation2 + $0x8] sm:$0xff] %vm119_vm1, %v3561_v1  ;;  %vm141_vm2 = vcmask 130048   ;;  %v132_v2 = vld [vmem:[#allocation8] sm:$0xff]  ;;  %v133_v3 = vld [vmem:[#allocation8 + $0x8] sm:$0xff]  ;;  %s3562_s22 = smov 32  }
  0x6e   :  { %122 = vst.msk [vmem:[#allocation3] sm:$0xff] %vm119_vm1, %v3561_v1  ;;  %123 = vst.msk [vmem:[#allocation3 + $0x8] sm:$0xff] %vm119_vm1, %v3561_v1  ;;  %v279_v4 = vld [vmem:[#allocation10] sm:$0xff]  ;;  %v3089_v5 = vpack.c.bf16 %v133_v3, %v132_v2  ;;  %v280_v6 = vld [vmem:[#allocation10 + $0x8] sm:$0xff]  ;;  %s3563_s16 = smov 64   ;;  %s3565_s25 = smov [#allocation16]  }
  0x6f   :  { %v124_v7 = vld [vmem:[#allocation5] sm:$0xff]  ;;  %v3738_v8 = vpack.c.bf16 %v280_v6, %v279_v4  ;;  %v282_v10 = vld [vmem:[#allocation10 + $0x18] sm:$0xff]  ;;  %v283_v33 = vld [vmem:[#allocation11] sm:$0xff]  ;;  %s2599_s26 = sshll.u32 %s3565_s25, 4  ;;  %s2600_s26 = int_to_ptr.vmem [resolvable:$true] %s2599_s26 }
  0x70   :  { %2802 = vmatprep.mubr.msk.f32.mxu0 %vm141_vm2, %v124_v7  ;;  %v281_v9 = vld [vmem:[#allocation10 + $0x10] sm:$0xff]  ;;  %3090 = vmatprep.subr.bf16.mxu0 %v3089_v5  ;;  %v125_v11 = vld [vmem:[#allocation5 + $0x8] sm:$0xff]  ;;  %v284_v34 = vld [vmem:[#allocation11 + $0x8] sm:$0xff]  ;;  %s3519_s4 = scalar_lea.vmem %s2600_s26, 128  ;;  %p3524_p7 = scmp.lt.s32.totalorder %s2600_s26, %s2600_s26 }
  0x71   :  { %3095 = vmatpush3.bf16.msra.mxu1 %v3738_v8  ;;  %3092 = vmatpush3.bf16.msra.mxu0 %v3089_v5  ;;  %v3742_v12 = vpack.c.bf16 %v282_v10, %v281_v9  ;;  %v3755_v14 = vld [vmem:[%s4116_s2] ss:$0 sm:$0xff]  ;;  %v287_v35 = vld [vmem:[#allocation13] sm:$0xff]  ;;  %v3766_v36 = vpack.c.bf16 %v284_v34, %v283_v33  ;;  %v288_v37 = vld [vmem:[#allocation13 + $0x8] sm:$0xff]  ;;  %p3520_p6 = scmp.ne.s32.totalorder %s2600_s26, %s3519_s4  ;;  %p3525_p8 = scmp.lt.s32.totalorder %s3519_s4, %s3519_s4 }
  0x72   :  { %3096 = vmatprep.subr.bf16.mxu1 %v3559_v0  ;;  %3105 = vmatprep.subr.bf16.mxu0 %v3559_v0  ;;  %v126_v38 = vld [vmem:[#allocation5 + $0x10] sm:$0xff]  ;;  %v127_v39 = vld [vmem:[#allocation5 + $0x18] sm:$0xff]  ;;  %v3768_v40 = vpack.c.bf16 %v288_v37, %v287_v35  ;;  %v289_v41 = vld [vmem:[#allocation13 + $0x10] sm:$0xff] }
  0x73   :  { %v290_v42 = vld [vmem:[#allocation13 + $0x18] sm:$0xff]  ;;  %v128_v43 = vld [vmem:[#allocation5 + $0x20] sm:$0xff]  ;;  %v130_v49 = vld [vmem:[#allocation5 + $0x30] sm:$0xff]  ;;  %p3526_p9 = por %p3525_p8, %p3524_p7 }
  0x74   :  { %2803 = vmatmul.mubr.msk.f32.vlgmr.msra.gmra.mrb[0].mxu0 %vm141_vm2, %v125_v11  ;;  %v292_v13 = vld [vmem:[#allocation2] sm:$0xff]  ;;  %v286_v45 = vld [vmem:[#allocation11 + $0x18] sm:$0xff]  ;;  %v3774_v46 = vpack.c.bf16 %v290_v42, %v289_v41  ;;  %v131_v51 = vld [vmem:[#allocation5 + $0x38] sm:$0xff] }
  0x75   :  { %3098 = vmatpush3.bf16.msra.mxu1 %v3742_v12  ;;  %v295_v22 = vld [vmem:[#allocation3] sm:$0xff]  ;;  %2805 = vmatprep.mubr.msk.f32.mxu0 %vm141_vm2, %v126_v38  ;;  %v285_v44 = vld [vmem:[#allocation11 + $0x10] sm:$0xff]  ;;  %v129_v48 = vld [vmem:[#allocation5 + $0x28] sm:$0xff]  ;;  %p3527_p10 = pnand %p3526_p9, %p3520_p6 }
  0x76   :  { %3099 = vmatprep.subr.bf16.mxu1 %v3559_v0  ;;  %3107 = vmatpush3.bf16.msra.mxu0 %v3766_v36  ;;  %v3776_v47 = vpack.c.bf16 %v286_v45, %v285_v44  ;;  %v294_v50 = vld [vmem:[#allocation2 + $0x8] sm:$0xff]  ;;  %v3830_v3 = vld [vmem:[%s4120_s6] ss:$0 sm:$0xff] }
  0x77   :  { %3108 = vmatprep.subr.bf16.mxu0 %v3559_v0 }
  0x78   :  { %2823 = vmatmul.mubr.msk.f32.vlgmr.msra.gmra.mrb[0].mxu1 %vm119_vm1, %v292_v13  ;;  %2806 = vmatmul.mubr.msk.f32.gmra.mrb[2].mxu0 %vm141_vm2, %v127_v39 }
  0x79   :  { %2833 = vmatprep.mubr.msk.f32.mxu1 %vm3560_vm0, %v3561_v1  ;;  %3101 = vmatpush3.bf16.msra.mxu1 %v3768_v40 }
  0x7a   :  { %3102 = vmatprep.subr.bf16.mxu1 %v3559_v0  ;;  %2808 = vmatprep.mubr.msk.f32.mxu0 %vm141_vm2, %v128_v43 }
  0x7b   :  { %3110 = vmatpush3.bf16.msra.mxu0 %v3776_v47 }
  0x7c   :  { %2809 = vmatmul.mubr.msk.f32.gmra.mrb[4].mxu0 %vm141_vm2, %v129_v48  ;;  %3117 = vmatprep.subr.bf16.mxu0 %v3559_v0 }
  0x7d   :  { %3104 = vmatpush3.bf16.msra.mxu1 %v3774_v46  ;;  %2811 = vmatprep.mubr.msk.f32.mxu0 %vm141_vm2, %v130_v49 }
  0x7e   :  { %3111 = vmatprep.subr.bf16.mxu1 %v3559_v0 }
  0x80   :  { %2834 = vmatmul.mubr.msk.f32.vlgmr.msra.gmra.mrb[2].mxu1 %vm119_vm1, %v294_v50  ;;  %2812 = vmatmul.mubr.msk.f32.gmra.mrb[6].mxu0 %vm141_vm2, %v131_v51 }
  0x81   :  { %3113 = vmatpush3.bf16.msra.mxu1 %v3738_v8  ;;  %2844 = vmatprep.mubr.msk.f32.mxu0 %vm3560_vm0, %v3561_v1 }
  0x82   :  { %3114 = vmatprep.subr.bf16.mxu1 %v3559_v0  ;;  %2855 = vmatprep.mubr.msk.f32.mxu1 %vm3560_vm0, %v3561_v1 }
  0x85   :  { %3116 = vmatpush3.bf16.msra.mxu1 %v3742_v12 }
  0x86   :  { %3123 = vmatprep.subr.bf16.mxu1 %v3559_v0 }
 0x147   :  { %v3757_v15 = vpop.f32.mrb[0].mxu0 }
 0x148   :  { %v232_v16 = vpop.f32.mrb[1].mxu0  ;;  %v238_v2 = vadd.f32 %v3757_v15, %v3755_v14  ;;  %v297_v15 = vld [vmem:[#allocation3 + $0x8] sm:$0xff] }
 0x149   :  { %v233_v17 = vadd.f32 %v3755_v14, %v232_v16 }
 0x14b   :  { %v369_v18 = vpop.f32.mrb[0].mxu1  ;;  %v3799_v55 = vpop.f32.mrb[2].mxu0 }
 0x14c   :  { %v373_v19 = vadd.f32 %v369_v18, %v233_v17  ;;  %v2824_v20 = vpop.f32.mrb[1].mxu1  ;;  %v3801_v56 = vpop.f32.mrb[3].mxu0 }
 0x14e   :  { %3258 = vtanh.f32 %v373_v19  ;;  %v2621_v23 = vmul.f32 -1.442695, %v373_v19 }
 0x14f   :  { %v3803_v57 = vpop.f32.mrb[4].mxu0 }
 0x150   :  { %3260 = vpow2.f32 %v2621_v23  ;;  %v3805_v58 = vpop.f32.mrb[5].mxu0 }
 0x153   :  { %v471_v59 = vpop.f32.mrb[2].mxu1  ;;  %v3807_v60 = vpop.f32.mrb[6].mxu0 }
 0x154   :  { %v2835_v61 = vpop.f32.mrb[3].mxu1  ;;  %v3809_v62 = vpop.f32.mrb[7].mxu0 }
 0x158   :  { %v3259_v21 = vpop.eup %3258 }
 0x159   :  { %387 = vrot.lane.b32.xlu0 %v3259_v21, %s3562_s22 }
 0x15a   :  { %v3261_v24 = vpop.eup %3260 }
 0x15b   :  { %v377_v25 = vadd.f32 1.0, %v3261_v24 }
 0x15d   :  { %382 = vrot.lane.b32.xlu0 %v295_v22, %s3562_s22  ;;  %3262 = vrcp.f32 %v377_v25 }
 0x167   :  { %v3263_v26 = vpop.eup %3262 }
 0x1cb   :  { %v388_v27 = vpop.permute.xlu0 %387 }
 0x1cc   :  { %v390_v28 = vmul.f32 %v3263_v26, %v388_v27 }
 0x1ce   :  { %392 = vrot.lane.b32.xlu1 %v390_v28, %s3562_s22 }
 0x1cf   :  { %v383_v29 = vpop.permute.xlu0 %382 }
 0x1d0   :  { %v385_v30 = vmul.f32 %v3263_v26, %v383_v29 }
 0x240   :  { %v393_v31 = vpop.permute.xlu1 %392 }
 0x241   :  { %v3763_v32 = vadd.f32 %v393_v31, %v385_v30 }
 0x243   :  { %3264 = vtanh.f32 %v3763_v32 }
 0x24d   :  { %v3265_v52 = vpop.eup %3264 }
 0x24e   :  { %398 = vrot.lane.b32.xlu1 %v3265_v52, %s3562_s22 }
 0x2c0   :  { %v399_v53 = vpop.permute.xlu1 %398 }
 0x2c1   :  { %v401_v54 = vmul.f32 %v3263_v26, %v399_v53 }
 0x2c3   :  { %476 = vrot.lane.b32.xlu0 %v401_v54, %s3563_s16  ;;  %v243_v54 = vadd.f32 %v3755_v14, %v3801_v56 }
 0x335   :  { %v477_v63 = vpop.permute.xlu0 %476 }
 0x336   :  { %2845 = vmatmul.mubr.msk.f32.vlgmr.msra.gmra.mrb[8].mxu0 %vm119_vm1, %v477_v63  ;;  %2856 = vmatmul.mubr.msk.f32.vlgmr.msra.gmra.mrb[4].mxu1 %vm119_vm1, %v477_v63 }
 0x337   :  { %3125 = vmatpush3.bf16.msra.mxu1 %v3766_v36  ;;  %3119 = vmatpush3.bf16.msra.mxu0 %v3768_v40 }
 0x338   :  { %3126 = vmatprep.subr.bf16.mxu1 %v3559_v0  ;;  %3120 = vmatprep.subr.bf16.mxu0 %v3559_v0 }
 0x339   :  { %2877 = vmatprep.mubr.msk.f32.mxu1 %vm3560_vm0, %v3561_v1  ;;  %2866 = vmatprep.mubr.msk.f32.mxu0 %vm3560_vm0, %v3561_v1 }
 0x33b   :  { %3128 = vmatpush3.bf16.msra.mxu1 %v3776_v47  ;;  %3122 = vmatpush3.bf16.msra.mxu0 %v3774_v46 }
 0x33c   :  { %3129 = vmatprep.subr.bf16.mxu0 %v3559_v0  ;;  %3135 = vmatprep.subr.bf16.mxu1 %v3559_v0 }
 0x409   :  { %v546_v4 = vpop.f32.mrb[8].mxu0  ;;  %v653_v5 = vpop.f32.mrb[4].mxu1 }
 0x40a   :  { %v547_v6 = vadd.f32 %v546_v4, %v471_v59  ;;  %v657_v7 = vadd.f32 %v653_v5, %v238_v2  ;;  %v2846_v9 = vpop.f32.mrb[9].mxu0  ;;  %v2857_v10 = vpop.f32.mrb[5].mxu1 }
 0x40c   :  { %v556_v11 = vadd.f32 %v3830_v3, %v547_v6  ;;  %3266 = vtanh.f32 %v657_v7  ;;  %v2627_v17 = vmul.f32 -1.442695, %v657_v7 }
 0x40e   :  { %3268 = vtanh.f32 %v556_v11  ;;  %v2625_v18 = vmul.f32 -1.442695, %v556_v11 }
 0x40f   :  { %3270 = vpow2.f32 %v2627_v17 }
 0x410   :  { %3272 = vpow2.f32 %v2625_v18 }
 0x416   :  { %v3267_v13 = vpop.eup %3266 }
 0x417   :  { %667 = vrot.lane.b32.xlu0 %v3267_v13, %s3562_s22 }
 0x418   :  { %v3269_v16 = vpop.eup %3268 }
 0x419   :  { %570 = vrot.lane.b32.xlu1 %v3269_v16, %s3562_s22  ;;  %v3271_v19 = vpop.eup %3270 }
 0x41a   :  { %v3273_v20 = vpop.eup %3272  ;;  %v661_v21 = vadd.f32 1.0, %v3271_v19 }
 0x41b   :  { %v560_v22 = vadd.f32 1.0, %v3273_v20 }
 0x41c   :  { %3274 = vrcp.f32 %v661_v21 }
 0x41d   :  { %565 = vrot.lane.b32.xlu1 %v297_v15, %s3562_s22  ;;  %3276 = vrcp.f32 %v560_v22 }
 0x426   :  { %v3275_v23 = vpop.eup %3274 }
 0x427   :  { %v3277_v26 = vpop.eup %3276  ;;  %v665_v30 = vmul.f32 %v3275_v23, %v3763_v32 }
 0x489   :  { %v668_v24 = vpop.permute.xlu0 %667 }
 0x48a   :  { %v670_v25 = vmul.f32 %v3275_v23, %v668_v24 }
 0x48b   :  { %v571_v27 = vpop.permute.xlu1 %570 }
 0x48c   :  { %v573_v28 = vmul.f32 %v3277_v26, %v571_v27  ;;  %672 = vrot.lane.b32.xlu1 %v670_v25, %s3562_s22 }
 0x48e   :  { %575 = vrot.lane.b32.xlu0 %v573_v28, %s3562_s22 }
 0x48f   :  { %v566_v29 = vpop.permute.xlu1 %565 }
 0x490   :  { %v568_v33 = vmul.f32 %v3277_v26, %v566_v29 }
 0x4fe   :  { %v673_v31 = vpop.permute.xlu1 %672 }
 0x4ff   :  { %v3839_v34 = vadd.f32 %v673_v31, %v665_v30 }
 0x500   :  { %v576_v35 = vpop.permute.xlu0 %575 }
 0x501   :  { %3278 = vtanh.f32 %v3839_v34  ;;  %v3842_v37 = vadd.f32 %v576_v35, %v568_v33 }
 0x503   :  { %3280 = vtanh.f32 %v3842_v37 }
 0x50b   :  { %v3279_v38 = vpop.eup %3278 }
 0x50c   :  { %678 = vrot.lane.b32.xlu1 %v3279_v38, %s3562_s22  ;;  %v248_v38 = vadd.f32 %v3799_v55, %v3755_v14 }
 0x50d   :  { %v3281_v39 = vpop.eup %3280 }
 0x50e   :  { %581 = vrot.lane.b32.xlu0 %v3281_v39, %s3562_s22 }
 0x57e   :  { %v679_v41 = vpop.permute.xlu1 %678 }
 0x57f   :  { %v681_v42 = vmul.f32 %v3275_v23, %v679_v41 }
 0x580   :  { %v582_v32 = vpop.permute.xlu0 %581 }
 0x581   :  { %v584_v43 = vmul.f32 %v3277_v26, %v582_v32  ;;  %758 = vrot.lane.b32.xlu1 %v681_v42, %s3563_s16 }
 0x583   :  { %683 = vrot.lane.b32.xlu0 %v584_v43, %s3563_s16 }
 0x5f3   :  { %v759_v44 = vpop.permute.xlu1 %758 }
 0x5f4   :  { %2878 = vmatmul.mubr.msk.f32.vlgmr.msra.gmra.mrb[6].mxu1 %vm119_vm1, %v759_v44 }
 0x5f5   :  { %v684_v45 = vpop.permute.xlu0 %683  ;;  %3137 = vmatpush3.bf16.msra.mxu1 %v3768_v40  ;;  %2899 = vmatprep.mubr.msk.f32.mxu1 %vm3560_vm0, %v3561_v1 }
 0x5f6   :  { %2867 = vmatmul.mubr.msk.f32.vlgmr.msra.gmra.mrb[10].mxu0 %vm119_vm1, %v684_v45  ;;  %3138 = vmatprep.subr.bf16.mxu1 %v3559_v0 }
 0x5f7   :  { %3131 = vmatpush3.bf16.msra.mxu0 %v3738_v8  ;;  %2888 = vmatprep.mubr.msk.f32.mxu0 %vm3560_vm0, %v3561_v1 }
 0x5f8   :  { %3132 = vmatprep.subr.bf16.mxu0 %v3559_v0 }
 0x5f9   :  { %3140 = vmatpush3.bf16.msra.mxu1 %v3774_v46 }
 0x5fa   :  { %3147 = vmatprep.subr.bf16.mxu1 %v3559_v0 }
 0x5fb   :  { %3134 = vmatpush3.bf16.msra.mxu0 %v3742_v12 }
 0x5fc   :  { %3141 = vmatprep.subr.bf16.mxu0 %v3559_v0 }
 0x5fe   :  { %2889 = vmatmul.mubr.msk.f32.vlgmr.msra.gmra.mrb[12].mxu0 %vm119_vm1, %v759_v44 }
 0x5ff   :  { %3143 = vmatpush3.bf16.msra.mxu0 %v3766_v36  ;;  %2910 = vmatprep.mubr.msk.f32.mxu0 %vm3560_vm0, %v3561_v1 }
 0x600   :  { %3144 = vmatprep.subr.bf16.mxu0 %v3559_v0 }
 0x603   :  { %3146 = vmatpush3.bf16.msra.mxu0 %v3776_v47 }
 0x604   :  { %3153 = vmatprep.subr.bf16.mxu0 %v3559_v0 }
 0x6c7   :  { %v828_v48 = vpop.f32.mrb[6].mxu1 }
 0x6c8   :  { %v2879_v49 = vpop.f32.mrb[7].mxu1 }
 0x6c9   :  { %v753_v50 = vpop.f32.mrb[10].mxu0 }
 0x6ca   :  { %v829_v51 = vadd.f32 %v828_v48, %v753_v50  ;;  %v2868_v52 = vpop.f32.mrb[11].mxu0 }
 0x6cc   :  { %v832_v53 = vadd.f32 %v3830_v3, %v829_v51 }
 0x6ce   :  { %3282 = vtanh.f32 %v832_v53  ;;  %v2630_v5 = vmul.f32 -1.442695, %v832_v53 }
 0x6d1   :  { %v925_v59 = vpop.f32.mrb[12].mxu0 }
 0x6d2   :  { %v929_v61 = vadd.f32 %v925_v59, %v243_v54  ;;  %v2890_v63 = vpop.f32.mrb[13].mxu0 }
 0x6d4   :  { %3284 = vtanh.f32 %v929_v61  ;;  %v2632_v6 = vmul.f32 -1.442695, %v929_v61 }
 0x6d5   :  { %3286 = vpow2.f32 %v2630_v5 }
 0x6d6   :  { %3288 = vpow2.f32 %v2632_v6 }
 0x6d8   :  { %v3283_v2 = vpop.eup %3282 }
 0x6d9   :  { %842 = vrot.lane.b32.xlu0 %v3283_v2, %s3562_s22 }
 0x6de   :  { %v3285_v4 = vpop.eup %3284 }
 0x6df   :  { %939 = vrot.lane.b32.xlu1 %v3285_v4, %s3562_s22  ;;  %v3287_v7 = vpop.eup %3286 }
 0x6e0   :  { %v836_v9 = vadd.f32 1.0, %v3287_v7  ;;  %v3289_v10 = vpop.eup %3288 }
 0x6e1   :  { %v933_v11 = vadd.f32 1.0, %v3289_v10 }
 0x6e2   :  { %3290 = vrcp.f32 %v836_v9 }
 0x6e3   :  { %3292 = vrcp.f32 %v933_v11 }
 0x6ec   :  { %v3291_v56 = vpop.eup %3290 }
 0x6ed   :  { %v3293_v15 = vpop.eup %3292  ;;  %v840_v19 = vmul.f32 %v3291_v56, %v3842_v37 }
 0x6ee   :  { %v937_v22 = vmul.f32 %v3293_v15, %v3839_v34 }
 0x74b   :  { %v843_v13 = vpop.permute.xlu0 %842 }
 0x74c   :  { %v845_v16 = vmul.f32 %v3291_v56, %v843_v13 }
 0x74e   :  { %847 = vrot.lane.b32.xlu0 %v845_v16, %s3562_s22 }
 0x751   :  { %v940_v17 = vpop.permute.xlu1 %939 }
 0x752   :  { %v942_v18 = vmul.f32 %v3293_v15, %v940_v17 }
 0x754   :  { %944 = vrot.lane.b32.xlu1 %v942_v18, %s3562_s22 }
 0x7c0   :  { %v848_v20 = vpop.permute.xlu0 %847 }
 0x7c1   :  { %v3878_v21 = vadd.f32 %v848_v20, %v840_v19 }
 0x7c3   :  { %3294 = vtanh.f32 %v3878_v21 }
 0x7c6   :  { %v945_v23 = vpop.permute.xlu1 %944 }
 0x7c7   :  { %v3882_v24 = vadd.f32 %v945_v23, %v937_v22 }
 0x7c9   :  { %3296 = vtanh.f32 %v3882_v24 }
 0x7cd   :  { %v3295_v25 = vpop.eup %3294 }
 0x7ce   :  { %853 = vrot.lane.b32.xlu0 %v3295_v25, %s3562_s22 }
 0x7d3   :  { %v3297_v26 = vpop.eup %3296 }
 0x7d4   :  { %950 = vrot.lane.b32.xlu1 %v3297_v26, %s3562_s22 }
 0x840   :  { %v854_v27 = vpop.permute.xlu0 %853 }
 0x841   :  { %v856_v28 = vmul.f32 %v3291_v56, %v854_v27  ;;  %v253_v27 = vadd.f32 %v3755_v14, %v3805_v58 }
 0x843   :  { %955 = vrot.lane.b32.xlu0 %v856_v28, %s3563_s16 }
 0x846   :  { %v951_v29 = vpop.permute.xlu1 %950 }
 0x847   :  { %v953_v30 = vmul.f32 %v3293_v15, %v951_v29 }
 0x849   :  { %1030 = vrot.lane.b32.xlu1 %v953_v30, %s3563_s16 }
 0x8b5   :  { %v956_v31 = vpop.permute.xlu0 %955 }
 0x8b6   :  { %2900 = vmatmul.mubr.msk.f32.vlgmr.msra.gmra.mrb[8].mxu1 %vm119_vm1, %v956_v31 }
 0x8b7   :  { %3149 = vmatpush3.bf16.msra.mxu1 %v3738_v8  ;;  %2921 = vmatprep.mubr.msk.f32.mxu1 %vm3560_vm0, %v3561_v1 }
 0x8b8   :  { %3150 = vmatprep.subr.bf16.mxu1 %v3559_v0 }
 0x8bb   :  { %v1031_v33 = vpop.permute.xlu1 %1030  ;;  %3152 = vmatpush3.bf16.msra.mxu1 %v3742_v12 }
 0x8bc   :  { %2911 = vmatmul.mubr.msk.f32.vlgmr.msra.gmra.mrb[14].mxu0 %vm119_vm1, %v1031_v33  ;;  %3159 = vmatprep.subr.bf16.mxu1 %v3559_v0 }
 0x8bd   :  { %3155 = vmatpush3.bf16.msra.mxu0 %v3768_v40  ;;  %2932 = vmatprep.mubr.msk.f32.mxu0 %vm3560_vm0, %v3561_v1 }
 0x8be   :  { %2922 = vmatmul.mubr.msk.f32.vlgmr.msra.gmra.mrb[10].mxu1 %vm119_vm1, %v1031_v33  ;;  %3156 = vmatprep.subr.bf16.mxu0 %v3559_v0 }
 0x8bf   :  { %3161 = vmatpush3.bf16.msra.mxu1 %v3766_v36  ;;  %2943 = vmatprep.mubr.msk.f32.mxu1 %vm3560_vm0, %v3561_v1 }
 0x8c0   :  { %3162 = vmatprep.subr.bf16.mxu1 %v3559_v0 }
 0x8c1   :  { %3158 = vmatpush3.bf16.msra.mxu0 %v3774_v46 }
 0x8c2   :  { %3165 = vmatprep.subr.bf16.mxu0 %v3559_v0 }
 0x8c3   :  { %3164 = vmatpush3.bf16.msra.mxu1 %v3776_v47 }
 0x8c4   :  { %3171 = vmatprep.subr.bf16.mxu1 %v3559_v0 }
 0x989   :  { %v1025_v34 = vpop.f32.mrb[8].mxu1 }
 0x98a   :  { %v2901_v35 = vpop.f32.mrb[9].mxu1 }
 0x98f   :  { %v1100_v37 = vpop.f32.mrb[14].mxu0 }
 0x990   :  { %v1101_v39 = vadd.f32 %v1100_v37, %v1025_v34  ;;  %v2912_v41 = vpop.f32.mrb[15].mxu0 }
 0x991   :  { %v1197_v42 = vpop.f32.mrb[10].mxu1 }
 0x992   :  { %v1104_v32 = vadd.f32 %v3830_v3, %v1101_v39  ;;  %v1201_v43 = vadd.f32 %v1197_v42, %v248_v38  ;;  %v2923_v44 = vpop.f32.mrb[11].mxu1 }
 0x994   :  { %3298 = vtanh.f32 %v1104_v32  ;;  %v2635_v49 = vmul.f32 -1.442695, %v1104_v32  ;;  %v2637_v50 = vmul.f32 -1.442695, %v1201_v43 }
 0x995   :  { %3300 = vtanh.f32 %v1201_v43 }
 0x996   :  { %3302 = vpow2.f32 %v2635_v49 }
 0x997   :  { %3304 = vpow2.f32 %v2637_v50 }
 0x99e   :  { %v3299_v45 = vpop.eup %3298 }
 0x99f   :  { %v3301_v48 = vpop.eup %3300  ;;  %1114 = vrot.lane.b32.xlu0 %v3299_v45, %s3562_s22 }
 0x9a0   :  { %1211 = vrot.lane.b32.xlu1 %v3301_v48, %s3562_s22  ;;  %v3303_v55 = vpop.eup %3302 }
 0x9a1   :  { %v3305_v51 = vpop.eup %3304  ;;  %v1108_v52 = vadd.f32 1.0, %v3303_v55 }
 0x9a2   :  { %v1205_v53 = vadd.f32 1.0, %v3305_v51 }
 0x9a3   :  { %3306 = vrcp.f32 %v1108_v52 }
 0x9a4   :  { %3308 = vrcp.f32 %v1205_v53 }
 0x9ad   :  { %v3307_v54 = vpop.eup %3306 }
 0x9ae   :  { %v3309_v61 = vpop.eup %3308  ;;  %v1112_v5 = vmul.f32 %v3307_v54, %v3878_v21 }
 0x9af   :  { %v1209_v7 = vmul.f32 %v3309_v61, %v3882_v24 }
 0xa11   :  { %v1115_v59 = vpop.permute.xlu0 %1114 }
 0xa12   :  { %v1117_v63 = vmul.f32 %v3307_v54, %v1115_v59  ;;  %v1212_v2 = vpop.permute.xlu1 %1211 }
 0xa13   :  { %v1214_v4 = vmul.f32 %v3309_v61, %v1212_v2 }
 0xa14   :  { %1119 = vrot.lane.b32.xlu0 %v1117_v63, %s3562_s22 }
 0xa15   :  { %1216 = vrot.lane.b32.xlu1 %v1214_v4, %s3562_s22 }
 0xa86   :  { %v1120_v6 = vpop.permute.xlu0 %1119 }
 0xa87   :  { %v3919_v9 = vadd.f32 %v1120_v6, %v1112_v5  ;;  %v1217_v10 = vpop.permute.xlu1 %1216 }
 0xa88   :  { %v3921_v11 = vadd.f32 %v1217_v10, %v1209_v7 }
 0xa89   :  { %3310 = vtanh.f32 %v3919_v9 }
 0xa8a   :  { %3312 = vtanh.f32 %v3921_v11 }
 0xa93   :  { %v3311_v56 = vpop.eup %3310 }
 0xa94   :  { %v3313_v13 = vpop.eup %3312  ;;  %1125 = vrot.lane.b32.xlu0 %v3311_v56, %s3562_s22  ;;  %v258_v56 = vadd.f32 %v3803_v57, %v3755_v14 }
 0xa95   :  { %1222 = vrot.lane.b32.xlu1 %v3313_v13, %s3562_s22 }
 0xb06   :  { %v1126_v16 = vpop.permute.xlu0 %1125 }
 0xb07   :  { %v1128_v15 = vmul.f32 %v3307_v54, %v1126_v16  ;;  %v1223_v17 = vpop.permute.xlu1 %1222 }
 0xb08   :  { %v1225_v18 = vmul.f32 %v3309_v61, %v1223_v17 }
 0xb09   :  { %1227 = vrot.lane.b32.xlu0 %v1128_v15, %s3563_s16 }
 0xb0a   :  { %1302 = vrot.lane.b32.xlu1 %v1225_v18, %s3563_s16 }
 0xb7b   :  { %v1228_v19 = vpop.permute.xlu0 %1227 }
 0xb7c   :  { %v1303_v20 = vpop.permute.xlu1 %1302  ;;  %2933 = vmatmul.mubr.msk.f32.vlgmr.msra.gmra.mrb[16].mxu0 %vm119_vm1, %v1228_v19 }
 0xb7d   :  { %2944 = vmatmul.mubr.msk.f32.vlgmr.msra.gmra.mrb[12].mxu1 %vm119_vm1, %v1303_v20  ;;  %3167 = vmatpush3.bf16.msra.mxu0 %v3738_v8 }
 0xb7e   :  { %3168 = vmatprep.subr.bf16.mxu0 %v3559_v0  ;;  %2954 = vmatprep.mubr.msk.f32.mxu0 %vm3560_vm0, %v3561_v1 }
 0xb7f   :  { %3173 = vmatpush3.bf16.msra.mxu1 %v3768_v40  ;;  %2965 = vmatprep.mubr.msk.f32.mxu1 %vm3560_vm0, %v3561_v1 }
 0xb80   :  { %3174 = vmatprep.subr.bf16.mxu1 %v3559_v0 }
 0xb81   :  { %3170 = vmatpush3.bf16.msra.mxu0 %v3742_v12 }
 0xb82   :  { %3177 = vmatprep.subr.bf16.mxu0 %v3559_v0 }
 0xb83   :  { %3176 = vmatpush3.bf16.msra.mxu1 %v3774_v46 }
 0xb84   :  { %2955 = vmatmul.mubr.msk.f32.vlgmr.msra.gmra.mrb[18].mxu0 %vm119_vm1, %v1303_v20  ;;  %3183 = vmatprep.subr.bf16.mxu1 %v3559_v0 }
 0xb85   :  { %3179 = vmatpush3.bf16.msra.mxu0 %v3766_v36  ;;  %2976 = vmatprep.mubr.msk.f32.mxu0 %vm3560_vm0, %v3561_v1 }
 0xb86   :  { %3180 = vmatprep.subr.bf16.mxu0 %v3559_v0 }
 0xb89   :  { %3182 = vmatpush3.bf16.msra.mxu0 %v3776_v47 }
 0xb8a   :  { %3189 = vmatprep.subr.bf16.mxu0 %v3559_v0 }
 0xc4f   :  { %v1297_v21 = vpop.f32.mrb[16].mxu0 }
 0xc50   :  { %v1372_v22 = vpop.f32.mrb[12].mxu1  ;;  %v2934_v23 = vpop.f32.mrb[17].mxu0 }
 0xc51   :  { %v1373_v24 = vadd.f32 %v1372_v22, %v1297_v21  ;;  %v2945_v25 = vpop.f32.mrb[13].mxu1 }
 0xc53   :  { %v1376_v26 = vadd.f32 %v3830_v3, %v1373_v24 }
 0xc55   :  { %3314 = vtanh.f32 %v1376_v26  ;;  %v2640_v34 = vmul.f32 -1.442695, %v1376_v26 }
 0xc57   :  { %v1469_v28 = vpop.f32.mrb[18].mxu0 }
 0xc58   :  { %v1473_v29 = vadd.f32 %v1469_v28, %v253_v27  ;;  %v2956_v30 = vpop.f32.mrb[19].mxu0 }
 0xc5a   :  { %3316 = vtanh.f32 %v1473_v29  ;;  %v2642_v35 = vmul.f32 -1.442695, %v1473_v29 }
 0xc5b   :  { %3318 = vpow2.f32 %v2640_v34 }
 0xc5c   :  { %3320 = vpow2.f32 %v2642_v35 }
 0xc5f   :  { %v3315_v31 = vpop.eup %3314 }
 0xc60   :  { %1386 = vrot.lane.b32.xlu0 %v3315_v31, %s3562_s22 }
 0xc64   :  { %v3317_v33 = vpop.eup %3316 }
 0xc65   :  { %1483 = vrot.lane.b32.xlu1 %v3317_v33, %s3562_s22  ;;  %v3319_v37 = vpop.eup %3318 }
 0xc66   :  { %v1380_v38 = vadd.f32 1.0, %v3319_v37  ;;  %v3321_v39 = vpop.eup %3320 }
 0xc67   :  { %v1477_v41 = vadd.f32 1.0, %v3321_v39 }
 0xc68   :  { %3322 = vrcp.f32 %v1380_v38 }
 0xc69   :  { %3324 = vrcp.f32 %v1477_v41 }
 0xc72   :  { %v3323_v58 = vpop.eup %3322 }
 0xc73   :  { %v3325_v43 = vpop.eup %3324  ;;  %v1384_v48 = vmul.f32 %v3323_v58, %v3919_v9 }
 0xc74   :  { %v1481_v55 = vmul.f32 %v3325_v43, %v3921_v11 }
 0xcd2   :  { %v1387_v42 = vpop.permute.xlu0 %1386 }
 0xcd3   :  { %v1389_v32 = vmul.f32 %v3323_v58, %v1387_v42 }
 0xcd5   :  { %1391 = vrot.lane.b32.xlu0 %v1389_v32, %s3562_s22 }
 0xcd7   :  { %v1484_v44 = vpop.permute.xlu1 %1483 }
 0xcd8   :  { %v1486_v45 = vmul.f32 %v3325_v43, %v1484_v44 }
 0xcda   :  { %1488 = vrot.lane.b32.xlu1 %v1486_v45, %s3562_s22 }
 0xd47   :  { %v1392_v49 = vpop.permute.xlu0 %1391 }
 0xd48   :  { %v3958_v50 = vadd.f32 %v1392_v49, %v1384_v48 }
 0xd4a   :  { %3326 = vtanh.f32 %v3958_v50 }
 0xd4c   :  { %v1489_v51 = vpop.permute.xlu1 %1488 }
 0xd4d   :  { %v3962_v52 = vadd.f32 %v1489_v51, %v1481_v55 }
 0xd4f   :  { %3328 = vtanh.f32 %v3962_v52 }
 0xd54   :  { %v3327_v53 = vpop.eup %3326 }
 0xd55   :  { %1397 = vrot.lane.b32.xlu0 %v3327_v53, %s3562_s22  ;;  %v263_v53 = vadd.f32 %v3755_v14, %v3809_v62 }
 0xd59   :  { %v3329_v54 = vpop.eup %3328 }
 0xd5a   :  { %1494 = vrot.lane.b32.xlu1 %v3329_v54, %s3562_s22 }
 0xdc7   :  { %v1398_v59 = vpop.permute.xlu0 %1397 }
 0xdc8   :  { %v1400_v61 = vmul.f32 %v3323_v58, %v1398_v59 }
 0xdca   :  { %1499 = vrot.lane.b32.xlu0 %v1400_v61, %s3563_s16 }
 0xdcc   :  { %v1495_v63 = vpop.permute.xlu1 %1494 }
 0xdcd   :  { %v1497_v2 = vmul.f32 %v3325_v43, %v1495_v63 }
 0xdcf   :  { %1574 = vrot.lane.b32.xlu1 %v1497_v2, %s3563_s16 }
 0xe3c   :  { %v1500_v4 = vpop.permute.xlu0 %1499 }
 0xe3d   :  { %2966 = vmatmul.mubr.msk.f32.vlgmr.msra.gmra.mrb[14].mxu1 %vm119_vm1, %v1500_v4 }
 0xe3e   :  { %3185 = vmatpush3.bf16.msra.mxu1 %v3738_v8  ;;  %2987 = vmatprep.mubr.msk.f32.mxu1 %vm3560_vm0, %v3561_v1 }
 0xe3f   :  { %3186 = vmatprep.subr.bf16.mxu1 %v3559_v0 }
 0xe41   :  { %v1575_v5 = vpop.permute.xlu1 %1574 }
 0xe42   :  { %3188 = vmatpush3.bf16.msra.mxu1 %v3742_v12  ;;  %2977 = vmatmul.mubr.msk.f32.vlgmr.msra.gmra.mrb[20].mxu0 %vm119_vm1, %v1575_v5 }
 0xe43   :  { %3191 = vmatpush3.bf16.msra.mxu0 %v3768_v40  ;;  %3195 = vmatprep.subr.bf16.mxu1 %v3559_v0 }
 0xe44   :  { %3192 = vmatprep.subr.bf16.mxu0 %v3559_v0  ;;  %2998 = vmatprep.mubr.msk.f32.mxu0 %vm3560_vm0, %v3561_v1 }
 0xe45   :  { %2988 = vmatmul.mubr.msk.f32.vlgmr.msra.gmra.mrb[16].mxu1 %vm119_vm1, %v1575_v5 }
 0xe46   :  { %3197 = vmatpush3.bf16.msra.mxu1 %v3766_v36  ;;  %3009 = vmatprep.mubr.msk.f32.mxu1 %vm3560_vm0, %v3561_v1 }
 0xe47   :  { %3194 = vmatpush3.bf16.msra.mxu0 %v3774_v46  ;;  %3198 = vmatprep.subr.bf16.mxu1 %v3559_v0 }
 0xe48   :  { %3201 = vmatprep.subr.bf16.mxu0 %v3559_v0 }
 0xe4a   :  { %3200 = vmatpush3.bf16.msra.mxu1 %v3776_v47 }
 0xe4b   :  { %3207 = vmatprep.subr.bf16.mxu1 %v3559_v0 }
 0xf10   :  { %v1569_v6 = vpop.f32.mrb[14].mxu1 }
 0xf11   :  { %v2967_v7 = vpop.f32.mrb[15].mxu1 }
 0xf15   :  { %v1644_v9 = vpop.f32.mrb[20].mxu0 }
 0xf16   :  { %v1645_v10 = vadd.f32 %v1644_v9, %v1569_v6  ;;  %v2978_v11 = vpop.f32.mrb[21].mxu0 }
 0xf18   :  { %v1648_v13 = vadd.f32 %v3830_v3, %v1645_v10  ;;  %v1741_v16 = vpop.f32.mrb[16].mxu1 }
 0xf19   :  { %v1745_v15 = vadd.f32 %v1741_v16, %v258_v56  ;;  %v2989_v17 = vpop.f32.mrb[17].mxu1 }
 0xf1a   :  { %3330 = vtanh.f32 %v1648_v13  ;;  %v2645_v20 = vmul.f32 -1.442695, %v1648_v13 }
 0xf1b   :  { %3332 = vtanh.f32 %v1745_v15  ;;  %v2647_v21 = vmul.f32 -1.442695, %v1745_v15 }
 0xf1c   :  { %3334 = vpow2.f32 %v2645_v20 }
 0xf1d   :  { %3336 = vpow2.f32 %v2647_v21 }
 0xf24   :  { %v3331_v18 = vpop.eup %3330 }
 0xf25   :  { %v3333_v19 = vpop.eup %3332  ;;  %1658 = vrot.lane.b32.xlu0 %v3331_v18, %s3562_s22 }
 0xf26   :  { %1755 = vrot.lane.b32.xlu1 %v3333_v19, %s3562_s22  ;;  %v3335_v22 = vpop.eup %3334 }
 0xf27   :  { %v3337_v23 = vpop.eup %3336  ;;  %v1652_v57 = vadd.f32 1.0, %v3335_v22 }
 0xf28   :  { %v1749_v24 = vadd.f32 1.0, %v3337_v23 }
 0xf29   :  { %3338 = vrcp.f32 %v1652_v57 }
 0xf2a   :  { %3340 = vrcp.f32 %v1749_v24 }
 0xf33   :  { %v3339_v25 = vpop.eup %3338 }
 0xf34   :  { %v3341_v27 = vpop.eup %3340  ;;  %v1656_v31 = vmul.f32 %v3339_v25, %v3958_v50 }
 0xf35   :  { %v1753_v34 = vmul.f32 %v3341_v27, %v3962_v52 }
 0xf97   :  { %v1659_v26 = vpop.permute.xlu0 %1658 }
 0xf98   :  { %v1661_v28 = vmul.f32 %v3339_v25, %v1659_v26  ;;  %v1756_v29 = vpop.permute.xlu1 %1755 }
 0xf99   :  { %v1758_v30 = vmul.f32 %v3341_v27, %v1756_v29 }
 0xf9a   :  { %1663 = vrot.lane.b32.xlu0 %v1661_v28, %s3562_s22 }
 0xf9b   :  { %1760 = vrot.lane.b32.xlu1 %v1758_v30, %s3562_s22 }
0x100c   :  { %v1664_v33 = vpop.permute.xlu0 %1663 }
0x100d   :  { %v3999_v35 = vadd.f32 %v1664_v33, %v1656_v31  ;;  %v1761_v37 = vpop.permute.xlu1 %1760 }
0x100e   :  { %v4001_v38 = vadd.f32 %v1761_v37, %v1753_v34 }
0x100f   :  { %3342 = vtanh.f32 %v3999_v35 }
0x1010   :  { %3344 = vtanh.f32 %v4001_v38 }
0x1019   :  { %v3343_v39 = vpop.eup %3342 }
0x101a   :  { %v3345_v41 = vpop.eup %3344  ;;  %1669 = vrot.lane.b32.xlu0 %v3343_v39, %s3562_s22 }
0x101b   :  { %1766 = vrot.lane.b32.xlu1 %v3345_v41, %s3562_s22 }
0x108c   :  { %v1670_v58 = vpop.permute.xlu0 %1669 }
0x108d   :  { %v1672_v42 = vmul.f32 %v3339_v25, %v1670_v58  ;;  %v1767_v32 = vpop.permute.xlu1 %1766 }
0x108e   :  { %v1769_v43 = vmul.f32 %v3341_v27, %v1767_v32 }
0x108f   :  { %1771 = vrot.lane.b32.xlu0 %v1672_v42, %s3563_s16 }
0x1090   :  { %1846 = vrot.lane.b32.xlu1 %v1769_v43, %s3563_s16 }
0x1101   :  { %v1772_v44 = vpop.permute.xlu0 %1771 }
0x1102   :  { %v1847_v45 = vpop.permute.xlu1 %1846  ;;  %2999 = vmatmul.mubr.msk.f32.vlgmr.msra.gmra.mrb[22].mxu0 %vm119_vm1, %v1772_v44 }
0x1103   :  { %3010 = vmatmul.mubr.msk.f32.vlgmr.msra.gmra.mrb[18].mxu1 %vm119_vm1, %v1847_v45  ;;  %3203 = vmatpush3.bf16.msra.mxu0 %v3738_v8 }
0x1104   :  { %3204 = vmatprep.subr.bf16.mxu0 %v3559_v0  ;;  %3020 = vmatprep.mubr.msk.f32.mxu0 %vm3560_vm0, %v3561_v1 }
0x1105   :  { %3209 = vmatpush3.bf16.msra.mxu1 %v3768_v40  ;;  %3031 = vmatprep.mubr.msk.f32.mxu1 %vm3560_vm0, %v3561_v1 }
0x1106   :  { %3210 = vmatprep.subr.bf16.mxu1 %v3559_v0 }
0x1107   :  { %3206 = vmatpush3.bf16.msra.mxu0 %v3742_v12 }
0x1108   :  { %3213 = vmatprep.subr.bf16.mxu0 %v3559_v0 }
0x1109   :  { %3212 = vmatpush3.bf16.msra.mxu1 %v3774_v46 }
0x110a   :  { %3021 = vmatmul.mubr.msk.f32.vlgmr.msra.gmra.mrb[24].mxu0 %vm119_vm1, %v1847_v45  ;;  %3219 = vmatprep.subr.bf16.mxu1 %v3559_v0 }
0x110b   :  { %3215 = vmatpush3.bf16.msra.mxu0 %v3766_v36  ;;  %3042 = vmatprep.mubr.msk.f32.mxu0 %vm3560_vm0, %v3561_v1 }
0x110c   :  { %3216 = vmatprep.subr.bf16.mxu0 %v3559_v0 }
0x110f   :  { %3218 = vmatpush3.bf16.msra.mxu0 %v3776_v47 }
0x1110   :  { %3225 = vmatprep.subr.bf16.mxu0 %v3559_v0 }
0x11d5   :  { %v1841_v48 = vpop.f32.mrb[22].mxu0 }
0x11d6   :  { %v1916_v49 = vpop.f32.mrb[18].mxu1  ;;  %v3000_v50 = vpop.f32.mrb[23].mxu0 }
0x11d7   :  { %v1917_v55 = vadd.f32 %v1916_v49, %v1841_v48  ;;  %v3011_v51 = vpop.f32.mrb[19].mxu1 }
0x11d9   :  { %v1920_v52 = vadd.f32 %v3830_v3, %v1917_v55 }
0x11db   :  { %3346 = vtanh.f32 %v1920_v52  ;;  %v2650_v4 = vmul.f32 -1.442695, %v1920_v52 }
0x11dd   :  { %v2013_v54 = vpop.f32.mrb[24].mxu0 }
0x11de   :  { %v2017_v59 = vadd.f32 %v2013_v54, %v263_v53  ;;  %v3022_v61 = vpop.f32.mrb[25].mxu0 }
0x11e0   :  { %3348 = vtanh.f32 %v2017_v59  ;;  %v2652_v5 = vmul.f32 -1.442695, %v2017_v59 }
0x11e1   :  { %3350 = vpow2.f32 %v2650_v4 }
0x11e2   :  { %3352 = vpow2.f32 %v2652_v5 }
0x11e5   :  { %v3347_v63 = vpop.eup %3346 }
0x11e6   :  { %1930 = vrot.lane.b32.xlu0 %v3347_v63, %s3562_s22 }
0x11ea   :  { %v3349_v2 = vpop.eup %3348 }
0x11eb   :  { %2027 = vrot.lane.b32.xlu1 %v3349_v2, %s3562_s22  ;;  %v3351_v6 = vpop.eup %3350 }
0x11ec   :  { %v1924_v7 = vadd.f32 1.0, %v3351_v6  ;;  %v3353_v9 = vpop.eup %3352 }
0x11ed   :  { %v2021_v10 = vadd.f32 1.0, %v3353_v9 }
0x11ee   :  { %3354 = vrcp.f32 %v1924_v7 }
0x11ef   :  { %3356 = vrcp.f32 %v2021_v10 }
0x11f8   :  { %v3355_v14 = vpop.eup %3354 }
0x11f9   :  { %v3357_v56 = vpop.eup %3356  ;;  %v1928_v15 = vmul.f32 %v3355_v14, %v3999_v35 }
0x11fa   :  { %v2025_v19 = vmul.f32 %v3357_v56, %v4001_v38 }
0x1258   :  { %v1931_v62 = vpop.permute.xlu0 %1930 }
0x1259   :  { %v1933_v11 = vmul.f32 %v3355_v14, %v1931_v62 }
0x125b   :  { %1935 = vrot.lane.b32.xlu0 %v1933_v11, %s3562_s22 }
0x125d   :  { %v2028_v13 = vpop.permute.xlu1 %2027 }
0x125e   :  { %v2030_v16 = vmul.f32 %v3357_v56, %v2028_v13 }
0x1260   :  { %2032 = vrot.lane.b32.xlu1 %v2030_v16, %s3562_s22 }
0x12cd   :  { %v1936_v17 = vpop.permute.xlu0 %1935 }
0x12ce   :  { %v4038_v18 = vadd.f32 %v1936_v17, %v1928_v15 }
0x12d0   :  { %3358 = vtanh.f32 %v4038_v18 }
0x12d2   :  { %v2033_v20 = vpop.permute.xlu1 %2032 }
0x12d3   :  { %v4042_v21 = vadd.f32 %v2033_v20, %v2025_v19 }
0x12d5   :  { %3360 = vtanh.f32 %v4042_v21 }
0x12da   :  { %v3359_v22 = vpop.eup %3358 }
0x12db   :  { %1941 = vrot.lane.b32.xlu0 %v3359_v22, %s3562_s22 }
0x12df   :  { %v3361_v23 = vpop.eup %3360 }
0x12e0   :  { %2038 = vrot.lane.b32.xlu1 %v3361_v23, %s3562_s22  ;;  %v2509_v23 = vld [vmem:[#allocation14] sm:$0xff] }
0x134d   :  { %v1942_v57 = vpop.permute.xlu0 %1941 }
0x134e   :  { %v1944_v24 = vmul.f32 %v3355_v14, %v1942_v57  ;;  %v2511_v57 = vld [vmem:[#allocation14 + $0x10] sm:$0xff] }
0x1350   :  { %2043 = vrot.lane.b32.xlu0 %v1944_v24, %s3563_s16 }
0x1352   :  { %v2039_v25 = vpop.permute.xlu1 %2038 }
0x1353   :  { %v2041_v26 = vmul.f32 %v3357_v56, %v2039_v25  ;;  %v2512_v25 = vld [vmem:[#allocation14 + $0x18] sm:$0xff] }
0x1355   :  { %2118 = vrot.lane.b32.xlu1 %v2041_v26, %s3563_s16  ;;  %v3241_v26 = vpack.c.bf16 %v2512_v25, %v2511_v57 }
0x13c2   :  { %v2044_v27 = vpop.permute.xlu0 %2043 }
0x13c3   :  { %3032 = vmatmul.mubr.msk.f32.vlgmr.msra.gmra.mrb[20].mxu1 %vm119_vm1, %v2044_v27 }
0x13c4   :  { %3221 = vmatpush3.bf16.msra.mxu1 %v3738_v8  ;;  %3053 = vmatprep.mubr.msk.f32.mxu1 %vm3560_vm0, %v3561_v1 }
0x13c5   :  { %3222 = vmatprep.subr.bf16.mxu1 %v3559_v0 }
0x13c7   :  { %v2119_v28 = vpop.permute.xlu1 %2118 }
0x13c8   :  { %3224 = vmatpush3.bf16.msra.mxu1 %v3742_v12  ;;  %3043 = vmatmul.mubr.msk.f32.vlgmr.msra.gmra.mrb[26].mxu0 %vm119_vm1, %v2119_v28 }
0x13c9   :  { %3231 = vmatprep.subr.bf16.mxu1 %v3559_v0  ;;  %3227 = vmatpush3.bf16.msra.mxu0 %v3768_v40 }
0x13ca   :  { %3228 = vmatprep.subr.bf16.mxu0 %v3559_v0  ;;  %3064 = vmatprep.mubr.msk.f32.mxu0 %vm3560_vm0, %v3561_v1 }
0x13cb   :  { %3054 = vmatmul.mubr.msk.f32.vlgmr.msra.gmra.mrb[22].mxu1 %vm119_vm1, %v2119_v28 }
0x13cc   :  { %3233 = vmatpush3.bf16.msra.mxu1 %v3766_v36  ;;  %3075 = vmatprep.mubr.msk.f32.mxu1 %vm3560_vm0, %v3561_v1  ;;  %v3386_v36 = vld [vmem:[%s4116_s2] ss:$0 sm:$0xff]  ;;  %s3564_s2 = smov 96  }
0x13cd   :  { %3234 = vmatprep.subr.bf16.mxu1 %v3559_v0  ;;  %3230 = vmatpush3.bf16.msra.mxu0 %v3774_v46  ;;  %v268_v31 = vadd.f32 %v3386_v36, %v3807_v60 }
0x13ce   :  { %3237 = vmatprep.subr.bf16.mxu0 %v3559_v0 }
0x13d0   :  { %3236 = vmatpush3.bf16.msra.mxu1 %v3776_v47 }
0x1496   :  { %v2113_v8 = vpop.f32.mrb[20].mxu1 }
0x1497   :  { %v3033_v12 = vpop.f32.mrb[21].mxu1 }
0x149b   :  { %v2188_v40 = vpop.f32.mrb[26].mxu0 }
0x149c   :  { %v2189_v29 = vadd.f32 %v2188_v40, %v2113_v8  ;;  %v3044_v30 = vpop.f32.mrb[27].mxu0 }
0x149e   :  { %v2192_v33 = vadd.f32 %v3830_v3, %v2189_v29  ;;  %v2285_v34 = vpop.f32.mrb[22].mxu1  ;;  %v2661_v29 = vld [vmem:[%s4122_s8] ss:$0 sm:$0xff] }
0x149f   :  { %v2289_v35 = vadd.f32 %v2285_v34, %v268_v31  ;;  %v3055_v46 = vpop.f32.mrb[23].mxu1 }
0x14a0   :  { %3362 = vtanh.f32 %v2192_v33  ;;  %v2655_v38 = vmul.f32 -1.442695, %v2192_v33 }
0x14a1   :  { %3364 = vtanh.f32 %v2289_v35  ;;  %v2657_v39 = vmul.f32 -1.442695, %v2289_v35 }
0x14a2   :  { %3366 = vpow2.f32 %v2655_v38 }
0x14a3   :  { %3368 = vpow2.f32 %v2657_v39 }
0x14aa   :  { %v3363_v37 = vpop.eup %3362 }
0x14ab   :  { %v3365_v47 = vpop.eup %3364  ;;  %2202 = vrot.lane.b32.xlu0 %v3363_v37, %s3562_s22 }
0x14ac   :  { %2299 = vrot.lane.b32.xlu1 %v3365_v47, %s3562_s22  ;;  %v3367_v41 = vpop.eup %3366 }
0x14ad   :  { %v3369_v58 = vpop.eup %3368  ;;  %v2196_v60 = vadd.f32 1.0, %v3367_v41 }
0x14ae   :  { %v2293_v42 = vadd.f32 1.0, %v3369_v58 }
0x14af   :  { %3370 = vrcp.f32 %v2196_v60 }
0x14b0   :  { %3372 = vrcp.f32 %v2293_v42 }
0x14b9   :  { %v3371_v32 = vpop.eup %3370 }
0x14ba   :  { %v3373_v44 = vpop.eup %3372  ;;  %v2200_v50 = vmul.f32 %v3371_v32, %v4038_v18 }
0x14bb   :  { %v2297_v51 = vmul.f32 %v3373_v44, %v4042_v21 }
0x151d   :  { %v2203_v43 = vpop.permute.xlu0 %2202 }
0x151e   :  { %v2205_v45 = vmul.f32 %v3371_v32, %v2203_v43  ;;  %v2300_v48 = vpop.permute.xlu1 %2299 }
0x151f   :  { %v2302_v49 = vmul.f32 %v3373_v44, %v2300_v48 }
0x1520   :  { %2207 = vrot.lane.b32.xlu0 %v2205_v45, %s3562_s22 }
0x1521   :  { %2304 = vrot.lane.b32.xlu1 %v2302_v49, %s3562_s22 }
0x1592   :  { %v2208_v55 = vpop.permute.xlu0 %2207 }
0x1593   :  { %v2210_v52 = vadd.f32 %v2208_v55, %v2200_v50  ;;  %v2305_v53 = vpop.permute.xlu1 %2304 }
0x1594   :  { %v2307_v54 = vadd.f32 %v2305_v53, %v2297_v51 }
0x1595   :  { %3374 = vtanh.f32 %v2210_v52 }
0x1596   :  { %3376 = vtanh.f32 %v2307_v54 }
0x159f   :  { %v3375_v59 = vpop.eup %3374 }
0x15a0   :  { %v3377_v61 = vpop.eup %3376  ;;  %2213 = vrot.lane.b32.xlu0 %v3375_v59, %s3562_s22 }
0x15a1   :  { %2310 = vrot.lane.b32.xlu1 %v3377_v61, %s3562_s22 }
0x1612   :  { %v2214_v63 = vpop.permute.xlu0 %2213 }
0x1613   :  { %v2216_v2 = vmul.f32 %v3371_v32, %v2214_v63  ;;  %v2311_v4 = vpop.permute.xlu1 %2310 }
0x1614   :  { %v2313_v5 = vmul.f32 %v3373_v44, %v2311_v4 }
0x1615   :  { %2315 = vrot.lane.b32.xlu0 %v2216_v2, %s3563_s16 }
0x1616   :  { %2390 = vrot.lane.b32.xlu1 %v2313_v5, %s3563_s16 }
0x1687   :  { %v2316_v6 = vpop.permute.xlu0 %2315 }
0x1688   :  { %v2391_v7 = vpop.permute.xlu1 %2390  ;;  %3065 = vmatmul.mubr.msk.f32.vlgmr.msra.gmra.mrb[28].mxu0 %vm119_vm1, %v2316_v6 }
0x1689   :  { %2490 = vst.msk [vmem:[#allocation2] sm:$0xff] %vm119_vm1, %v2391_v7  ;;  %3076 = vmatmul.mubr.msk.f32.vlgmr.msra.gmra.mrb[24].mxu1 %vm119_vm1, %v2391_v7  ;;  %3086 = vmatprep.mubr.msk.f32.mxu0 %vm3560_vm0, %v3561_v1 }
0x175b   :  { %v2385_v9 = vpop.f32.mrb[28].mxu0 }
0x175c   :  { %v2460_v10 = vpop.f32.mrb[24].mxu1  ;;  %v3066_v14 = vpop.f32.mrb[29].mxu0 }
0x175d   :  { %v2461_v62 = vadd.f32 %v2460_v10, %v2385_v9  ;;  %v3077_v11 = vpop.f32.mrb[25].mxu1 }
0x175f   :  { %v2464_v56 = vadd.f32 %v3830_v3, %v2461_v62  ;;  %v2510_v3 = vld [vmem:[#allocation14 + $0x8] sm:$0xff] }
0x1760   :  { %v3238_v24 = vpack.c.bf16 %v2510_v3, %v2509_v23 }
0x1761   :  { %3378 = vtanh.f32 %v2464_v56  ;;  %v2660_v16 = vmul.f32 -1.442695, %v2464_v56 }
0x1762   :  { %3239 = vmatpush3.bf16.msra.mxu0 %v3238_v24 }
0x1763   :  { %3380 = vpow2.f32 %v2660_v16  ;;  %3240 = vmatprep.subr.bf16.mxu0 %v3559_v0 }
0x1766   :  { %3242 = vmatpush3.bf16.msra.mxu0 %v3241_v26 }
0x176b   :  { %v3379_v13 = vpop.eup %3378 }
0x176c   :  { %2474 = vrot.lane.b32.xlu0 %v3379_v13, %s3562_s22 }
0x176d   :  { %v3381_v15 = vpop.eup %3380 }
0x176e   :  { %v2468_v17 = vadd.f32 1.0, %v3381_v15 }
0x1770   :  { %3382 = vrcp.f32 %v2468_v17 }
0x177a   :  { %v3383_v18 = vpop.eup %3382 }
0x177b   :  { %v2472_v1 = vmul.f32 %v3383_v18, %v2210_v52 }
0x17de   :  { %v2475_v19 = vpop.permute.xlu0 %2474 }
0x17df   :  { %v2477_v20 = vmul.f32 %v3383_v18, %v2475_v19 }
0x17e1   :  { %2479 = vrot.lane.b32.xlu1 %v2477_v20, %s3562_s22 }
0x1853   :  { %v2480_v21 = vpop.permute.xlu1 %2479 }
0x1854   :  { %v2482_v22 = vadd.f32 %v2480_v21, %v2472_v1 }
0x1856   :  { %3384 = vtanh.f32 %v2482_v22 }
0x1860   :  { %v3385_v27 = vpop.eup %3384 }
0x1861   :  { %2485 = vrot.lane.b32.xlu0 %v3385_v27, %s3562_s22 }
0x1865   :  { %2492 = vrot.lane.b32.xlu0 %v2307_v54, %s3564_s2 }
0x18d3   :  { %v2486_v28 = vpop.permute.xlu0 %2485 }
0x18d4   :  { %v2488_v8 = vmul.f32 %v3383_v18, %v2486_v28 }
0x18d6   :  { %2497 = vrot.lane.b32.xlu1 %v2488_v8, %s3563_s16 }
0x18d7   :  { %v2493_v12 = vpop.permute.xlu0 %2492 }
0x18d8   :  { %2495 = vst.msk [vmem:[#allocation3] sm:$0xff] %vm119_vm1, %v2493_v12 }
0x18da   :  { %2502 = vrot.lane.b32.xlu1 %v2482_v22, %s3564_s2 }
0x1948   :  { %v2498_v40 = vpop.permute.xlu1 %2497 }
0x1949   :  { %2500 = vst.msk [vmem:[#allocation2 + $0x8] sm:$0xff] %vm119_vm1, %v2498_v40  ;;  %3087 = vmatmul.mubr.msk.f32.vlgmr.msra.gmra.mrb[30].mxu0 %vm119_vm1, %v2498_v40 }
0x194c   :  { %v2503_v0 = vpop.permute.xlu1 %2502 }
0x194d   :  { %2505 = vst.msk [vmem:[#allocation3 + $0x8] sm:$0xff] %vm119_vm1, %v2503_v0 }
0x1a1c   :  { %v2588_v30 = vpop.f32.mrb[30].mxu0 }
0x1a1d   :  { %v2589_v36 = vadd.f32 %v2661_v29, %v2588_v30  ;;  %v3088_v31 = vpop.f32.mrb[31].mxu0 }
0x1a1f   :  { %2592 = vst [vmem:[#allocation16] sm:$0xff] %v2589_v36 }
0x1a20   :  { %3530 = shalt.err (!%p3527_p10)
}
0x1a21   :  { %s3531_s3 = scalar_lea.hbm %s4123_s9, 128 }
0x1a22   :  { %p3532_p11 = scmp.ne.s32.totalorder %s4123_s9, %s3531_s3  ;;  %p3535_p12 = scmp.lt.u32.totalorder %s3531_s3, %s4123_s9 }
0x1a24   :  { %p3537_p13 = pnand %p3535_p12, %p3532_p11 }
0x1a26   :  { %3540 = shalt.err (!%p3537_p13)
}
0x1a27   :  { %2602 = dma.vmem_to_hbm [thread:$0]  %s2600_s26, 128, %s4123_s9, [#allocation7]  }
0x1a28   :  { %3549 = dma.done.wait [#allocation7], 128  }
0x1a29   :  { %3550 = vsyncadd [#allocation7], 4294967168 }
0x1a2a   :  { %2606 = vsyncpa [#allocation6], 1 }
0x1a2b   :  { %2607 = vsyncpa [#allocation9], 1 }
0x1a2c   :  { %2608 = vsyncpa [#allocation12], 1 }
0x1a2d   :  { %2609 = vsyncpa [#allocation15], 1 }
0x1a2e   :  { %2610 = vsyncpa [#allocation7], 1 }

// kernel: tpu_custom_call.1
= control target key start
LH: loop header
LB: loop body
LE: loop exit
PB: predicated region body
PF: predicated region fallthrough
CT: control target
= control target key end

     0   :  { %14 = vsyncpa [#allocation6], 0  ;;  %s4114_s0 = inlined_call_operand.hbm [shape: f32[8,8,16], index: 0, kind: input, shape index: {}]   ;;  %s4115_s1 = inlined_call_operand.hbm [shape: f32[16,128], index: 1, kind: input, shape index: {}]   ;;  %s4116_s2 = inlined_call_operand.vmem [shape: f32[1,128], index: 2, kind: input, shape index: {}]   ;;  %s4117_s3 = inlined_call_operand.hbm [shape: f32[32,128], index: 3, kind: input, shape index: {}]   ;;  %s4118_s4 = inlined_call_operand.hbm [shape: f32[32,128], index: 4, kind: input, shape index: {}]   ;;  %s4119_s5 = inlined_call_operand.hbm [shape: f32[32,128], index: 5, kind: input, shape index: {}]   ;;  %s4120_s6 = inlined_call_operand.vmem [shape: f32[1,128], index: 6, kind: input, shape index: {}]   ;;  %s4121_s7 = inlined_call_operand.hbm [shape: f32[32,128], index: 7, kind: input, shape index: {}]   ;;  %s4122_s8 = inlined_call_operand.vmem [shape: f32[1,128], index: 8, kind: input, shape index: {}]   ;;  %s4123_s9 = inlined_call_operand.hbm [shape: f32[8,128], index: 9, kind: output, shape index: {}]  }
   0x1   :  { %15 = vsyncpa [#allocation9], 0 }
   0x2   :  { %16 = vsyncpa [#allocation12], 0 }
   0x3   :  { %17 = vsyncpa [#allocation15], 0 }
   0x4   :  { %18 = vsyncpa [#allocation7], 0  ;;  %s3551_s30 = smov [#allocation8]   ;;  %s3552_s11 = smov [#allocation11]  }
   0x5   :  { %s36_s10 = sshll.u32 %s3551_s30, 4  ;;  %s62_s12 = sshll.u32 %s3552_s11, 4  ;;  %s37_s10 = int_to_ptr.vmem [resolvable:$true] %s36_s10  ;;  %s3616_s12 = int_to_ptr.vmem [resolvable:$true] %s62_s12 }
   0x6   :  { %s3387_s15 = scalar_lea.hbm %s4115_s1, 256 }
   0x7   :  { %p3388_p0 = scmp.ne.s32.totalorder %s4115_s1, %s3387_s15  ;;  %p3391_p1 = scmp.lt.u32.totalorder %s3387_s15, %s4115_s1 }
   0x9   :  { %p3393_p2 = pnand %p3391_p1, %p3388_p0 }
   0xb   :  { %3396 = shalt.err (!%p3393_p2)
}
   0xc   :  { %s3397_s20 = scalar_lea.vmem %s37_s10, 256  ;;  %p3402_p4 = scmp.lt.s32.totalorder %s37_s10, %s37_s10 }
   0xd   :  { %p3398_p3 = scmp.ne.s32.totalorder %s37_s10, %s3397_s20  ;;  %p3403_p5 = scmp.lt.s32.totalorder %s3397_s20, %s3397_s20 }
   0xf   :  { %p3404_p6 = por %p3403_p5, %p3402_p4 }
  0x11   :  { %p3405_p7 = pnand %p3404_p6, %p3398_p3 }
  0x13   :  { %3408 = shalt.err (!%p3405_p7)
}
  0x14   :  { %s3553_s21 = smov 128   ;;  %s3554_s22 = smov 8  }
  0x15   :  { %42 = dma.hbm_to_vmem [thread:$0]  %s4115_s1, 256, %s37_s10, [#allocation9], %s3553_s21, %s3553_s21, %s3554_s22  }
  0x16   :  { %s3409_s27 = scalar_lea.hbm %s4118_s4, 512 }
  0x17   :  { %p3410_p8 = scmp.ne.s32.totalorder %s4118_s4, %s3409_s27  ;;  %p3413_p9 = scmp.lt.u32.totalorder %s3409_s27, %s4118_s4 }
  0x19   :  { %p3415_p10 = pnand %p3413_p9, %p3410_p8 }
  0x1b   :  { %3418 = shalt.err (!%p3415_p10)
}
  0x1c   :  { %s3419_s13 = scalar_lea.vmem %s3616_s12, 512  ;;  %p3424_p12 = scmp.lt.s32.totalorder %s3616_s12, %s3616_s12 }
  0x1d   :  { %p3420_p11 = scmp.ne.s32.totalorder %s3616_s12, %s3419_s13  ;;  %p3425_p13 = scmp.lt.s32.totalorder %s3419_s13, %s3419_s13 }
  0x1f   :  { %p3426_p0 = por %p3425_p13, %p3424_p12 }
  0x21   :  { %p3427_p1 = pnand %p3426_p0, %p3420_p11 }
  0x23   :  { %3430 = shalt.err (!%p3427_p1)
}
  0x24   :  { %68 = dma.hbm_to_vmem [thread:$0]  %s4118_s4, 512, %s3616_s12, [#allocation12], %s3553_s21, %s3553_s21, %s3554_s22  }
  0x25   :  { %s3555_s14 = smov [#allocation5]   ;;  %s3556_s16 = smov [#allocation10]  }
  0x26   :  { %s24_s15 = sshll.u32 %s3555_s14, 4  ;;  %s50_s17 = sshll.u32 %s3556_s16, 4  ;;  %s25_s15 = int_to_ptr.vmem [resolvable:$true] %s24_s15  ;;  %s3653_s17 = int_to_ptr.vmem [resolvable:$true] %s50_s17 }
  0x27   :  { %s3431_s20 = scalar_lea.hbm %s4114_s0, 1024 }
  0x28   :  { %p3432_p2 = scmp.ne.s32.totalorder %s4114_s0, %s3431_s20  ;;  %p3435_p3 = scmp.lt.u32.totalorder %s3431_s20, %s4114_s0 }
  0x2a   :  { %p3437_p4 = pnand %p3435_p3, %p3432_p2 }
  0x2c   :  { %3440 = shalt.err (!%p3437_p4)
}
  0x2d   :  { %s3441_s4 = scalar_lea.vmem %s25_s15, 1024  ;;  %p3446_p6 = scmp.lt.s32.totalorder %s25_s15, %s25_s15 }
  0x2e   :  { %p3442_p5 = scmp.ne.s32.totalorder %s25_s15, %s3441_s4  ;;  %p3447_p7 = scmp.lt.s32.totalorder %s3441_s4, %s3441_s4 }
  0x30   :  { %p3448_p8 = por %p3447_p7, %p3446_p6 }
  0x32   :  { %p3449_p9 = pnand %p3448_p8, %p3442_p5 }
  0x34   :  { %3452 = shalt.err (!%p3449_p9)
}
  0x35   :  { %30 = dma.hbm_to_vmem [thread:$0]  %s4114_s0, 1024, %s25_s15, [#allocation6], %s3553_s21, %s3553_s21, %s3554_s22  }
  0x36   :  { %s3453_s30 = scalar_lea.hbm %s4117_s3, 512 }
  0x37   :  { %p3454_p10 = scmp.ne.s32.totalorder %s4117_s3, %s3453_s30  ;;  %p3457_p11 = scmp.lt.u32.totalorder %s3453_s30, %s4117_s3 }
  0x39   :  { %p3459_p12 = pnand %p3457_p11, %p3454_p10 }
  0x3b   :  { %3462 = shalt.err (!%p3459_p12)
}
  0x3c   :  { %s3463_s14 = scalar_lea.vmem %s3653_s17, 512  ;;  %p3468_p0 = scmp.lt.s32.totalorder %s3653_s17, %s3653_s17 }
  0x3d   :  { %p3464_p13 = scmp.ne.s32.totalorder %s3653_s17, %s3463_s14  ;;  %p3469_p1 = scmp.lt.s32.totalorder %s3463_s14, %s3463_s14 }
  0x3f   :  { %p3470_p2 = por %p3469_p1, %p3468_p0 }
  0x41   :  { %p3471_p3 = pnand %p3470_p2, %p3464_p13 }
  0x43   :  { %3474 = shalt.err (!%p3471_p3)
}
  0x44   :  { %56 = dma.hbm_to_vmem [thread:$0]  %s4117_s3, 512, %s3653_s17, [#allocation9], %s3553_s21, %s3553_s21, %s3554_s22  }
  0x45   :  { %s3557_s16 = smov [#allocation13]   ;;  %s3558_s19 = smov [#allocation14]  }
  0x46   :  { %s74_s18 = sshll.u32 %s3557_s16, 4  ;;  %s88_s20 = sshll.u32 %s3558_s19, 4  ;;  %s75_s18 = int_to_ptr.vmem [resolvable:$true] %s74_s18  ;;  %s3690_s20 = int_to_ptr.vmem [resolvable:$true] %s88_s20 }
  0x47   :  { %s3475_s25 = scalar_lea.hbm %s4119_s5, 512 }
  0x48   :  { %p3476_p4 = scmp.ne.s32.totalorder %s4119_s5, %s3475_s25  ;;  %p3479_p5 = scmp.lt.u32.totalorder %s3475_s25, %s4119_s5 }
  0x4a   :  { %p3481_p6 = pnand %p3479_p5, %p3476_p4 }
  0x4c   :  { %3484 = shalt.err (!%p3481_p6)
}
  0x4d   :  { %s3485_s3 = scalar_lea.vmem %s75_s18, 512  ;;  %p3490_p8 = scmp.lt.s32.totalorder %s75_s18, %s75_s18 }
  0x4e   :  { %p3486_p7 = scmp.ne.s32.totalorder %s75_s18, %s3485_s3  ;;  %p3491_p9 = scmp.lt.s32.totalorder %s3485_s3, %s3485_s3 }
  0x50   :  { %p3492_p10 = por %p3491_p9, %p3490_p8 }
  0x52   :  { %p3493_p11 = pnand %p3492_p10, %p3486_p7 }
  0x54   :  { %3496 = shalt.err (!%p3493_p11)
}
  0x55   :  { %80 = dma.hbm_to_vmem [thread:$0]  %s4119_s5, 512, %s75_s18, [#allocation12], %s3553_s21, %s3553_s21, %s3554_s22  }
  0x56   :  { %s3497_s11 = scalar_lea.hbm %s4121_s7, 512 }
  0x57   :  { %p3498_p12 = scmp.ne.s32.totalorder %s4121_s7, %s3497_s11  ;;  %p3501_p13 = scmp.lt.u32.totalorder %s3497_s11, %s4121_s7 }
  0x59   :  { %p3503_p0 = pnand %p3501_p13, %p3498_p12 }
  0x5b   :  { %3506 = shalt.err (!%p3503_p0)
}
  0x5c   :  { %s3507_s0 = scalar_lea.vmem %s3690_s20, 512  ;;  %p3512_p2 = scmp.lt.s32.totalorder %s3690_s20, %s3690_s20 }
  0x5d   :  { %p3508_p1 = scmp.ne.s32.totalorder %s3690_s20, %s3507_s0  ;;  %p3513_p3 = scmp.lt.s32.totalorder %s3507_s0, %s3507_s0 }
  0x5f   :  { %p3514_p4 = por %p3513_p3, %p3512_p2 }
  0x61   :  { %p3515_p5 = pnand %p3514_p4, %p3508_p1 }
  0x63   :  { %3518 = shalt.err (!%p3515_p5)
}
  0x64   :  { %94 = dma.hbm_to_vmem [thread:$0]  %s4121_s7, 512, %s3690_s20, [#allocation15], %s3553_s21, %s3553_s21, %s3554_s22  }
  0x65   :  { %3541 = dma.done.wait [#allocation6], 1024  }
  0x66   :  { %3542 = vsyncadd [#allocation6], 4294966272 }
  0x67   :  { %3543 = dma.done.wait [#allocation9], 768  }
  0x68   :  { %3544 = vsyncadd [#allocation9], 4294966528 }
  0x69   :  { %3545 = dma.done.wait [#allocation12], 1024  }
  0x6a   :  { %3546 = vsyncadd [#allocation12], 4294966272 }
  0x6b   :  { %3547 = dma.done.wait [#allocation15], 512  }
  0x6c   :  { %3548 = vsyncadd [#allocation15], 4294966784  ;;  %v3559_v0 = vmov 0.0|0.0   ;;  %vm3560_vm0 = vmmov 0   ;;  %v3561_v1 = vmov 0.0   ;;  %vm119_vm1 = vcmask 261120  }
  0x6d   :  { %3093 = vmatprep.subr.bf16.mxu1 %v3559_v0  ;;  %2822 = vmatprep.mubr.msk.f32.mxu1 %vm3560_vm0, %v3561_v1  ;;  %120 = vst.msk [vmem:[#allocation2] sm:$0xff] %vm119_vm1, %v3561_v1  ;;  %121 = vst.msk [vmem:[#allocation2 + $0x8] sm:$0xff] %vm119_vm1, %v3561_v1  ;;  %vm141_vm2 = vcmask 130048   ;;  %v132_v2 = vld [vmem:[#allocation8] sm:$0xff]  ;;  %v133_v3 = vld [vmem:[#allocation8 + $0x8] sm:$0xff]  ;;  %s3562_s22 = smov 32  }
  0x6e   :  { %122 = vst.msk [vmem:[#allocation3] sm:$0xff] %vm119_vm1, %v3561_v1  ;;  %123 = vst.msk [vmem:[#allocation3 + $0x8] sm:$0xff] %vm119_vm1, %v3561_v1  ;;  %v279_v4 = vld [vmem:[#allocation10] sm:$0xff]  ;;  %v3089_v5 = vpack.c.bf16 %v133_v3, %v132_v2  ;;  %v280_v6 = vld [vmem:[#allocation10 + $0x8] sm:$0xff]  ;;  %s3563_s16 = smov 64   ;;  %s3565_s25 = smov [#allocation16]  }
  0x6f   :  { %v124_v7 = vld [vmem:[#allocation5] sm:$0xff]  ;;  %v3738_v8 = vpack.c.bf16 %v280_v6, %v279_v4  ;;  %v282_v10 = vld [vmem:[#allocation10 + $0x18] sm:$0xff]  ;;  %v283_v33 = vld [vmem:[#allocation11] sm:$0xff]  ;;  %s2599_s26 = sshll.u32 %s3565_s25, 4  ;;  %s2600_s26 = int_to_ptr.vmem [resolvable:$true] %s2599_s26 }
  0x70   :  { %2802 = vmatprep.mubr.msk.f32.mxu0 %vm141_vm2, %v124_v7  ;;  %v281_v9 = vld [vmem:[#allocation10 + $0x10] sm:$0xff]  ;;  %3090 = vmatprep.subr.bf16.mxu0 %v3089_v5  ;;  %v125_v11 = vld [vmem:[#allocation5 + $0x8] sm:$0xff]  ;;  %v284_v34 = vld [vmem:[#allocation11 + $0x8] sm:$0xff]  ;;  %s3519_s4 = scalar_lea.vmem %s2600_s26, 128  ;;  %p3524_p7 = scmp.lt.s32.totalorder %s2600_s26, %s2600_s26 }
  0x71   :  { %3095 = vmatpush3.bf16.msra.mxu1 %v3738_v8  ;;  %3092 = vmatpush3.bf16.msra.mxu0 %v3089_v5  ;;  %v3742_v12 = vpack.c.bf16 %v282_v10, %v281_v9  ;;  %v3755_v14 = vld [vmem:[%s4116_s2] ss:$0 sm:$0xff]  ;;  %v287_v35 = vld [vmem:[#allocation13] sm:$0xff]  ;;  %v3766_v36 = vpack.c.bf16 %v284_v34, %v283_v33  ;;  %v288_v37 = vld [vmem:[#allocation13 + $0x8] sm:$0xff]  ;;  %p3520_p6 = scmp.ne.s32.totalorder %s2600_s26, %s3519_s4  ;;  %p3525_p8 = scmp.lt.s32.totalorder %s3519_s4, %s3519_s4 }
  0x72   :  { %3096 = vmatprep.subr.bf16.mxu1 %v3559_v0  ;;  %3105 = vmatprep.subr.bf16.mxu0 %v3559_v0  ;;  %v126_v38 = vld [vmem:[#allocation5 + $0x10] sm:$0xff]  ;;  %v127_v39 = vld [vmem:[#allocation5 + $0x18] sm:$0xff]  ;;  %v3768_v40 = vpack.c.bf16 %v288_v37, %v287_v35  ;;  %v289_v41 = vld [vmem:[#allocation13 + $0x10] sm:$0xff] }
  0x73   :  { %v290_v42 = vld [vmem:[#allocation13 + $0x18] sm:$0xff]  ;;  %v128_v43 = vld [vmem:[#allocation5 + $0x20] sm:$0xff]  ;;  %v130_v49 = vld [vmem:[#allocation5 + $0x30] sm:$0xff]  ;;  %p3526_p9 = por %p3525_p8, %p3524_p7 }
  0x74   :  { %2803 = vmatmul.mubr.msk.f32.vlgmr.msra.gmra.mrb[0].mxu0 %vm141_vm2, %v125_v11  ;;  %v292_v13 = vld [vmem:[#allocation2] sm:$0xff]  ;;  %v286_v45 = vld [vmem:[#allocation11 + $0x18] sm:$0xff]  ;;  %v3774_v46 = vpack.c.bf16 %v290_v42, %v289_v41  ;;  %v131_v51 = vld [vmem:[#allocation5 + $0x38] sm:$0xff] }
  0x75   :  { %3098 = vmatpush3.bf16.msra.mxu1 %v3742_v12  ;;  %v295_v22 = vld [vmem:[#allocation3] sm:$0xff]  ;;  %2805 = vmatprep.mubr.msk.f32.mxu0 %vm141_vm2, %v126_v38  ;;  %v285_v44 = vld [vmem:[#allocation11 + $0x10] sm:$0xff]  ;;  %v129_v48 = vld [vmem:[#allocation5 + $0x28] sm:$0xff]  ;;  %p3527_p10 = pnand %p3526_p9, %p3520_p6 }
  0x76   :  { %3099 = vmatprep.subr.bf16.mxu1 %v3559_v0  ;;  %3107 = vmatpush3.bf16.msra.mxu0 %v3766_v36  ;;  %v3776_v47 = vpack.c.bf16 %v286_v45, %v285_v44  ;;  %v294_v50 = vld [vmem:[#allocation2 + $0x8] sm:$0xff]  ;;  %v3830_v3 = vld [vmem:[%s4120_s6] ss:$0 sm:$0xff] }
  0x77   :  { %3108 = vmatprep.subr.bf16.mxu0 %v3559_v0 }
  0x78   :  { %2823 = vmatmul.mubr.msk.f32.vlgmr.msra.gmra.mrb[0].mxu1 %vm119_vm1, %v292_v13  ;;  %2806 = vmatmul.mubr.msk.f32.gmra.mrb[2].mxu0 %vm141_vm2, %v127_v39 }
  0x79   :  { %2833 = vmatprep.mubr.msk.f32.mxu1 %vm3560_vm0, %v3561_v1  ;;  %3101 = vmatpush3.bf16.msra.mxu1 %v3768_v40 }
  0x7a   :  { %3102 = vmatprep.subr.bf16.mxu1 %v3559_v0  ;;  %2808 = vmatprep.mubr.msk.f32.mxu0 %vm141_vm2, %v128_v43 }
  0x7b   :  { %3110 = vmatpush3.bf16.msra.mxu0 %v3776_v47 }
  0x7c   :  { %2809 = vmatmul.mubr.msk.f32.gmra.mrb[4].mxu0 %vm141_vm2, %v129_v48  ;;  %3117 = vmatprep.subr.bf16.mxu0 %v3559_v0 }
  0x7d   :  { %3104 = vmatpush3.bf16.msra.mxu1 %v3774_v46  ;;  %2811 = vmatprep.mubr.msk.f32.mxu0 %vm141_vm2, %v130_v49 }
  0x7e   :  { %3111 = vmatprep.subr.bf16.mxu1 %v3559_v0 }
  0x80   :  { %2834 = vmatmul.mubr.msk.f32.vlgmr.msra.gmra.mrb[2].mxu1 %vm119_vm1, %v294_v50  ;;  %2812 = vmatmul.mubr.msk.f32.gmra.mrb[6].mxu0 %vm141_vm2, %v131_v51 }
  0x81   :  { %3113 = vmatpush3.bf16.msra.mxu1 %v3738_v8  ;;  %2844 = vmatprep.mubr.msk.f32.mxu0 %vm3560_vm0, %v3561_v1 }
  0x82   :  { %3114 = vmatprep.subr.bf16.mxu1 %v3559_v0  ;;  %2855 = vmatprep.mubr.msk.f32.mxu1 %vm3560_vm0, %v3561_v1 }
  0x85   :  { %3116 = vmatpush3.bf16.msra.mxu1 %v3742_v12 }
  0x86   :  { %3123 = vmatprep.subr.bf16.mxu1 %v3559_v0 }
 0x147   :  { %v3757_v15 = vpop.f32.mrb[0].mxu0 }
 0x148   :  { %v232_v16 = vpop.f32.mrb[1].mxu0  ;;  %v238_v2 = vadd.f32 %v3757_v15, %v3755_v14  ;;  %v297_v15 = vld [vmem:[#allocation3 + $0x8] sm:$0xff] }
 0x149   :  { %v233_v17 = vadd.f32 %v3755_v14, %v232_v16 }
 0x14b   :  { %v369_v18 = vpop.f32.mrb[0].mxu1  ;;  %v3799_v55 = vpop.f32.mrb[2].mxu0 }
 0x14c   :  { %v373_v19 = vadd.f32 %v369_v18, %v233_v17  ;;  %v2824_v20 = vpop.f32.mrb[1].mxu1  ;;  %v3801_v56 = vpop.f32.mrb[3].mxu0 }
 0x14e   :  { %3258 = vtanh.f32 %v373_v19  ;;  %v2621_v23 = vmul.f32 -1.442695, %v373_v19 }
 0x14f   :  { %v3803_v57 = vpop.f32.mrb[4].mxu0 }
 0x150   :  { %3260 = vpow2.f32 %v2621_v23  ;;  %v3805_v58 = vpop.f32.mrb[5].mxu0 }
 0x153   :  { %v471_v59 = vpop.f32.mrb[2].mxu1  ;;  %v3807_v60 = vpop.f32.mrb[6].mxu0 }
 0x154   :  { %v2835_v61 = vpop.f32.mrb[3].mxu1  ;;  %v3809_v62 = vpop.f32.mrb[7].mxu0 }
 0x158   :  { %v3259_v21 = vpop.eup %3258 }
 0x159   :  { %387 = vrot.lane.b32.xlu0 %v3259_v21, %s3562_s22 }
 0x15a   :  { %v3261_v24 = vpop.eup %3260 }
 0x15b   :  { %v377_v25 = vadd.f32 1.0, %v3261_v24 }
 0x15d   :  { %382 = vrot.lane.b32.xlu0 %v295_v22, %s3562_s22  ;;  %3262 = vrcp.f32 %v377_v25 }
 0x167   :  { %v3263_v26 = vpop.eup %3262 }
 0x1cb   :  { %v388_v27 = vpop.permute.xlu0 %387 }
 0x1cc   :  { %v390_v28 = vmul.f32 %v3263_v26, %v388_v27 }
 0x1ce   :  { %392 = vrot.lane.b32.xlu1 %v390_v28, %s3562_s22 }
 0x1cf   :  { %v383_v29 = vpop.permute.xlu0 %382 }
 0x1d0   :  { %v385_v30 = vmul.f32 %v3263_v26, %v383_v29 }
 0x240   :  { %v393_v31 = vpop.permute.xlu1 %392 }
 0x241   :  { %v3763_v32 = vadd.f32 %v393_v31, %v385_v30 }
 0x243   :  { %3264 = vtanh.f32 %v3763_v32 }
 0x24d   :  { %v3265_v52 = vpop.eup %3264 }
 0x24e   :  { %398 = vrot.lane.b32.xlu1 %v3265_v52, %s3562_s22 }
 0x2c0   :  { %v399_v53 = vpop.permute.xlu1 %398 }
 0x2c1   :  { %v401_v54 = vmul.f32 %v3263_v26, %v399_v53 }
 0x2c3   :  { %476 = vrot.lane.b32.xlu0 %v401_v54, %s3563_s16  ;;  %v243_v54 = vadd.f32 %v3755_v14, %v3801_v56 }
 0x335   :  { %v477_v63 = vpop.permute.xlu0 %476 }
 0x336   :  { %2845 = vmatmul.mubr.msk.f32.vlgmr.msra.gmra.mrb[8].mxu0 %vm119_vm1, %v477_v63  ;;  %2856 = vmatmul.mubr.msk.f32.vlgmr.msra.gmra.mrb[4].mxu1 %vm119_vm1, %v477_v63 }
 0x337   :  { %3125 = vmatpush3.bf16.msra.mxu1 %v3766_v36  ;;  %3119 = vmatpush3.bf16.msra.mxu0 %v3768_v40 }
 0x338   :  { %3126 = vmatprep.subr.bf16.mxu1 %v3559_v0  ;;  %3120 = vmatprep.subr.bf16.mxu0 %v3559_v0 }
 0x339   :  { %2877 = vmatprep.mubr.msk.f32.mxu1 %vm3560_vm0, %v3561_v1  ;;  %2866 = vmatprep.mubr.msk.f32.mxu0 %vm3560_vm0, %v3561_v1 }
 0x33b   :  { %3128 = vmatpush3.bf16.msra.mxu1 %v3776_v47  ;;  %3122 = vmatpush3.bf16.msra.mxu0 %v3774_v46 }
 0x33c   :  { %3129 = vmatprep.subr.bf16.mxu0 %v3559_v0  ;;  %3135 = vmatprep.subr.bf16.mxu1 %v3559_v0 }
 0x409   :  { %v546_v4 = vpop.f32.mrb[8].mxu0  ;;  %v653_v5 = vpop.f32.mrb[4].mxu1 }
 0x40a   :  { %v547_v6 = vadd.f32 %v546_v4, %v471_v59  ;;  %v657_v7 = vadd.f32 %v653_v5, %v238_v2  ;;  %v2846_v9 = vpop.f32.mrb[9].mxu0  ;;  %v2857_v10 = vpop.f32.mrb[5].mxu1 }
 0x40c   :  { %v556_v11 = vadd.f32 %v3830_v3, %v547_v6  ;;  %3266 = vtanh.f32 %v657_v7  ;;  %v2627_v17 = vmul.f32 -1.442695, %v657_v7 }
 0x40e   :  { %3268 = vtanh.f32 %v556_v11  ;;  %v2625_v18 = vmul.f32 -1.442695, %v556_v11 }
 0x40f   :  { %3270 = vpow2.f32 %v2627_v17 }
 0x410   :  { %3272 = vpow2.f32 %v2625_v18 }
 0x416   :  { %v3267_v13 = vpop.eup %3266 }
 0x417   :  { %667 = vrot.lane.b32.xlu0 %v3267_v13, %s3562_s22 }
 0x418   :  { %v3269_v16 = vpop.eup %3268 }
 0x419   :  { %570 = vrot.lane.b32.xlu1 %v3269_v16, %s3562_s22  ;;  %v3271_v19 = vpop.eup %3270 }
 0x41a   :  { %v3273_v20 = vpop.eup %3272  ;;  %v661_v21 = vadd.f32 1.0, %v3271_v19 }
 0x41b   :  { %v560_v22 = vadd.f32 1.0, %v3273_v20 }
 0x41c   :  { %3274 = vrcp.f32 %v661_v21 }
 0x41d   :  { %565 = vrot.lane.b32.xlu1 %v297_v15, %s3562_s22  ;;  %3276 = vrcp.f32 %v560_v22 }
 0x426   :  { %v3275_v23 = vpop.eup %3274 }
 0x427   :  { %v3277_v26 = vpop.eup %3276  ;;  %v665_v30 = vmul.f32 %v3275_v23, %v3763_v32 }
 0x489   :  { %v668_v24 = vpop.permute.xlu0 %667 }
 0x48a   :  { %v670_v25 = vmul.f32 %v3275_v23, %v668_v24 }
 0x48b   :  { %v571_v27 = vpop.permute.xlu1 %570 }
 0x48c   :  { %v573_v28 = vmul.f32 %v3277_v26, %v571_v27  ;;  %672 = vrot.lane.b32.xlu1 %v670_v25, %s3562_s22 }
 0x48e   :  { %575 = vrot.lane.b32.xlu0 %v573_v28, %s3562_s22 }
 0x48f   :  { %v566_v29 = vpop.permute.xlu1 %565 }
 0x490   :  { %v568_v33 = vmul.f32 %v3277_v26, %v566_v29 }
 0x4fe   :  { %v673_v31 = vpop.permute.xlu1 %672 }
 0x4ff   :  { %v3839_v34 = vadd.f32 %v673_v31, %v665_v30 }
 0x500   :  { %v576_v35 = vpop.permute.xlu0 %575 }
 0x501   :  { %3278 = vtanh.f32 %v3839_v34  ;;  %v3842_v37 = vadd.f32 %v576_v35, %v568_v33 }
 0x503   :  { %3280 = vtanh.f32 %v3842_v37 }
 0x50b   :  { %v3279_v38 = vpop.eup %3278 }
 0x50c   :  { %678 = vrot.lane.b32.xlu1 %v3279_v38, %s3562_s22  ;;  %v248_v38 = vadd.f32 %v3799_v55, %v3755_v14 }
 0x50d   :  { %v3281_v39 = vpop.eup %3280 }
 0x50e   :  { %581 = vrot.lane.b32.xlu0 %v3281_v39, %s3562_s22 }
 0x57e   :  { %v679_v41 = vpop.permute.xlu1 %678 }
 0x57f   :  { %v681_v42 = vmul.f32 %v3275_v23, %v679_v41 }
 0x580   :  { %v582_v32 = vpop.permute.xlu0 %581 }
 0x581   :  { %v584_v43 = vmul.f32 %v3277_v26, %v582_v32  ;;  %758 = vrot.lane.b32.xlu1 %v681_v42, %s3563_s16 }
 0x583   :  { %683 = vrot.lane.b32.xlu0 %v584_v43, %s3563_s16 }
 0x5f3   :  { %v759_v44 = vpop.permute.xlu1 %758 }
 0x5f4   :  { %2878 = vmatmul.mubr.msk.f32.vlgmr.msra.gmra.mrb[6].mxu1 %vm119_vm1, %v759_v44 }
 0x5f5   :  { %v684_v45 = vpop.permute.xlu0 %683  ;;  %3137 = vmatpush3.bf16.msra.mxu1 %v3768_v40  ;;  %2899 = vmatprep.mubr.msk.f32.mxu1 %vm3560_vm0, %v3561_v1 }
 0x5f6   :  { %2867 = vmatmul.mubr.msk.f32.vlgmr.msra.gmra.mrb[10].mxu0 %vm119_vm1, %v684_v45  ;;  %3138 = vmatprep.subr.bf16.mxu1 %v3559_v0 }
 0x5f7   :  { %3131 = vmatpush3.bf16.msra.mxu0 %v3738_v8  ;;  %2888 = vmatprep.mubr.msk.f32.mxu0 %vm3560_vm0, %v3561_v1 }
 0x5f8   :  { %3132 = vmatprep.subr.bf16.mxu0 %v3559_v0 }
 0x5f9   :  { %3140 = vmatpush3.bf16.msra.mxu1 %v3774_v46 }
 0x5fa   :  { %3147 = vmatprep.subr.bf16.mxu1 %v3559_v0 }
 0x5fb   :  { %3134 = vmatpush3.bf16.msra.mxu0 %v3742_v12 }
 0x5fc   :  { %3141 = vmatprep.subr.bf16.mxu0 %v3559_v0 }
 0x5fe   :  { %2889 = vmatmul.mubr.msk.f32.vlgmr.msra.gmra.mrb[12].mxu0 %vm119_vm1, %v759_v44 }
 0x5ff   :  { %3143 = vmatpush3.bf16.msra.mxu0 %v3766_v36  ;;  %2910 = vmatprep.mubr.msk.f32.mxu0 %vm3560_vm0, %v3561_v1 }
 0x600   :  { %3144 = vmatprep.subr.bf16.mxu0 %v3559_v0 }
 0x603   :  { %3146 = vmatpush3.bf16.msra.mxu0 %v3776_v47 }
 0x604   :  { %3153 = vmatprep.subr.bf16.mxu0 %v3559_v0 }
 0x6c7   :  { %v828_v48 = vpop.f32.mrb[6].mxu1 }
 0x6c8   :  { %v2879_v49 = vpop.f32.mrb[7].mxu1 }
 0x6c9   :  { %v753_v50 = vpop.f32.mrb[10].mxu0 }
 0x6ca   :  { %v829_v51 = vadd.f32 %v828_v48, %v753_v50  ;;  %v2868_v52 = vpop.f32.mrb[11].mxu0 }
 0x6cc   :  { %v832_v53 = vadd.f32 %v3830_v3, %v829_v51 }
 0x6ce   :  { %3282 = vtanh.f32 %v832_v53  ;;  %v2630_v5 = vmul.f32 -1.442695, %v832_v53 }
 0x6d1   :  { %v925_v59 = vpop.f32.mrb[12].mxu0 }
 0x6d2   :  { %v929_v61 = vadd.f32 %v925_v59, %v243_v54  ;;  %v2890_v63 = vpop.f32.mrb[13].mxu0 }
 0x6d4   :  { %3284 = vtanh.f32 %v929_v61  ;;  %v2632_v6 = vmul.f32 -1.442695, %v929_v61 }
 0x6d5   :  { %3286 = vpow2.f32 %v2630_v5 }
 0x6d6   :  { %3288 = vpow2.f32 %v2632_v6 }
 0x6d8   :  { %v3283_v2 = vpop.eup %3282 }
 0x6d9   :  { %842 = vrot.lane.b32.xlu0 %v3283_v2, %s3562_s22 }
 0x6de   :  { %v3285_v4 = vpop.eup %3284 }
 0x6df   :  { %939 = vrot.lane.b32.xlu1 %v3285_v4, %s3562_s22  ;;  %v3287_v7 = vpop.eup %3286 }
 0x6e0   :  { %v836_v9 = vadd.f32 1.0, %v3287_v7  ;;  %v3289_v10 = vpop.eup %3288 }
 0x6e1   :  { %v933_v11 = vadd.f32 1.0, %v3289_v10 }
 0x6e2   :  { %3290 = vrcp.f32 %v836_v9 }
 0x6e3   :  { %3292 = vrcp.f32 %v933_v11 }
 0x6ec   :  { %v3291_v56 = vpop.eup %3290 }
 0x6ed   :  { %v3293_v15 = vpop.eup %3292  ;;  %v840_v19 = vmul.f32 %v3291_v56, %v3842_v37 }
 0x6ee   :  { %v937_v22 = vmul.f32 %v3293_v15, %v3839_v34 }
 0x74b   :  { %v843_v13 = vpop.permute.xlu0 %842 }
 0x74c   :  { %v845_v16 = vmul.f32 %v3291_v56, %v843_v13 }
 0x74e   :  { %847 = vrot.lane.b32.xlu0 %v845_v16, %s3562_s22 }
 0x751   :  { %v940_v17 = vpop.permute.xlu1 %939 }
 0x752   :  { %v942_v18 = vmul.f32 %v3293_v15, %v940_v17 }
 0x754   :  { %944 = vrot.lane.b32.xlu1 %v942_v18, %s3562_s22 }
 0x7c0   :  { %v848_v20 = vpop.permute.xlu0 %847 }
 0x7c1   :  { %v3878_v21 = vadd.f32 %v848_v20, %v840_v19 }
 0x7c3   :  { %3294 = vtanh.f32 %v3878_v21 }
 0x7c6   :  { %v945_v23 = vpop.permute.xlu1 %944 }
 0x7c7   :  { %v3882_v24 = vadd.f32 %v945_v23, %v937_v22 }
 0x7c9   :  { %3296 = vtanh.f32 %v3882_v24 }
 0x7cd   :  { %v3295_v25 = vpop.eup %3294 }
 0x7ce   :  { %853 = vrot.lane.b32.xlu0 %v3295_v25, %s3562_s22 }
 0x7d3   :  { %v3297_v26 = vpop.eup %3296 }
 0x7d4   :  { %950 = vrot.lane.b32.xlu1 %v3297_v26, %s3562_s22 }
 0x840   :  { %v854_v27 = vpop.permute.xlu0 %853 }
 0x841   :  { %v856_v28 = vmul.f32 %v3291_v56, %v854_v27  ;;  %v253_v27 = vadd.f32 %v3755_v14, %v3805_v58 }
 0x843   :  { %955 = vrot.lane.b32.xlu0 %v856_v28, %s3563_s16 }
 0x846   :  { %v951_v29 = vpop.permute.xlu1 %950 }
 0x847   :  { %v953_v30 = vmul.f32 %v3293_v15, %v951_v29 }
 0x849   :  { %1030 = vrot.lane.b32.xlu1 %v953_v30, %s3563_s16 }
 0x8b5   :  { %v956_v31 = vpop.permute.xlu0 %955 }
 0x8b6   :  { %2900 = vmatmul.mubr.msk.f32.vlgmr.msra.gmra.mrb[8].mxu1 %vm119_vm1, %v956_v31 }
 0x8b7   :  { %3149 = vmatpush3.bf16.msra.mxu1 %v3738_v8  ;;  %2921 = vmatprep.mubr.msk.f32.mxu1 %vm3560_vm0, %v3561_v1 }
 0x8b8   :  { %3150 = vmatprep.subr.bf16.mxu1 %v3559_v0 }
 0x8bb   :  { %v1031_v33 = vpop.permute.xlu1 %1030  ;;  %3152 = vmatpush3.bf16.msra.mxu1 %v3742_v12 }
 0x8bc   :  { %2911 = vmatmul.mubr.msk.f32.vlgmr.msra.gmra.mrb[14].mxu0 %vm119_vm1, %v1031_v33  ;;  %3159 = vmatprep.subr.bf16.mxu1 %v3559_v0 }
 0x8bd   :  { %3155 = vmatpush3.bf16.msra.mxu0 %v3768_v40  ;;  %2932 = vmatprep.mubr.msk.f32.mxu0 %vm3560_vm0, %v3561_v1 }
 0x8be   :  { %2922 = vmatmul.mubr.msk.f32.vlgmr.msra.gmra.mrb[10].mxu1 %vm119_vm1, %v1031_v33  ;;  %3156 = vmatprep.subr.bf16.mxu0 %v3559_v0 }
 0x8bf   :  { %3161 = vmatpush3.bf16.msra.mxu1 %v3766_v36  ;;  %2943 = vmatprep.mubr.msk.f32.mxu1 %vm3560_vm0, %v3561_v1 }
 0x8c0   :  { %3162 = vmatprep.subr.bf16.mxu1 %v3559_v0 }
 0x8c1   :  { %3158 = vmatpush3.bf16.msra.mxu0 %v3774_v46 }
 0x8c2   :  { %3165 = vmatprep.subr.bf16.mxu0 %v3559_v0 }
 0x8c3   :  { %3164 = vmatpush3.bf16.msra.mxu1 %v3776_v47 }
 0x8c4   :  { %3171 = vmatprep.subr.bf16.mxu1 %v3559_v0 }
 0x989   :  { %v1025_v34 = vpop.f32.mrb[8].mxu1 }
 0x98a   :  { %v2901_v35 = vpop.f32.mrb[9].mxu1 }
 0x98f   :  { %v1100_v37 = vpop.f32.mrb[14].mxu0 }
 0x990   :  { %v1101_v39 = vadd.f32 %v1100_v37, %v1025_v34  ;;  %v2912_v41 = vpop.f32.mrb[15].mxu0 }
 0x991   :  { %v1197_v42 = vpop.f32.mrb[10].mxu1 }
 0x992   :  { %v1104_v32 = vadd.f32 %v3830_v3, %v1101_v39  ;;  %v1201_v43 = vadd.f32 %v1197_v42, %v248_v38  ;;  %v2923_v44 = vpop.f32.mrb[11].mxu1 }
 0x994   :  { %3298 = vtanh.f32 %v1104_v32  ;;  %v2635_v49 = vmul.f32 -1.442695, %v1104_v32  ;;  %v2637_v50 = vmul.f32 -1.442695, %v1201_v43 }
 0x995   :  { %3300 = vtanh.f32 %v1201_v43 }
 0x996   :  { %3302 = vpow2.f32 %v2635_v49 }
 0x997   :  { %3304 = vpow2.f32 %v2637_v50 }
 0x99e   :  { %v3299_v45 = vpop.eup %3298 }
 0x99f   :  { %v3301_v48 = vpop.eup %3300  ;;  %1114 = vrot.lane.b32.xlu0 %v3299_v45, %s3562_s22 }
 0x9a0   :  { %1211 = vrot.lane.b32.xlu1 %v3301_v48, %s3562_s22  ;;  %v3303_v55 = vpop.eup %3302 }
 0x9a1   :  { %v3305_v51 = vpop.eup %3304  ;;  %v1108_v52 = vadd.f32 1.0, %v3303_v55 }
 0x9a2   :  { %v1205_v53 = vadd.f32 1.0, %v3305_v51 }
 0x9a3   :  { %3306 = vrcp.f32 %v1108_v52 }
 0x9a4   :  { %3308 = vrcp.f32 %v1205_v53 }
 0x9ad   :  { %v3307_v54 = vpop.eup %3306 }
 0x9ae   :  { %v3309_v61 = vpop.eup %3308  ;;  %v1112_v5 = vmul.f32 %v3307_v54, %v3878_v21 }
 0x9af   :  { %v1209_v7 = vmul.f32 %v3309_v61, %v3882_v24 }
 0xa11   :  { %v1115_v59 = vpop.permute.xlu0 %1114 }
 0xa12   :  { %v1117_v63 = vmul.f32 %v3307_v54, %v1115_v59  ;;  %v1212_v2 = vpop.permute.xlu1 %1211 }
 0xa13   :  { %v1214_v4 = vmul.f32 %v3309_v61, %v1212_v2 }
 0xa14   :  { %1119 = vrot.lane.b32.xlu0 %v1117_v63, %s3562_s22 }
 0xa15   :  { %1216 = vrot.lane.b32.xlu1 %v1214_v4, %s3562_s22 }
 0xa86   :  { %v1120_v6 = vpop.permute.xlu0 %1119 }
 0xa87   :  { %v3919_v9 = vadd.f32 %v1120_v6, %v1112_v5  ;;  %v1217_v10 = vpop.permute.xlu1 %1216 }
 0xa88   :  { %v3921_v11 = vadd.f32 %v1217_v10, %v1209_v7 }
 0xa89   :  { %3310 = vtanh.f32 %v3919_v9 }
 0xa8a   :  { %3312 = vtanh.f32 %v3921_v11 }
 0xa93   :  { %v3311_v56 = vpop.eup %3310 }
 0xa94   :  { %v3313_v13 = vpop.eup %3312  ;;  %1125 = vrot.lane.b32.xlu0 %v3311_v56, %s3562_s22  ;;  %v258_v56 = vadd.f32 %v3803_v57, %v3755_v14 }
 0xa95   :  { %1222 = vrot.lane.b32.xlu1 %v3313_v13, %s3562_s22 }
 0xb06   :  { %v1126_v16 = vpop.permute.xlu0 %1125 }
 0xb07   :  { %v1128_v15 = vmul.f32 %v3307_v54, %v1126_v16  ;;  %v1223_v17 = vpop.permute.xlu1 %1222 }
 0xb08   :  { %v1225_v18 = vmul.f32 %v3309_v61, %v1223_v17 }
 0xb09   :  { %1227 = vrot.lane.b32.xlu0 %v1128_v15, %s3563_s16 }
 0xb0a   :  { %1302 = vrot.lane.b32.xlu1 %v1225_v18, %s3563_s16 }
 0xb7b   :  { %v1228_v19 = vpop.permute.xlu0 %1227 }
 0xb7c   :  { %v1303_v20 = vpop.permute.xlu1 %1302  ;;  %2933 = vmatmul.mubr.msk.f32.vlgmr.msra.gmra.mrb[16].mxu0 %vm119_vm1, %v1228_v19 }
 0xb7d   :  { %2944 = vmatmul.mubr.msk.f32.vlgmr.msra.gmra.mrb[12].mxu1 %vm119_vm1, %v1303_v20  ;;  %3167 = vmatpush3.bf16.msra.mxu0 %v3738_v8 }
 0xb7e   :  { %3168 = vmatprep.subr.bf16.mxu0 %v3559_v0  ;;  %2954 = vmatprep.mubr.msk.f32.mxu0 %vm3560_vm0, %v3561_v1 }
 0xb7f   :  { %3173 = vmatpush3.bf16.msra.mxu1 %v3768_v40  ;;  %2965 = vmatprep.mubr.msk.f32.mxu1 %vm3560_vm0, %v3561_v1 }
 0xb80   :  { %3174 = vmatprep.subr.bf16.mxu1 %v3559_v0 }
 0xb81   :  { %3170 = vmatpush3.bf16.msra.mxu0 %v3742_v12 }
 0xb82   :  { %3177 = vmatprep.subr.bf16.mxu0 %v3559_v0 }
 0xb83   :  { %3176 = vmatpush3.bf16.msra.mxu1 %v3774_v46 }
 0xb84   :  { %2955 = vmatmul.mubr.msk.f32.vlgmr.msra.gmra.mrb[18].mxu0 %vm119_vm1, %v1303_v20  ;;  %3183 = vmatprep.subr.bf16.mxu1 %v3559_v0 }
 0xb85   :  { %3179 = vmatpush3.bf16.msra.mxu0 %v3766_v36  ;;  %2976 = vmatprep.mubr.msk.f32.mxu0 %vm3560_vm0, %v3561_v1 }
 0xb86   :  { %3180 = vmatprep.subr.bf16.mxu0 %v3559_v0 }
 0xb89   :  { %3182 = vmatpush3.bf16.msra.mxu0 %v3776_v47 }
 0xb8a   :  { %3189 = vmatprep.subr.bf16.mxu0 %v3559_v0 }
 0xc4f   :  { %v1297_v21 = vpop.f32.mrb[16].mxu0 }
 0xc50   :  { %v1372_v22 = vpop.f32.mrb[12].mxu1  ;;  %v2934_v23 = vpop.f32.mrb[17].mxu0 }
 0xc51   :  { %v1373_v24 = vadd.f32 %v1372_v22, %v1297_v21  ;;  %v2945_v25 = vpop.f32.mrb[13].mxu1 }
 0xc53   :  { %v1376_v26 = vadd.f32 %v3830_v3, %v1373_v24 }
 0xc55   :  { %3314 = vtanh.f32 %v1376_v26  ;;  %v2640_v34 = vmul.f32 -1.442695, %v1376_v26 }
 0xc57   :  { %v1469_v28 = vpop.f32.mrb[18].mxu0 }
 0xc58   :  { %v1473_v29 = vadd.f32 %v1469_v28, %v253_v27  ;;  %v2956_v30 = vpop.f32.mrb[19].mxu0 }
 0xc5a   :  { %3316 = vtanh.f32 %v1473_v29  ;;  %v2642_v35 = vmul.f32 -1.442695, %v1473_v29 }
 0xc5b   :  { %3318 = vpow2.f32 %v2640_v34 }
 0xc5c   :  { %3320 = vpow2.f32 %v2642_v35 }
 0xc5f   :  { %v3315_v31 = vpop.eup %3314 }
 0xc60   :  { %1386 = vrot.lane.b32.xlu0 %v3315_v31, %s3562_s22 }
 0xc64   :  { %v3317_v33 = vpop.eup %3316 }
 0xc65   :  { %1483 = vrot.lane.b32.xlu1 %v3317_v33, %s3562_s22  ;;  %v3319_v37 = vpop.eup %3318 }
 0xc66   :  { %v1380_v38 = vadd.f32 1.0, %v3319_v37  ;;  %v3321_v39 = vpop.eup %3320 }
 0xc67   :  { %v1477_v41 = vadd.f32 1.0, %v3321_v39 }
 0xc68   :  { %3322 = vrcp.f32 %v1380_v38 }
 0xc69   :  { %3324 = vrcp.f32 %v1477_v41 }
 0xc72   :  { %v3323_v58 = vpop.eup %3322 }
 0xc73   :  { %v3325_v43 = vpop.eup %3324  ;;  %v1384_v48 = vmul.f32 %v3323_v58, %v3919_v9 }
 0xc74   :  { %v1481_v55 = vmul.f32 %v3325_v43, %v3921_v11 }
 0xcd2   :  { %v1387_v42 = vpop.permute.xlu0 %1386 }
 0xcd3   :  { %v1389_v32 = vmul.f32 %v3323_v58, %v1387_v42 }
 0xcd5   :  { %1391 = vrot.lane.b32.xlu0 %v1389_v32, %s3562_s22 }
 0xcd7   :  { %v1484_v44 = vpop.permute.xlu1 %1483 }
 0xcd8   :  { %v1486_v45 = vmul.f32 %v3325_v43, %v1484_v44 }
 0xcda   :  { %1488 = vrot.lane.b32.xlu1 %v1486_v45, %s3562_s22 }
 0xd47   :  { %v1392_v49 = vpop.permute.xlu0 %1391 }
 0xd48   :  { %v3958_v50 = vadd.f32 %v1392_v49, %v1384_v48 }
 0xd4a   :  { %3326 = vtanh.f32 %v3958_v50 }
 0xd4c   :  { %v1489_v51 = vpop.permute.xlu1 %1488 }
 0xd4d   :  { %v3962_v52 = vadd.f32 %v1489_v51, %v1481_v55 }
 0xd4f   :  { %3328 = vtanh.f32 %v3962_v52 }
 0xd54   :  { %v3327_v53 = vpop.eup %3326 }
 0xd55   :  { %1397 = vrot.lane.b32.xlu0 %v3327_v53, %s3562_s22  ;;  %v263_v53 = vadd.f32 %v3755_v14, %v3809_v62 }
 0xd59   :  { %v3329_v54 = vpop.eup %3328 }
 0xd5a   :  { %1494 = vrot.lane.b32.xlu1 %v3329_v54, %s3562_s22 }
 0xdc7   :  { %v1398_v59 = vpop.permute.xlu0 %1397 }
 0xdc8   :  { %v1400_v61 = vmul.f32 %v3323_v58, %v1398_v59 }
 0xdca   :  { %1499 = vrot.lane.b32.xlu0 %v1400_v61, %s3563_s16 }
 0xdcc   :  { %v1495_v63 = vpop.permute.xlu1 %1494 }
 0xdcd   :  { %v1497_v2 = vmul.f32 %v3325_v43, %v1495_v63 }
 0xdcf   :  { %1574 = vrot.lane.b32.xlu1 %v1497_v2, %s3563_s16 }
 0xe3c   :  { %v1500_v4 = vpop.permute.xlu0 %1499 }
 0xe3d   :  { %2966 = vmatmul.mubr.msk.f32.vlgmr.msra.gmra.mrb[14].mxu1 %vm119_vm1, %v1500_v4 }
 0xe3e   :  { %3185 = vmatpush3.bf16.msra.mxu1 %v3738_v8  ;;  %2987 = vmatprep.mubr.msk.f32.mxu1 %vm3560_vm0, %v3561_v1 }
 0xe3f   :  { %3186 = vmatprep.subr.bf16.mxu1 %v3559_v0 }
 0xe41   :  { %v1575_v5 = vpop.permute.xlu1 %1574 }
 0xe42   :  { %3188 = vmatpush3.bf16.msra.mxu1 %v3742_v12  ;;  %2977 = vmatmul.mubr.msk.f32.vlgmr.msra.gmra.mrb[20].mxu0 %vm119_vm1, %v1575_v5 }
 0xe43   :  { %3191 = vmatpush3.bf16.msra.mxu0 %v3768_v40  ;;  %3195 = vmatprep.subr.bf16.mxu1 %v3559_v0 }
 0xe44   :  { %3192 = vmatprep.subr.bf16.mxu0 %v3559_v0  ;;  %2998 = vmatprep.mubr.msk.f32.mxu0 %vm3560_vm0, %v3561_v1 }
 0xe45   :  { %2988 = vmatmul.mubr.msk.f32.vlgmr.msra.gmra.mrb[16].mxu1 %vm119_vm1, %v1575_v5 }
 0xe46   :  { %3197 = vmatpush3.bf16.msra.mxu1 %v3766_v36  ;;  %3009 = vmatprep.mubr.msk.f32.mxu1 %vm3560_vm0, %v3561_v1 }
 0xe47   :  { %3194 = vmatpush3.bf16.msra.mxu0 %v3774_v46  ;;  %3198 = vmatprep.subr.bf16.mxu1 %v3559_v0 }
 0xe48   :  { %3201 = vmatprep.subr.bf16.mxu0 %v3559_v0 }
 0xe4a   :  { %3200 = vmatpush3.bf16.msra.mxu1 %v3776_v47 }
 0xe4b   :  { %3207 = vmatprep.subr.bf16.mxu1 %v3559_v0 }
 0xf10   :  { %v1569_v6 = vpop.f32.mrb[14].mxu1 }
 0xf11   :  { %v2967_v7 = vpop.f32.mrb[15].mxu1 }
 0xf15   :  { %v1644_v9 = vpop.f32.mrb[20].mxu0 }
 0xf16   :  { %v1645_v10 = vadd.f32 %v1644_v9, %v1569_v6  ;;  %v2978_v11 = vpop.f32.mrb[21].mxu0 }
 0xf18   :  { %v1648_v13 = vadd.f32 %v3830_v3, %v1645_v10  ;;  %v1741_v16 = vpop.f32.mrb[16].mxu1 }
 0xf19   :  { %v1745_v15 = vadd.f32 %v1741_v16, %v258_v56  ;;  %v2989_v17 = vpop.f32.mrb[17].mxu1 }
 0xf1a   :  { %3330 = vtanh.f32 %v1648_v13  ;;  %v2645_v20 = vmul.f32 -1.442695, %v1648_v13 }
 0xf1b   :  { %3332 = vtanh.f32 %v1745_v15  ;;  %v2647_v21 = vmul.f32 -1.442695, %v1745_v15 }
 0xf1c   :  { %3334 = vpow2.f32 %v2645_v20 }
 0xf1d   :  { %3336 = vpow2.f32 %v2647_v21 }
 0xf24   :  { %v3331_v18 = vpop.eup %3330 }
 0xf25   :  { %v3333_v19 = vpop.eup %3332  ;;  %1658 = vrot.lane.b32.xlu0 %v3331_v18, %s3562_s22 }
 0xf26   :  { %1755 = vrot.lane.b32.xlu1 %v3333_v19, %s3562_s22  ;;  %v3335_v22 = vpop.eup %3334 }
 0xf27   :  { %v3337_v23 = vpop.eup %3336  ;;  %v1652_v57 = vadd.f32 1.0, %v3335_v22 }
 0xf28   :  { %v1749_v24 = vadd.f32 1.0, %v3337_v23 }
 0xf29   :  { %3338 = vrcp.f32 %v1652_v57 }
 0xf2a   :  { %3340 = vrcp.f32 %v1749_v24 }
 0xf33   :  { %v3339_v25 = vpop.eup %3338 }
 0xf34   :  { %v3341_v27 = vpop.eup %3340  ;;  %v1656_v31 = vmul.f32 %v3339_v25, %v3958_v50 }
 0xf35   :  { %v1753_v34 = vmul.f32 %v3341_v27, %v3962_v52 }
 0xf97   :  { %v1659_v26 = vpop.permute.xlu0 %1658 }
 0xf98   :  { %v1661_v28 = vmul.f32 %v3339_v25, %v1659_v26  ;;  %v1756_v29 = vpop.permute.xlu1 %1755 }
 0xf99   :  { %v1758_v30 = vmul.f32 %v3341_v27, %v1756_v29 }
 0xf9a   :  { %1663 = vrot.lane.b32.xlu0 %v1661_v28, %s3562_s22 }
 0xf9b   :  { %1760 = vrot.lane.b32.xlu1 %v1758_v30, %s3562_s22 }
0x100c   :  { %v1664_v33 = vpop.permute.xlu0 %1663 }
0x100d   :  { %v3999_v35 = vadd.f32 %v1664_v33, %v1656_v31  ;;  %v1761_v37 = vpop.permute.xlu1 %1760 }
0x100e   :  { %v4001_v38 = vadd.f32 %v1761_v37, %v1753_v34 }
0x100f   :  { %3342 = vtanh.f32 %v3999_v35 }
0x1010   :  { %3344 = vtanh.f32 %v4001_v38 }
0x1019   :  { %v3343_v39 = vpop.eup %3342 }
0x101a   :  { %v3345_v41 = vpop.eup %3344  ;;  %1669 = vrot.lane.b32.xlu0 %v3343_v39, %s3562_s22 }
0x101b   :  { %1766 = vrot.lane.b32.xlu1 %v3345_v41, %s3562_s22 }
0x108c   :  { %v1670_v58 = vpop.permute.xlu0 %1669 }
0x108d   :  { %v1672_v42 = vmul.f32 %v3339_v25, %v1670_v58  ;;  %v1767_v32 = vpop.permute.xlu1 %1766 }
0x108e   :  { %v1769_v43 = vmul.f32 %v3341_v27, %v1767_v32 }
0x108f   :  { %1771 = vrot.lane.b32.xlu0 %v1672_v42, %s3563_s16 }
0x1090   :  { %1846 = vrot.lane.b32.xlu1 %v1769_v43, %s3563_s16 }
0x1101   :  { %v1772_v44 = vpop.permute.xlu0 %1771 }
0x1102   :  { %v1847_v45 = vpop.permute.xlu1 %1846  ;;  %2999 = vmatmul.mubr.msk.f32.vlgmr.msra.gmra.mrb[22].mxu0 %vm119_vm1, %v1772_v44 }
0x1103   :  { %3010 = vmatmul.mubr.msk.f32.vlgmr.msra.gmra.mrb[18].mxu1 %vm119_vm1, %v1847_v45  ;;  %3203 = vmatpush3.bf16.msra.mxu0 %v3738_v8 }
0x1104   :  { %3204 = vmatprep.subr.bf16.mxu0 %v3559_v0  ;;  %3020 = vmatprep.mubr.msk.f32.mxu0 %vm3560_vm0, %v3561_v1 }
0x1105   :  { %3209 = vmatpush3.bf16.msra.mxu1 %v3768_v40  ;;  %3031 = vmatprep.mubr.msk.f32.mxu1 %vm3560_vm0, %v3561_v1 }
0x1106   :  { %3210 = vmatprep.subr.bf16.mxu1 %v3559_v0 }
0x1107   :  { %3206 = vmatpush3.bf16.msra.mxu0 %v3742_v12 }
0x1108   :  { %3213 = vmatprep.subr.bf16.mxu0 %v3559_v0 }
0x1109   :  { %3212 = vmatpush3.bf16.msra.mxu1 %v3774_v46 }
0x110a   :  { %3021 = vmatmul.mubr.msk.f32.vlgmr.msra.gmra.mrb[24].mxu0 %vm119_vm1, %v1847_v45  ;;  %3219 = vmatprep.subr.bf16.mxu1 %v3559_v0 }
0x110b   :  { %3215 = vmatpush3.bf16.msra.mxu0 %v3766_v36  ;;  %3042 = vmatprep.mubr.msk.f32.mxu0 %vm3560_vm0, %v3561_v1 }
0x110c   :  { %3216 = vmatprep.subr.bf16.mxu0 %v3559_v0 }
0x110f   :  { %3218 = vmatpush3.bf16.msra.mxu0 %v3776_v47 }
0x1110   :  { %3225 = vmatprep.subr.bf16.mxu0 %v3559_v0 }
0x11d5   :  { %v1841_v48 = vpop.f32.mrb[22].mxu0 }
0x11d6   :  { %v1916_v49 = vpop.f32.mrb[18].mxu1  ;;  %v3000_v50 = vpop.f32.mrb[23].mxu0 }
0x11d7   :  { %v1917_v55 = vadd.f32 %v1916_v49, %v1841_v48  ;;  %v3011_v51 = vpop.f32.mrb[19].mxu1 }
0x11d9   :  { %v1920_v52 = vadd.f32 %v3830_v3, %v1917_v55 }
0x11db   :  { %3346 = vtanh.f32 %v1920_v52  ;;  %v2650_v4 = vmul.f32 -1.442695, %v1920_v52 }
0x11dd   :  { %v2013_v54 = vpop.f32.mrb[24].mxu0 }
0x11de   :  { %v2017_v59 = vadd.f32 %v2013_v54, %v263_v53  ;;  %v3022_v61 = vpop.f32.mrb[25].mxu0 }
0x11e0   :  { %3348 = vtanh.f32 %v2017_v59  ;;  %v2652_v5 = vmul.f32 -1.442695, %v2017_v59 }
0x11e1   :  { %3350 = vpow2.f32 %v2650_v4 }
0x11e2   :  { %3352 = vpow2.f32 %v2652_v5 }
0x11e5   :  { %v3347_v63 = vpop.eup %3346 }
0x11e6   :  { %1930 = vrot.lane.b32.xlu0 %v3347_v63, %s3562_s22 }
0x11ea   :  { %v3349_v2 = vpop.eup %3348 }
0x11eb   :  { %2027 = vrot.lane.b32.xlu1 %v3349_v2, %s3562_s22  ;;  %v3351_v6 = vpop.eup %3350 }
0x11ec   :  { %v1924_v7 = vadd.f32 1.0, %v3351_v6  ;;  %v3353_v9 = vpop.eup %3352 }
0x11ed   :  { %v2021_v10 = vadd.f32 1.0, %v3353_v9 }
0x11ee   :  { %3354 = vrcp.f32 %v1924_v7 }
0x11ef   :  { %3356 = vrcp.f32 %v2021_v10 }
0x11f8   :  { %v3355_v14 = vpop.eup %3354 }
0x11f9   :  { %v3357_v56 = vpop.eup %3356  ;;  %v1928_v15 = vmul.f32 %v3355_v14, %v3999_v35 }
0x11fa   :  { %v2025_v19 = vmul.f32 %v3357_v56, %v4001_v38 }
0x1258   :  { %v1931_v62 = vpop.permute.xlu0 %1930 }
0x1259   :  { %v1933_v11 = vmul.f32 %v3355_v14, %v1931_v62 }
0x125b   :  { %1935 = vrot.lane.b32.xlu0 %v1933_v11, %s3562_s22 }
0x125d   :  { %v2028_v13 = vpop.permute.xlu1 %2027 }
0x125e   :  { %v2030_v16 = vmul.f32 %v3357_v56, %v2028_v13 }
0x1260   :  { %2032 = vrot.lane.b32.xlu1 %v2030_v16, %s3562_s22 }
0x12cd   :  { %v1936_v17 = vpop.permute.xlu0 %1935 }
0x12ce   :  { %v4038_v18 = vadd.f32 %v1936_v17, %v1928_v15 }
0x12d0   :  { %3358 = vtanh.f32 %v4038_v18 }
0x12d2   :  { %v2033_v20 = vpop.permute.xlu1 %2032 }
0x12d3   :  { %v4042_v21 = vadd.f32 %v2033_v20, %v2025_v19 }
0x12d5   :  { %3360 = vtanh.f32 %v4042_v21 }
0x12da   :  { %v3359_v22 = vpop.eup %3358 }
0x12db   :  { %1941 = vrot.lane.b32.xlu0 %v3359_v22, %s3562_s22 }
0x12df   :  { %v3361_v23 = vpop.eup %3360 }
0x12e0   :  { %2038 = vrot.lane.b32.xlu1 %v3361_v23, %s3562_s22  ;;  %v2509_v23 = vld [vmem:[#allocation14] sm:$0xff] }
0x134d   :  { %v1942_v57 = vpop.permute.xlu0 %1941 }
0x134e   :  { %v1944_v24 = vmul.f32 %v3355_v14, %v1942_v57  ;;  %v2511_v57 = vld [vmem:[#allocation14 + $0x10] sm:$0xff] }
0x1350   :  { %2043 = vrot.lane.b32.xlu0 %v1944_v24, %s3563_s16 }
0x1352   :  { %v2039_v25 = vpop.permute.xlu1 %2038 }
0x1353   :  { %v2041_v26 = vmul.f32 %v3357_v56, %v2039_v25  ;;  %v2512_v25 = vld [vmem:[#allocation14 + $0x18] sm:$0xff] }
0x1355   :  { %2118 = vrot.lane.b32.xlu1 %v2041_v26, %s3563_s16  ;;  %v3241_v26 = vpack.c.bf16 %v2512_v25, %v2511_v57 }
0x13c2   :  { %v2044_v27 = vpop.permute.xlu0 %2043 }
0x13c3   :  { %3032 = vmatmul.mubr.msk.f32.vlgmr.msra.gmra.mrb[20].mxu1 %vm119_vm1, %v2044_v27 }
0x13c4   :  { %3221 = vmatpush3.bf16.msra.mxu1 %v3738_v8  ;;  %3053 = vmatprep.mubr.msk.f32.mxu1 %vm3560_vm0, %v3561_v1 }
0x13c5   :  { %3222 = vmatprep.subr.bf16.mxu1 %v3559_v0 }
0x13c7   :  { %v2119_v28 = vpop.permute.xlu1 %2118 }
0x13c8   :  { %3224 = vmatpush3.bf16.msra.mxu1 %v3742_v12  ;;  %3043 = vmatmul.mubr.msk.f32.vlgmr.msra.gmra.mrb[26].mxu0 %vm119_vm1, %v2119_v28 }
0x13c9   :  { %3231 = vmatprep.subr.bf16.mxu1 %v3559_v0  ;;  %3227 = vmatpush3.bf16.msra.mxu0 %v3768_v40 }
0x13ca   :  { %3228 = vmatprep.subr.bf16.mxu0 %v3559_v0  ;;  %3064 = vmatprep.mubr.msk.f32.mxu0 %vm3560_vm0, %v3561_v1 }
0x13cb   :  { %3054 = vmatmul.mubr.msk.f32.vlgmr.msra.gmra.mrb[22].mxu1 %vm119_vm1, %v2119_v28 }
0x13cc   :  { %3233 = vmatpush3.bf16.msra.mxu1 %v3766_v36  ;;  %3075 = vmatprep.mubr.msk.f32.mxu1 %vm3560_vm0, %v3561_v1  ;;  %v3386_v36 = vld [vmem:[%s4116_s2] ss:$0 sm:$0xff]  ;;  %s3564_s2 = smov 96  }
0x13cd   :  { %3234 = vmatprep.subr.bf16.mxu1 %v3559_v0  ;;  %3230 = vmatpush3.bf16.msra.mxu0 %v3774_v46  ;;  %v268_v31 = vadd.f32 %v3386_v36, %v3807_v60 }
0x13ce   :  { %3237 = vmatprep.subr.bf16.mxu0 %v3559_v0 }
0x13d0   :  { %3236 = vmatpush3.bf16.msra.mxu1 %v3776_v47 }
0x1496   :  { %v2113_v8 = vpop.f32.mrb[20].mxu1 }
0x1497   :  { %v3033_v12 = vpop.f32.mrb[21].mxu1 }
0x149b   :  { %v2188_v40 = vpop.f32.mrb[26].mxu0 }
0x149c   :  { %v2189_v29 = vadd.f32 %v2188_v40, %v2113_v8  ;;  %v3044_v30 = vpop.f32.mrb[27].mxu0 }
0x149e   :  { %v2192_v33 = vadd.f32 %v3830_v3, %v2189_v29  ;;  %v2285_v34 = vpop.f32.mrb[22].mxu1  ;;  %v2661_v29 = vld [vmem:[%s4122_s8] ss:$0 sm:$0xff] }
0x149f   :  { %v2289_v35 = vadd.f32 %v2285_v34, %v268_v31  ;;  %v3055_v46 = vpop.f32.mrb[23].mxu1 }
0x14a0   :  { %3362 = vtanh.f32 %v2192_v33  ;;  %v2655_v38 = vmul.f32 -1.442695, %v2192_v33 }
0x14a1   :  { %3364 = vtanh.f32 %v2289_v35  ;;  %v2657_v39 = vmul.f32 -1.442695, %v2289_v35 }
0x14a2   :  { %3366 = vpow2.f32 %v2655_v38 }
0x14a3   :  { %3368 = vpow2.f32 %v2657_v39 }
0x14aa   :  { %v3363_v37 = vpop.eup %3362 }
0x14ab   :  { %v3365_v47 = vpop.eup %3364  ;;  %2202 = vrot.lane.b32.xlu0 %v3363_v37, %s3562_s22 }
0x14ac   :  { %2299 = vrot.lane.b32.xlu1 %v3365_v47, %s3562_s22  ;;  %v3367_v41 = vpop.eup %3366 }
0x14ad   :  { %v3369_v58 = vpop.eup %3368  ;;  %v2196_v60 = vadd.f32 1.0, %v3367_v41 }
0x14ae   :  { %v2293_v42 = vadd.f32 1.0, %v3369_v58 }
0x14af   :  { %3370 = vrcp.f32 %v2196_v60 }
0x14b0   :  { %3372 = vrcp.f32 %v2293_v42 }
0x14b9   :  { %v3371_v32 = vpop.eup %3370 }
0x14ba   :  { %v3373_v44 = vpop.eup %3372  ;;  %v2200_v50 = vmul.f32 %v3371_v32, %v4038_v18 }
0x14bb   :  { %v2297_v51 = vmul.f32 %v3373_v44, %v4042_v21 }
0x151d   :  { %v2203_v43 = vpop.permute.xlu0 %2202 }
0x151e   :  { %v2205_v45 = vmul.f32 %v3371_v32, %v2203_v43  ;;  %v2300_v48 = vpop.permute.xlu1 %2299 }
0x151f   :  { %v2302_v49 = vmul.f32 %v3373_v44, %v2300_v48 }
0x1520   :  { %2207 = vrot.lane.b32.xlu0 %v2205_v45, %s3562_s22 }
0x1521   :  { %2304 = vrot.lane.b32.xlu1 %v2302_v49, %s3562_s22 }
0x1592   :  { %v2208_v55 = vpop.permute.xlu0 %2207 }
0x1593   :  { %v2210_v52 = vadd.f32 %v2208_v55, %v2200_v50  ;;  %v2305_v53 = vpop.permute.xlu1 %2304 }
0x1594   :  { %v2307_v54 = vadd.f32 %v2305_v53, %v2297_v51 }
0x1595   :  { %3374 = vtanh.f32 %v2210_v52 }
0x1596   :  { %3376 = vtanh.f32 %v2307_v54 }
0x159f   :  { %v3375_v59 = vpop.eup %3374 }
0x15a0   :  { %v3377_v61 = vpop.eup %3376  ;;  %2213 = vrot.lane.b32.xlu0 %v3375_v59, %s3562_s22 }
0x15a1   :  { %2310 = vrot.lane.b32.xlu1 %v3377_v61, %s3562_s22 }
0x1612   :  { %v2214_v63 = vpop.permute.xlu0 %2213 }
0x1613   :  { %v2216_v2 = vmul.f32 %v3371_v32, %v2214_v63  ;;  %v2311_v4 = vpop.permute.xlu1 %2310 }
0x1614   :  { %v2313_v5 = vmul.f32 %v3373_v44, %v2311_v4 }
0x1615   :  { %2315 = vrot.lane.b32.xlu0 %v2216_v2, %s3563_s16 }
0x1616   :  { %2390 = vrot.lane.b32.xlu1 %v2313_v5, %s3563_s16 }
0x1687   :  { %v2316_v6 = vpop.permute.xlu0 %2315 }
0x1688   :  { %v2391_v7 = vpop.permute.xlu1 %2390  ;;  %3065 = vmatmul.mubr.msk.f32.vlgmr.msra.gmra.mrb[28].mxu0 %vm119_vm1, %v2316_v6 }
0x1689   :  { %2490 = vst.msk [vmem:[#allocation2] sm:$0xff] %vm119_vm1, %v2391_v7  ;;  %3076 = vmatmul.mubr.msk.f32.vlgmr.msra.gmra.mrb[24].mxu1 %vm119_vm1, %v2391_v7  ;;  %3086 = vmatprep.mubr.msk.f32.mxu0 %vm3560_vm0, %v3561_v1 }
0x175b   :  { %v2385_v9 = vpop.f32.mrb[28].mxu0 }
0x175c   :  { %v2460_v10 = vpop.f32.mrb[24].mxu1  ;;  %v3066_v14 = vpop.f32.mrb[29].mxu0 }
0x175d   :  { %v2461_v62 = vadd.f32 %v2460_v10, %v2385_v9  ;;  %v3077_v11 = vpop.f32.mrb[25].mxu1 }
0x175f   :  { %v2464_v56 = vadd.f32 %v3830_v3, %v2461_v62  ;;  %v2510_v3 = vld [vmem:[#allocation14 + $0x8] sm:$0xff] }
0x1760   :  { %v3238_v24 = vpack.c.bf16 %v2510_v3, %v2509_v23 }
0x1761   :  { %3378 = vtanh.f32 %v2464_v56  ;;  %v2660_v16 = vmul.f32 -1.442695, %v2464_v56 }
0x1762   :  { %3239 = vmatpush3.bf16.msra.mxu0 %v3238_v24 }
0x1763   :  { %3380 = vpow2.f32 %v2660_v16  ;;  %3240 = vmatprep.subr.bf16.mxu0 %v3559_v0 }
0x1766   :  { %3242 = vmatpush3.bf16.msra.mxu0 %v3241_v26 }
0x176b   :  { %v3379_v13 = vpop.eup %3378 }
0x176c   :  { %2474 = vrot.lane.b32.xlu0 %v3379_v13, %s3562_s22 }
0x176d   :  { %v3381_v15 = vpop.eup %3380 }
0x176e   :  { %v2468_v17 = vadd.f32 1.0, %v3381_v15 }
0x1770   :  { %3382 = vrcp.f32 %v2468_v17 }
0x177a   :  { %v3383_v18 = vpop.eup %3382 }
0x177b   :  { %v2472_v1 = vmul.f32 %v3383_v18, %v2210_v52 }
0x17de   :  { %v2475_v19 = vpop.permute.xlu0 %2474 }
0x17df   :  { %v2477_v20 = vmul.f32 %v3383_v18, %v2475_v19 }
0x17e1   :  { %2479 = vrot.lane.b32.xlu1 %v2477_v20, %s3562_s22 }
0x1853   :  { %v2480_v21 = vpop.permute.xlu1 %2479 }
0x1854   :  { %v2482_v22 = vadd.f32 %v2480_v21, %v2472_v1 }
0x1856   :  { %3384 = vtanh.f32 %v2482_v22 }
0x1860   :  { %v3385_v27 = vpop.eup %3384 }
0x1861   :  { %2485 = vrot.lane.b32.xlu0 %v3385_v27, %s3562_s22 }
0x1865   :  { %2492 = vrot.lane.b32.xlu0 %v2307_v54, %s3564_s2 }
0x18d3   :  { %v2486_v28 = vpop.permute.xlu0 %2485 }
0x18d4   :  { %v2488_v8 = vmul.f32 %v3383_v18, %v2486_v28 }
0x18d6   :  { %2497 = vrot.lane.b32.xlu1 %v2488_v8, %s3563_s16 }
0x18d7   :  { %v2493_v12 = vpop.permute.xlu0 %2492 }
0x18d8   :  { %2495 = vst.msk [vmem:[#allocation3] sm:$0xff] %vm119_vm1, %v2493_v12 }
0x18da   :  { %2502 = vrot.lane.b32.xlu1 %v2482_v22, %s3564_s2 }
0x1948   :  { %v2498_v40 = vpop.permute.xlu1 %2497 }
0x1949   :  { %2500 = vst.msk [vmem:[#allocation2 + $0x8] sm:$0xff] %vm119_vm1, %v2498_v40  ;;  %3087 = vmatmul.mubr.msk.f32.vlgmr.msra.gmra.mrb[30].mxu0 %vm119_vm1, %v2498_v40 }
0x194c   :  { %v2503_v0 = vpop.permute.xlu1 %2502 }
0x194d   :  { %2505 = vst.msk [vmem:[#allocation3 + $0x8] sm:$0xff] %vm119_vm1, %v2503_v0 }
0x1a1c   :  { %v2588_v30 = vpop.f32.mrb[30].mxu0 }
0x1a1d   :  { %v2589_v36 = vadd.f32 %v2661_v29, %v2588_v30  ;;  %v3088_v31 = vpop.f32.mrb[31].mxu0 }
0x1a1f   :  { %2592 = vst [vmem:[#allocation16] sm:$0xff] %v2589_v36 }
0x1a20   :  { %3530 = shalt.err (!%p3527_p10)
}
0x1a21   :  { %s3531_s3 = scalar_lea.hbm %s4123_s9, 128 }
0x1a22   :  { %p3532_p11 = scmp.ne.s32.totalorder %s4123_s9, %s3531_s3  ;;  %p3535_p12 = scmp.lt.u32.totalorder %s3531_s3, %s4123_s9 }
0x1a24   :  { %p3537_p13 = pnand %p3535_p12, %p3532_p11 }
0x1a26   :  { %3540 = shalt.err (!%p3537_p13)
}
0x1a27   :  { %2602 = dma.vmem_to_hbm [thread:$0]  %s2600_s26, 128, %s4123_s9, [#allocation7]  }
0x1a28   :  { %3549 = dma.done.wait [#allocation7], 128  }
0x1a29   :  { %3550 = vsyncadd [#allocation7], 4294967168 }
0x1a2a   :  { %2606 = vsyncpa [#allocation6], 1 }
0x1a2b   :  { %2607 = vsyncpa [#allocation9], 1 }
0x1a2c   :  { %2608 = vsyncpa [#allocation12], 1 }
0x1a2d   :  { %2609 = vsyncpa [#allocation15], 1 }
0x1a2e   :  { %2610 = vsyncpa [#allocation7], 1 }

</bundles_post_ra>
